<compile_context>
chip_gen: v5e
topology: v5e:2x2
jax: 0.10.0
libtpu: 0.0.40
codegen_flags: <defaults>
</compile_context>

<pallas_src>
import jax
import jax.numpy as jnp
from jax.experimental import pallas as pl
from jax.experimental.pallas import tpu as pltpu

BN_EPS = 1e-5


def _ca_resblock_kernel(x_ref, t_hbm, g1_ref, b1_ref, g2_ref, b2_ref,
                        wa1_ref, ba1_ref, wa2_ref, ba2_ref, rt_ref,
                        out_ref, pad_ref, wbuf_ref, dma_sem):
    """Whole block in VMEM (small shapes); no grid iteration needed.

    x_ref   : (N, H, W*C)        f32  lane-dense input (W fused into channels)
    t_hbm   : (2, 3*W*C, W*C)    bf16 fused block-Toeplitz conv weights (HBM)
    g*, b*  : (1, W*C)           f32  BatchNorm gamma / beta, lane-tiled
    wa1,ba1 : (C, C//8), (1, C//8)    first 1x1 conv of the CA branch
    wa2,ba2 : (C//8, C), (1, C)       second 1x1 conv of the CA branch
    rt      : (C, W*C)           f32  0/1 channel -> lane spread matrix
    out_ref : (N, H, W*C)        f32
    pad_ref : (N, H+2, W*C)      bf16 scratch: H-halo-padded conv input
    wbuf_ref: (2, 3*W*C, W*C)    bf16 scratch: DMA target for t_hbm
    dma_sem : DMA semaphores (2,)
    """
    N, H, WC = x_ref.shape
    C = wa1_ref.shape[0]
    W = WC // C
    NH = N * H
    inv_cnt = 1.0 / (NH * W)          # 1 / (N*H*W) for batch statistics
    inv_hw = 1.0 / (H * W)            # for the per-image GAP

    # --- conv1 weights start streaming immediately (overlap with pad fill) ---
    cp1 = pltpu.make_async_copy(t_hbm.at[0], wbuf_ref.at[0], dma_sem.at[0])
    cp1.start()

    # --- zero only the two H-halo rows (W halo is folded into the weights) ---
    pad_ref[:, 0:1, :] = jnp.zeros((N, 1, WC), jnp.bfloat16)
    pad_ref[:, H + 1:H + 2, :] = jnp.zeros((N, 1, WC), jnp.bfloat16)

    def conv_lhs():
        # (NH, 3*WC) bf16: the three kh-shifted pad views, lane-concatenated,
        # so each conv is a single K = 3*W*C matmul.
        return jnp.concatenate(
            [pad_ref[:, 0:H, :], pad_ref[:, 1:H + 1, :], pad_ref[:, 2:H + 2, :]],
            axis=-1).reshape(NH, 3 * WC)

    def lane_group_sum(v):
        # v: (rows, WC).  log2(W) circular roll+add steps -> every C-lane
        # group holds the per-channel sum over all W groups.  Reduce AND
        # broadcast in one go on the XLU; no MXU projection matmuls.
        shift = C
        while shift < WC:
            v = v + pltpu.roll(v, shift, 1)
            shift *= 2
        return v

    # ---------------- conv1 -> bn1 -> relu -----------------------------------
    pad_ref[:, 1:H + 1, :] = x_ref[...].astype(jnp.bfloat16)
    lhs1 = conv_lhs()
    cp1.wait()
    # conv2 weights stream behind conv1 + bn1 (started only after cp1 is done
    # so the two transfers never compete for HBM bandwidth).
    cp2 = pltpu.make_async_copy(t_hbm.at[1], wbuf_ref.at[1], dma_sem.at[1])
    cp2.start()

    acc1 = jnp.dot(lhs1, wbuf_ref[0], preferred_element_type=jnp.float32)

    st1 = jnp.concatenate(
        [jnp.sum(acc1, axis=0, keepdims=True),
         jnp.sum(acc1 * acc1, axis=0, keepdims=True)], axis=0)        # (2, WC)
    st1 = lane_group_sum(st1)
    mean1 = st1[0:1] * inv_cnt
    var1 = st1[1:2] * inv_cnt - mean1 * mean1
    scale1 = g1_ref[...] * jax.lax.rsqrt(var1 + BN_EPS)               # (1, WC)
    shift1 = b1_ref[...] - mean1 * scale1
    out1 = jnp.maximum(acc1 * scale1 + shift1, 0.0)                   # (NH, WC)

    # ---------------- conv2 -> bn2 --------------------------------------------
    pad_ref[:, 1:H + 1, :] = out1.reshape(N, H, WC).astype(jnp.bfloat16)
    lhs2 = conv_lhs()
    cp2.wait()
    acc2 = jnp.dot(lhs2, wbuf_ref[1], preferred_element_type=jnp.float32)
    acc2_img = acc2.reshape(N, H, WC)

    st2 = jnp.concatenate(
        [jnp.sum(acc2, axis=0, keepdims=True),
         jnp.sum(acc2 * acc2, axis=0, keepdims=True),
         jnp.sum(acc2_img, axis=1)], axis=0)                          # (2+N, WC)
    st2 = lane_group_sum(st2)
    mean2 = st2[0:1] * inv_cnt
    var2 = st2[1:2] * inv_cnt - mean2 * mean2
    scale2 = g2_ref[...] * jax.lax.rsqrt(var2 + BN_EPS)               # (1, WC)
    shift2 = b2_ref[...] - mean2 * scale2

    # ---- channel attention: GAP(bn2(acc2)) == scale2*GAP(acc2) + shift2 -----
    pooled = st2[2:2 + N, 0:C] * inv_hw * scale2[:, 0:C] + shift2[:, 0:C]  # (N, C)
    hdn = jnp.maximum(
        jnp.dot(pooled, wa1_ref[...], preferred_element_type=jnp.float32)
        + ba1_ref[...], 0.0)                                          # (N, C//8)
    logits = jnp.dot(hdn, wa2_ref[...],
                     preferred_element_type=jnp.float32) + ba2_ref[...]
    att = 1.0 / (1.0 + jnp.exp(-logits))                              # (N, C)
    att_l = jnp.dot(att, rt_ref[...],
                    preferred_element_type=jnp.float32)               # (N, WC)

    # ---- fold BN2 + attention into per-image scale/shift, add identity, relu
    eff_scale = scale2 * att_l                                        # (N, WC)
    eff_shift = shift2 * att_l
    out_ref[...] = jnp.maximum(
        acc2_img * eff_scale[:, None, :] + eff_shift[:, None, :] + x_ref[...],
        0.0)


def _toeplitz_conv_weights(w, width):
    """(3,3,Cin,Cout) HWIO conv3x3 weights -> (3*W*Cin, W*Cout) block-Toeplitz.

    T[kh*W*Cin + w_in*Cin + ci, w_out*Cout + co] = w[kh, w_in - w_out + 1, ci, co]
    (zero where the kw tap is out of range), so the whole W dimension and its
    zero padding fold into a single K = 3*W*Cin contraction.
    """
    cin, cout = w.shape[2], w.shape[3]
    idx = jnp.arange(width)
    kw = idx[:, None] - idx[None, :] + 1                    # (W_in, W_out)
    valid = (kw >= 0) & (kw <= 2)
    blocks = w[:, jnp.clip(kw, 0, 2)]                       # (3, W, W, Cin, Cout)
    blocks = jnp.where(valid[None, :, :, None, None], blocks, 0.0)
    t = blocks.transpose(0, 1, 3, 2, 4).reshape(3, width * cin, width * cout)
    return t.reshape(3 * width * cin, width * cout)


@jax.jit
def ca_resblock(x, params):
    """x: (N, H, W, C) float32 NHWC.  inplanes == planes, stride=1, no downsample."""
    N, H, W, C = x.shape
    assert params["w1"].shape[-1] == C, \
        "identity path requires inplanes == planes (downsample=None)"
    assert (W & (W - 1)) == 0, "lane roll-tree assumes W is a power of two"
    assert (W * C) % 128 == 0, "lane-dense layout wants W*C to be a multiple of 128"
    WC = W * C

    x3 = x.reshape(N, H, WC)                                # lane-dense (last dim 256)
    t = jnp.stack([_toeplitz_conv_weights(params["w1"], W),
                   _toeplitz_conv_weights(params["w2"], W)]).astype(jnp.bfloat16)
    # BN gamma/beta pre-tiled to the fused (w, c) lane layout.
    g1_l = jnp.tile(params["g1"], (1, W))
    b1_l = jnp.tile(params["b1"], (1, W))
    g2_l = jnp.tile(params["g2"], (1, W))
    b2_l = jnp.tile(params["b2"], (1, W))
    # 0/1 channel -> lane spread matrix (only used for the tiny attention gate).
    rt = jnp.tile(jnp.eye(C, dtype=jnp.float32), (1, W))    # (C, WC)

    out3 = pl.pallas_call(
        _ca_resblock_kernel,
        out_shape=jax.ShapeDtypeStruct((N, H, WC), jnp.float32),
        in_specs=[pl.BlockSpec(memory_space=pltpu.MemorySpace.VMEM),   # x
                  pl.BlockSpec(memory_space=pl.ANY)]                   # Toeplitz weights (HBM)
                 + [pl.BlockSpec(memory_space=pltpu.MemorySpace.VMEM)] * 9,
        out_specs=pl.BlockSpec(memory_space=pltpu.MemorySpace.VMEM),
        scratch_shapes=[pltpu.VMEM((N, H + 2, WC), jnp.bfloat16),      # padded conv input
                        pltpu.VMEM((2, 3 * WC, WC), jnp.bfloat16),     # DMA'd conv weights
                        pltpu.SemaphoreType.DMA((2,))],
    )(x3, t, g1_l, b1_l, g2_l, b2_l,
      params["wa1"], params["ba1"], params["wa2"], params["ba2"], rt)
    return out3.reshape(N, H, W, C)


# ----------------------------- pure-JAX reference -----------------------------
def _bn_train(x, g, b):
    mu = jnp.mean(x, axis=(0, 1, 2), keepdims=True)
    var = jnp.mean((x - mu) ** 2, axis=(0, 1, 2), keepdims=True)
    return (x - mu) * (g.reshape(1, 1, 1, -1) / jnp.sqrt(var + BN_EPS)) \
        + b.reshape(1, 1, 1, -1)


def _conv3x3_ref(x, w):
    return jax.lax.conv_general_dilated(
        x, w, window_strides=(1, 1), padding="SAME",
        dimension_numbers=("NHWC", "HWIO", "NHWC"))


def ca_resblock_ref(x, p):
    out = jax.nn.relu(_bn_train(_conv3x3_ref(x, p["w1"]), p["g1"], p["b1"]))
    out = _bn_train(_conv3x3_ref(out, p["w2"]), p["g2"], p["b2"])
    pooled = jnp.mean(out, axis=(1, 2))                              # (N, C)
    hdn = jax.nn.relu(pooled @ p["wa1"] + p["ba1"])
    att = jax.nn.sigmoid(hdn @ p["wa2"] + p["ba2"])
    out = out * att[:, None, None, :]
    return jax.nn.relu(out + x)


# --------------------------------- main ---------------------------------------
if __name__ == "__main__":
    N, H, W, C = 2, 16, 16, 16        # inplanes = planes = 16, planes // 8 = 2
    Cr = C // 8

    key = jax.random.PRNGKey(0)
    ks = jax.random.split(key, 10)

    x = jax.random.normal(ks[0], (N, H, W, C), jnp.float32)

    params = {
        "w1":  0.1 * jax.random.normal(ks[1], (3, 3, C, C), jnp.float32),
        "g1":  1.0 + 0.1 * jax.random.normal(ks[2], (1, C), jnp.float32),
        "b1":  0.1 * jax.random.normal(ks[3], (1, C), jnp.float32),
        "w2":  0.1 * jax.random.normal(ks[4], (3, 3, C, C), jnp.float32),
        "g2":  1.0 + 0.1 * jax.random.normal(ks[5], (1, C), jnp.float32),
        "b2":  0.1 * jax.random.normal(ks[6], (1, C), jnp.float32),
        "wa1": 0.2 * jax.random.normal(ks[7], (C, Cr), jnp.float32),
        "ba1": jnp.zeros((1, Cr), jnp.float32),
        "wa2": 0.2 * jax.random.normal(ks[8], (Cr, C), jnp.float32),
        "ba2": jnp.zeros((1, C), jnp.float32),
    }

    out = jax.block_until_ready(ca_resblock(x, params))
    ref = jax.block_until_ready(ca_resblock_ref(x, params))

    assert out.shape == (N, H, W, C)
    # bf16 MXU conv operands (f32 accumulation / statistics) -> loose tolerance.
    assert jnp.allclose(out, ref, atol=2e-2, rtol=2e-2), \
        f"max abs err {float(jnp.max(jnp.abs(out - ref)))}"

    print("KERNEL_OK")
</pallas_src>

<mosaic_0001>
module attributes {stable_mosaic.version = 11 : i64} {
  func.func @_ca_resblock_kernel(%arg0: memref<2x16x256xf32, #tpu.memory_space<vmem>>, %arg1: memref<2x768x256xbf16, #tpu.memory_space<any>>, %arg2: memref<1x256xf32, #tpu.memory_space<vmem>>, %arg3: memref<1x256xf32, #tpu.memory_space<vmem>>, %arg4: memref<1x256xf32, #tpu.memory_space<vmem>>, %arg5: memref<1x256xf32, #tpu.memory_space<vmem>>, %arg6: memref<16x2xf32, #tpu.memory_space<vmem>>, %arg7: memref<1x2xf32, #tpu.memory_space<vmem>>, %arg8: memref<2x16xf32, #tpu.memory_space<vmem>>, %arg9: memref<1x16xf32, #tpu.memory_space<vmem>>, %arg10: memref<16x256xf32, #tpu.memory_space<vmem>>, %arg11: memref<2x16x256xf32, #tpu.memory_space<vmem>>, %arg12: memref<2x18x256xbf16, #tpu.memory_space<vmem>>, %arg13: memref<2x768x256xbf16, #tpu.memory_space<vmem>>, %arg14: memref<2x!tpu.dma_semaphore, #tpu.memory_space<semaphore_mem>>) attributes {dimension_semantics = [], scalar_prefetch = 0 : i64, scratch_operands = 3 : i64, tpu.core_type = #tpu.core_type<tc>} {
    %c0_i32 = arith.constant 0 : i32
    %c0_i32_0 = arith.constant 0 : i32
    %c0_i32_1 = arith.constant 0 : i32
    %c0_i32_2 = arith.constant 0 : i32
    %c0_i32_3 = arith.constant 0 : i32
    %0 = tpu.memref_slice %arg1[%c0_i32, %c0_i32_2, %c0_i32_3] : memref<2x768x256xbf16, #tpu.memory_space<any>> -> memref<1x768x256xbf16, #tpu.memory_space<any>>
    %1 = tpu.memref_squeeze %0 : memref<1x768x256xbf16, #tpu.memory_space<any>> -> memref<768x256xbf16, #tpu.memory_space<any>>
    %c0_i32_4 = arith.constant 0 : i32
    %c0_i32_5 = arith.constant 0 : i32
    %2 = tpu.memref_slice %arg13[%c0_i32_0, %c0_i32_4, %c0_i32_5] : memref<2x768x256xbf16, #tpu.memory_space<vmem>> -> memref<1x768x256xbf16, #tpu.memory_space<vmem>>
    %3 = tpu.memref_squeeze %2 : memref<1x768x256xbf16, #tpu.memory_space<vmem>> -> memref<768x256xbf16, #tpu.memory_space<vmem>>
    %4 = tpu.memref_slice %arg14[%c0_i32_1] : memref<2x!tpu.dma_semaphore, #tpu.memory_space<semaphore_mem>> -> memref<1x!tpu.dma_semaphore, #tpu.memory_space<semaphore_mem>>
    %5 = tpu.memref_squeeze %4 : memref<1x!tpu.dma_semaphore, #tpu.memory_space<semaphore_mem>> -> memref<!tpu.dma_semaphore, #tpu.memory_space<semaphore_mem>>
    tpu.enqueue_dma source(%1 : memref<768x256xbf16, #tpu.memory_space<any>>) target(%3 : memref<768x256xbf16, #tpu.memory_space<vmem>>) target_semaphore(%5 : memref<!tpu.dma_semaphore, #tpu.memory_space<semaphore_mem>>)
    %cst = arith.constant 0.000000e+00 : bf16
    %6 = vector.broadcast %cst : bf16 to vector<2x1x256xbf16>
    %c0 = arith.constant 0 : index
    %c0_6 = arith.constant 0 : index
    %c0_7 = arith.constant 0 : index
    %7 = vector.load %arg12[%c0, %c0_6, %c0_7] : memref<2x18x256xbf16, #tpu.memory_space<vmem>>, vector<2x1x256xbf16>
    tpu.vector_store %arg12[%c0, %c0_6, %c0_7], %6 {strides = array<i32>} : memref<2x18x256xbf16, #tpu.memory_space<vmem>>, vector<2x1x256xbf16>,
    %cst_8 = arith.constant 0.000000e+00 : bf16
    %8 = vector.broadcast %cst_8 : bf16 to vector<2x1x256xbf16>
    %c0_9 = arith.constant 0 : index
    %c17 = arith.constant 17 : index
    %c0_10 = arith.constant 0 : index
    %9 = vector.load %arg12[%c0_9, %c17, %c0_10] : memref<2x18x256xbf16, #tpu.memory_space<vmem>>, vector<2x1x256xbf16>
    tpu.vector_store %arg12[%c0_9, %c17, %c0_10], %8 {strides = array<i32>} : memref<2x18x256xbf16, #tpu.memory_space<vmem>>, vector<2x1x256xbf16>,
    %c0_11 = arith.constant 0 : index
    %c0_12 = arith.constant 0 : index
    %c0_13 = arith.constant 0 : index
    %10 = vector.load %arg0[%c0_11, %c0_12, %c0_13] : memref<2x16x256xf32, #tpu.memory_space<vmem>>, vector<2x16x256xf32>
    %11 = arith.truncf %10 : vector<2x16x256xf32> to vector<2x16x256xbf16>
    %c0_14 = arith.constant 0 : index
    %c1 = arith.constant 1 : index
    %c0_15 = arith.constant 0 : index
    %12 = vector.load %arg12[%c0_14, %c1, %c0_15] : memref<2x18x256xbf16, #tpu.memory_space<vmem>>, vector<2x16x256xbf16>
    tpu.vector_store %arg12[%c0_14, %c1, %c0_15], %11 {strides = array<i32>} : memref<2x18x256xbf16, #tpu.memory_space<vmem>>, vector<2x16x256xbf16>,
    %c0_16 = arith.constant 0 : index
    %c0_17 = arith.constant 0 : index
    %c0_18 = arith.constant 0 : index
    %13 = vector.load %arg12[%c0_16, %c0_17, %c0_18] : memref<2x18x256xbf16, #tpu.memory_space<vmem>>, vector<2x16x256xbf16>
    %c0_19 = arith.constant 0 : index
    %c1_20 = arith.constant 1 : index
    %c0_21 = arith.constant 0 : index
    %14 = vector.load %arg12[%c0_19, %c1_20, %c0_21] : memref<2x18x256xbf16, #tpu.memory_space<vmem>>, vector<2x16x256xbf16>
    %c0_22 = arith.constant 0 : index
    %c2 = arith.constant 2 : index
    %c0_23 = arith.constant 0 : index
    %15 = vector.load %arg12[%c0_22, %c2, %c0_23] : memref<2x18x256xbf16, #tpu.memory_space<vmem>>, vector<2x16x256xbf16>
    %16 = tpu.concatenate %13, %14, %15 in 2 : vector<2x16x256xbf16>, vector<2x16x256xbf16>, vector<2x16x256xbf16> -> vector<2x16x768xbf16>
    %17 = vector.shape_cast %16 : vector<2x16x768xbf16> to vector<32x768xbf16>
    %c0_i32_24 = arith.constant 0 : i32
    %c0_i32_25 = arith.constant 0 : i32
    %c0_i32_26 = arith.constant 0 : i32
    %c0_i32_27 = arith.constant 0 : i32
    %c0_i32_28 = arith.constant 0 : i32
    %18 = tpu.memref_slice %arg1[%c0_i32_24, %c0_i32_27, %c0_i32_28] : memref<2x768x256xbf16, #tpu.memory_space<any>> -> memref<1x768x256xbf16, #tpu.memory_space<any>>
    %19 = tpu.memref_squeeze %18 : memref<1x768x256xbf16, #tpu.memory_space<any>> -> memref<768x256xbf16, #tpu.memory_space<any>>
    %c0_i32_29 = arith.constant 0 : i32
    %c0_i32_30 = arith.constant 0 : i32
    %20 = tpu.memref_slice %arg13[%c0_i32_25, %c0_i32_29, %c0_i32_30] : memref<2x768x256xbf16, #tpu.memory_space<vmem>> -> memref<1x768x256xbf16, #tpu.memory_space<vmem>>
    %21 = tpu.memref_squeeze %20 : memref<1x768x256xbf16, #tpu.memory_space<vmem>> -> memref<768x256xbf16, #tpu.memory_space<vmem>>
    %22 = tpu.memref_slice %arg14[%c0_i32_26] : memref<2x!tpu.dma_semaphore, #tpu.memory_space<semaphore_mem>> -> memref<1x!tpu.dma_semaphore, #tpu.memory_space<semaphore_mem>>
    %23 = tpu.memref_squeeze %22 : memref<1x!tpu.dma_semaphore, #tpu.memory_space<semaphore_mem>> -> memref<!tpu.dma_semaphore, #tpu.memory_space<semaphore_mem>>
    tpu.wait_dma2 semaphore(%23 : memref<!tpu.dma_semaphore, #tpu.memory_space<semaphore_mem>>) src(%19 : memref<768x256xbf16, #tpu.memory_space<any>>) dst(%21 : memref<768x256xbf16, #tpu.memory_space<vmem>>)
    %c1_i32 = arith.constant 1 : i32
    %c1_i32_31 = arith.constant 1 : i32
    %c1_i32_32 = arith.constant 1 : i32
    %c0_i32_33 = arith.constant 0 : i32
    %c0_i32_34 = arith.constant 0 : i32
    %24 = tpu.memref_slice %arg1[%c1_i32, %c0_i32_33, %c0_i32_34] : memref<2x768x256xbf16, #tpu.memory_space<any>> -> memref<1x768x256xbf16, #tpu.memory_space<any>>
    %25 = tpu.memref_squeeze %24 : memref<1x768x256xbf16, #tpu.memory_space<any>> -> memref<768x256xbf16, #tpu.memory_space<any>>
    %c0_i32_35 = arith.constant 0 : i32
    %c0_i32_36 = arith.constant 0 : i32
    %26 = tpu.memref_slice %arg13[%c1_i32_31, %c0_i32_35, %c0_i32_36] : memref<2x768x256xbf16, #tpu.memory_space<vmem>> -> memref<1x768x256xbf16, #tpu.memory_space<vmem>>
    %27 = tpu.memref_squeeze %26 : memref<1x768x256xbf16, #tpu.memory_space<vmem>> -> memref<768x256xbf16, #tpu.memory_space<vmem>>
    %28 = tpu.memref_slice %arg14[%c1_i32_32] : memref<2x!tpu.dma_semaphore, #tpu.memory_space<semaphore_mem>> -> memref<1x!tpu.dma_semaphore, #tpu.memory_space<semaphore_mem>>
    %29 = tpu.memref_squeeze %28 : memref<1x!tpu.dma_semaphore, #tpu.memory_space<semaphore_mem>> -> memref<!tpu.dma_semaphore, #tpu.memory_space<semaphore_mem>>
    tpu.enqueue_dma source(%25 : memref<768x256xbf16, #tpu.memory_space<any>>) target(%27 : memref<768x256xbf16, #tpu.memory_space<vmem>>) target_semaphore(%29 : memref<!tpu.dma_semaphore, #tpu.memory_space<semaphore_mem>>)
    %c0_37 = arith.constant 0 : index
    %c0_38 = arith.constant 0 : index
    %c0_39 = arith.constant 0 : index
    %30 = vector.load %arg13[%c0_37, %c0_38, %c0_39] : memref<2x768x256xbf16, #tpu.memory_space<vmem>>, vector<1x768x256xbf16>
    %31 = vector.shape_cast %30 : vector<1x768x256xbf16> to vector<768x256xbf16>
    %cst_40 = arith.constant dense<0.000000e+00> : vector<32x256xf32>
    %32 = tpu.matmul %17, %31, %cst_40 {dimension_numbers = #tpu.dot_dimension_numbers<[1], [0], [0], [1], [0, 0, 1, 1], [], []>} : vector<32x768xbf16>, vector<768x256xbf16>, vector<32x256xf32> -> vector<32x256xf32>
    %cst_41 = arith.constant dense<0.000000e+00> : vector<256xf32>
    %33 = vector.multi_reduction <add>, %32, %cst_41 [0] : vector<32x256xf32> to vector<256xf32>
    %34 = vector.shape_cast %33 : vector<256xf32> to vector<1x256xf32>
    %35 = arith.mulf %32, %32 : vector<32x256xf32>
    %cst_42 = arith.constant dense<0.000000e+00> : vector<256xf32>
    %36 = vector.multi_reduction <add>, %35, %cst_42 [0] : vector<32x256xf32> to vector<256xf32>
    %37 = vector.shape_cast %36 : vector<256xf32> to vector<1x256xf32>
    %38 = tpu.concatenate %34, %37 in 0 : vector<1x256xf32>, vector<1x256xf32> -> vector<2x256xf32>
    %c16_i32 = arith.constant 16 : i32
    %39 = tpu.dynamic_rotate %38 by %c16_i32 dim 1 : vector<2x256xf32>, i32 -> vector<2x256xf32>
    %40 = arith.addf %38, %39 : vector<2x256xf32>
    %c32_i32 = arith.constant 32 : i32
    %41 = tpu.dynamic_rotate %40 by %c32_i32 dim 1 : vector<2x256xf32>, i32 -> vector<2x256xf32>
    %42 = arith.addf %40, %41 : vector<2x256xf32>
    %c64_i32 = arith.constant 64 : i32
    %43 = tpu.dynamic_rotate %42 by %c64_i32 dim 1 : vector<2x256xf32>, i32 -> vector<2x256xf32>
    %44 = arith.addf %42, %43 : vector<2x256xf32>
    %c128_i32 = arith.constant 128 : i32
    %45 = tpu.dynamic_rotate %44 by %c128_i32 dim 1 : vector<2x256xf32>, i32 -> vector<2x256xf32>
    %46 = arith.addf %44, %45 : vector<2x256xf32>
    %47 = vector.extract_strided_slice %46 {offsets = [0, 0], sizes = [1, 256], strides = [1, 1]} : vector<2x256xf32> to vector<1x256xf32>
    %cst_43 = arith.constant 0.001953125 : f32
    %48 = vector.broadcast %cst_43 : f32 to vector<1x256xf32>
    %49 = arith.mulf %47, %48 : vector<1x256xf32>
    %50 = vector.extract_strided_slice %46 {offsets = [1, 0], sizes = [1, 256], strides = [1, 1]} : vector<2x256xf32> to vector<1x256xf32>
    %cst_44 = arith.constant 0.001953125 : f32
    %51 = vector.broadcast %cst_44 : f32 to vector<1x256xf32>
    %52 = arith.mulf %50, %51 : vector<1x256xf32>
    %53 = arith.mulf %49, %49 : vector<1x256xf32>
    %54 = arith.subf %52, %53 : vector<1x256xf32>
    %c0_45 = arith.constant 0 : index
    %c0_46 = arith.constant 0 : index
    %55 = vector.load %arg2[%c0_45, %c0_46] : memref<1x256xf32, #tpu.memory_space<vmem>>, vector<1x256xf32>
    %cst_47 = arith.constant 9.99999974E-6 : f32
    %56 = vector.broadcast %cst_47 : f32 to vector<1x256xf32>
    %57 = arith.addf %54, %56 : vector<1x256xf32>
    %58 = math.rsqrt %57 : vector<1x256xf32>
    %59 = arith.mulf %55, %58 : vector<1x256xf32>
    %c0_48 = arith.constant 0 : index
    %c0_49 = arith.constant 0 : index
    %60 = vector.load %arg3[%c0_48, %c0_49] : memref<1x256xf32, #tpu.memory_space<vmem>>, vector<1x256xf32>
    %61 = arith.mulf %49, %59 : vector<1x256xf32>
    %62 = arith.subf %60, %61 : vector<1x256xf32>
    %63 = vector.broadcast %59 : vector<1x256xf32> to vector<32x256xf32>
    %64 = arith.mulf %32, %63 : vector<32x256xf32>
    %65 = vector.broadcast %62 : vector<1x256xf32> to vector<32x256xf32>
    %66 = arith.addf %64, %65 : vector<32x256xf32>
    %cst_50 = arith.constant 0.000000e+00 : f32
    %67 = vector.broadcast %cst_50 : f32 to vector<32x256xf32>
    %68 = arith.maximumf %66, %67 : vector<32x256xf32>
    %69 = vector.shape_cast %68 : vector<32x256xf32> to vector<2x16x256xf32>
    %70 = arith.truncf %69 : vector<2x16x256xf32> to vector<2x16x256xbf16>
    %c0_51 = arith.constant 0 : index
    %c1_52 = arith.constant 1 : index
    %c0_53 = arith.constant 0 : index
    %71 = vector.load %arg12[%c0_51, %c1_52, %c0_53] : memref<2x18x256xbf16, #tpu.memory_space<vmem>>, vector<2x16x256xbf16>
    tpu.vector_store %arg12[%c0_51, %c1_52, %c0_53], %70 {strides = array<i32>} : memref<2x18x256xbf16, #tpu.memory_space<vmem>>, vector<2x16x256xbf16>,
    %c0_54 = arith.constant 0 : index
    %c0_55 = arith.constant 0 : index
    %c0_56 = arith.constant 0 : index
    %72 = vector.load %arg12[%c0_54, %c0_55, %c0_56] : memref<2x18x256xbf16, #tpu.memory_space<vmem>>, vector<2x16x256xbf16>
    %c0_57 = arith.constant 0 : index
    %c1_58 = arith.constant 1 : index
    %c0_59 = arith.constant 0 : index
    %73 = vector.load %arg12[%c0_57, %c1_58, %c0_59] : memref<2x18x256xbf16, #tpu.memory_space<vmem>>, vector<2x16x256xbf16>
    %c0_60 = arith.constant 0 : index
    %c2_61 = arith.constant 2 : index
    %c0_62 = arith.constant 0 : index
    %74 = vector.load %arg12[%c0_60, %c2_61, %c0_62] : memref<2x18x256xbf16, #tpu.memory_space<vmem>>, vector<2x16x256xbf16>
    %75 = tpu.concatenate %72, %73, %74 in 2 : vector<2x16x256xbf16>, vector<2x16x256xbf16>, vector<2x16x256xbf16> -> vector<2x16x768xbf16>
    %76 = vector.shape_cast %75 : vector<2x16x768xbf16> to vector<32x768xbf16>
    %c1_i32_63 = arith.constant 1 : i32
    %c1_i32_64 = arith.constant 1 : i32
    %c1_i32_65 = arith.constant 1 : i32
    %c0_i32_66 = arith.constant 0 : i32
    %c0_i32_67 = arith.constant 0 : i32
    %77 = tpu.memref_slice %arg1[%c1_i32_63, %c0_i32_66, %c0_i32_67] : memref<2x768x256xbf16, #tpu.memory_space<any>> -> memref<1x768x256xbf16, #tpu.memory_space<any>>
    %78 = tpu.memref_squeeze %77 : memref<1x768x256xbf16, #tpu.memory_space<any>> -> memref<768x256xbf16, #tpu.memory_space<any>>
    %c0_i32_68 = arith.constant 0 : i32
    %c0_i32_69 = arith.constant 0 : i32
    %79 = tpu.memref_slice %arg13[%c1_i32_64, %c0_i32_68, %c0_i32_69] : memref<2x768x256xbf16, #tpu.memory_space<vmem>> -> memref<1x768x256xbf16, #tpu.memory_space<vmem>>
    %80 = tpu.memref_squeeze %79 : memref<1x768x256xbf16, #tpu.memory_space<vmem>> -> memref<768x256xbf16, #tpu.memory_space<vmem>>
    %81 = tpu.memref_slice %arg14[%c1_i32_65] : memref<2x!tpu.dma_semaphore, #tpu.memory_space<semaphore_mem>> -> memref<1x!tpu.dma_semaphore, #tpu.memory_space<semaphore_mem>>
    %82 = tpu.memref_squeeze %81 : memref<1x!tpu.dma_semaphore, #tpu.memory_space<semaphore_mem>> -> memref<!tpu.dma_semaphore, #tpu.memory_space<semaphore_mem>>
    tpu.wait_dma2 semaphore(%82 : memref<!tpu.dma_semaphore, #tpu.memory_space<semaphore_mem>>) src(%78 : memref<768x256xbf16, #tpu.memory_space<any>>) dst(%80 : memref<768x256xbf16, #tpu.memory_space<vmem>>)
    %c1_70 = arith.constant 1 : index
    %c0_71 = arith.constant 0 : index
    %c0_72 = arith.constant 0 : index
    %83 = vector.load %arg13[%c1_70, %c0_71, %c0_72] : memref<2x768x256xbf16, #tpu.memory_space<vmem>>, vector<1x768x256xbf16>
    %84 = vector.shape_cast %83 : vector<1x768x256xbf16> to vector<768x256xbf16>
    %cst_73 = arith.constant dense<0.000000e+00> : vector<32x256xf32>
    %85 = tpu.matmul %76, %84, %cst_73 {dimension_numbers = #tpu.dot_dimension_numbers<[1], [0], [0], [1], [0, 0, 1, 1], [], []>} : vector<32x768xbf16>, vector<768x256xbf16>, vector<32x256xf32> -> vector<32x256xf32>
    %86 = vector.shape_cast %85 : vector<32x256xf32> to vector<2x16x256xf32>
    %cst_74 = arith.constant dense<0.000000e+00> : vector<256xf32>
    %87 = vector.multi_reduction <add>, %85, %cst_74 [0] : vector<32x256xf32> to vector<256xf32>
    %88 = vector.shape_cast %87 : vector<256xf32> to vector<1x256xf32>
    %89 = arith.mulf %85, %85 : vector<32x256xf32>
    %cst_75 = arith.constant dense<0.000000e+00> : vector<256xf32>
    %90 = vector.multi_reduction <add>, %89, %cst_75 [0] : vector<32x256xf32> to vector<256xf32>
    %91 = vector.shape_cast %90 : vector<256xf32> to vector<1x256xf32>
    %cst_76 = arith.constant dense<0.000000e+00> : vector<2x256xf32>
    %92 = vector.multi_reduction <add>, %86, %cst_76 [1] : vector<2x16x256xf32> to vector<2x256xf32>
    %93 = tpu.concatenate %88, %91, %92 in 0 : vector<1x256xf32>, vector<1x256xf32>, vector<2x256xf32> -> vector<4x256xf32>
    %c16_i32_77 = arith.constant 16 : i32
    %94 = tpu.dynamic_rotate %93 by %c16_i32_77 dim 1 : vector<4x256xf32>, i32 -> vector<4x256xf32>
    %95 = arith.addf %93, %94 : vector<4x256xf32>
    %c32_i32_78 = arith.constant 32 : i32
    %96 = tpu.dynamic_rotate %95 by %c32_i32_78 dim 1 : vector<4x256xf32>, i32 -> vector<4x256xf32>
    %97 = arith.addf %95, %96 : vector<4x256xf32>
    %c64_i32_79 = arith.constant 64 : i32
    %98 = tpu.dynamic_rotate %97 by %c64_i32_79 dim 1 : vector<4x256xf32>, i32 -> vector<4x256xf32>
    %99 = arith.addf %97, %98 : vector<4x256xf32>
    %c128_i32_80 = arith.constant 128 : i32
    %100 = tpu.dynamic_rotate %99 by %c128_i32_80 dim 1 : vector<4x256xf32>, i32 -> vector<4x256xf32>
    %101 = arith.addf %99, %100 : vector<4x256xf32>
    %102 = vector.extract_strided_slice %101 {offsets = [0, 0], sizes = [1, 256], strides = [1, 1]} : vector<4x256xf32> to vector<1x256xf32>
    %cst_81 = arith.constant 0.001953125 : f32
    %103 = vector.broadcast %cst_81 : f32 to vector<1x256xf32>
    %104 = arith.mulf %102, %103 : vector<1x256xf32>
    %105 = vector.extract_strided_slice %101 {offsets = [1, 0], sizes = [1, 256], strides = [1, 1]} : vector<4x256xf32> to vector<1x256xf32>
    %cst_82 = arith.constant 0.001953125 : f32
    %106 = vector.broadcast %cst_82 : f32 to vector<1x256xf32>
    %107 = arith.mulf %105, %106 : vector<1x256xf32>
    %108 = arith.mulf %104, %104 : vector<1x256xf32>
    %109 = arith.subf %107, %108 : vector<1x256xf32>
    %c0_83 = arith.constant 0 : index
    %c0_84 = arith.constant 0 : index
    %110 = vector.load %arg4[%c0_83, %c0_84] : memref<1x256xf32, #tpu.memory_space<vmem>>, vector<1x256xf32>
    %cst_85 = arith.constant 9.99999974E-6 : f32
    %111 = vector.broadcast %cst_85 : f32 to vector<1x256xf32>
    %112 = arith.addf %109, %111 : vector<1x256xf32>
    %113 = math.rsqrt %112 : vector<1x256xf32>
    %114 = arith.mulf %110, %113 : vector<1x256xf32>
    %c0_86 = arith.constant 0 : index
    %c0_87 = arith.constant 0 : index
    %115 = vector.load %arg5[%c0_86, %c0_87] : memref<1x256xf32, #tpu.memory_space<vmem>>, vector<1x256xf32>
    %116 = arith.mulf %104, %114 : vector<1x256xf32>
    %117 = arith.subf %115, %116 : vector<1x256xf32>
    %118 = vector.extract_strided_slice %101 {offsets = [2, 0], sizes = [2, 16], strides = [1, 1]} : vector<4x256xf32> to vector<2x16xf32>
    %cst_88 = arith.constant 3.906250e-03 : f32
    %119 = vector.broadcast %cst_88 : f32 to vector<2x16xf32>
    %120 = arith.mulf %118, %119 : vector<2x16xf32>
    %121 = vector.extract_strided_slice %114 {offsets = [0, 0], sizes = [1, 16], strides = [1, 1]} : vector<1x256xf32> to vector<1x16xf32>
    %122 = vector.broadcast %121 : vector<1x16xf32> to vector<2x16xf32>
    %123 = arith.mulf %120, %122 : vector<2x16xf32>
    %124 = vector.extract_strided_slice %117 {offsets = [0, 0], sizes = [1, 16], strides = [1, 1]} : vector<1x256xf32> to vector<1x16xf32>
    %125 = vector.broadcast %124 : vector<1x16xf32> to vector<2x16xf32>
    %126 = arith.addf %123, %125 : vector<2x16xf32>
    %c0_89 = arith.constant 0 : index
    %c0_90 = arith.constant 0 : index
    %127 = vector.load %arg6[%c0_89, %c0_90] : memref<16x2xf32, #tpu.memory_space<vmem>>, vector<16x2xf32>
    %cst_91 = arith.constant dense<0.000000e+00> : vector<2x2xf32>
    %128 = tpu.matmul %126, %127, %cst_91 {dimension_numbers = #tpu.dot_dimension_numbers<[1], [0], [0], [1], [0, 0, 1, 1], [], []>} : vector<2x16xf32>, vector<16x2xf32>, vector<2x2xf32> -> vector<2x2xf32>
    %c0_92 = arith.constant 0 : index
    %c0_93 = arith.constant 0 : index
    %129 = vector.load %arg7[%c0_92, %c0_93] : memref<1x2xf32, #tpu.memory_space<vmem>>, vector<1x2xf32>
    %130 = vector.broadcast %129 : vector<1x2xf32> to vector<2x2xf32>
    %131 = arith.addf %128, %130 : vector<2x2xf32>
    %cst_94 = arith.constant 0.000000e+00 : f32
    %132 = vector.broadcast %cst_94 : f32 to vector<2x2xf32>
    %133 = arith.maximumf %131, %132 : vector<2x2xf32>
    %c0_95 = arith.constant 0 : index
    %c0_96 = arith.constant 0 : index
    %134 = vector.load %arg8[%c0_95, %c0_96] : memref<2x16xf32, #tpu.memory_space<vmem>>, vector<2x16xf32>
    %cst_97 = arith.constant dense<0.000000e+00> : vector<2x16xf32>
    %135 = tpu.matmul %133, %134, %cst_97 {dimension_numbers = #tpu.dot_dimension_numbers<[1], [0], [0], [1], [0, 0, 1, 1], [], []>} : vector<2x2xf32>, vector<2x16xf32>, vector<2x16xf32> -> vector<2x16xf32>
    %c0_98 = arith.constant 0 : index
    %c0_99 = arith.constant 0 : index
    %136 = vector.load %arg9[%c0_98, %c0_99] : memref<1x16xf32, #tpu.memory_space<vmem>>, vector<1x16xf32>
    %137 = vector.broadcast %136 : vector<1x16xf32> to vector<2x16xf32>
    %138 = arith.addf %135, %137 : vector<2x16xf32>
    %cst_100 = arith.constant 0.000000e+00 : f32
    %139 = vector.broadcast %cst_100 : f32 to vector<2x16xf32>
    %140 = arith.subf %139, %138 : vector<2x16xf32>
    %141 = math.exp %140 : vector<2x16xf32>
    %cst_101 = arith.constant 1.000000e+00 : f32
    %142 = vector.broadcast %cst_101 : f32 to vector<2x16xf32>
    %143 = arith.addf %142, %141 : vector<2x16xf32>
    %cst_102 = arith.constant 1.000000e+00 : f32
    %144 = vector.broadcast %cst_102 : f32 to vector<2x16xf32>
    %145 = arith.divf %144, %143 : vector<2x16xf32>
    %c0_103 = arith.constant 0 : index
    %c0_104 = arith.constant 0 : index
    %146 = vector.load %arg10[%c0_103, %c0_104] : memref<16x256xf32, #tpu.memory_space<vmem>>, vector<16x256xf32>
    %cst_105 = arith.constant dense<0.000000e+00> : vector<2x256xf32>
    %147 = tpu.matmul %145, %146, %cst_105 {dimension_numbers = #tpu.dot_dimension_numbers<[1], [0], [0], [1], [0, 0, 1, 1], [], []>} : vector<2x16xf32>, vector<16x256xf32>, vector<2x256xf32> -> vector<2x256xf32>
    %148 = vector.broadcast %114 : vector<1x256xf32> to vector<2x256xf32>
    %149 = arith.mulf %148, %147 : vector<2x256xf32>
    %150 = vector.broadcast %117 : vector<1x256xf32> to vector<2x256xf32>
    %151 = arith.mulf %150, %147 : vector<2x256xf32>
    %152 = vector.shape_cast %149 : vector<2x256xf32> to vector<2x1x256xf32>
    %153 = vector.broadcast %152 : vector<2x1x256xf32> to vector<2x16x256xf32>
    %154 = arith.mulf %86, %153 : vector<2x16x256xf32>
    %155 = vector.shape_cast %151 : vector<2x256xf32> to vector<2x1x256xf32>
    %156 = vector.broadcast %155 : vector<2x1x256xf32> to vector<2x16x256xf32>
    %157 = arith.addf %154, %156 : vector<2x16x256xf32>
    %c0_106 = arith.constant 0 : index
    %c0_107 = arith.constant 0 : index
    %c0_108 = arith.constant 0 : index
    %158 = vector.load %arg0[%c0_106, %c0_107, %c0_108] : memref<2x16x256xf32, #tpu.memory_space<vmem>>, vector<2x16x256xf32>
    %159 = arith.addf %157, %158 : vector<2x16x256xf32>
    %cst_109 = arith.constant 0.000000e+00 : f32
    %160 = vector.broadcast %cst_109 : f32 to vector<2x16x256xf32>
    %161 = arith.maximumf %159, %160 : vector<2x16x256xf32>
    %c0_110 = arith.constant 0 : index
    %c0_111 = arith.constant 0 : index
    %c0_112 = arith.constant 0 : index
    %162 = vector.load %arg11[%c0_110, %c0_111, %c0_112] : memref<2x16x256xf32, #tpu.memory_space<vmem>>, vector<2x16x256xf32>
    tpu.vector_store %arg11[%c0_110, %c0_111, %c0_112], %161 {strides = array<i32>} : memref<2x16x256xf32, #tpu.memory_space<vmem>>, vector<2x16x256xf32>,
    return
  }
}

</mosaic_0001>

<bundles_post_ra>
// kernel: tile.49
= control target key start
LH: loop header
LB: loop body
LE: loop exit
PB: predicated region body
PF: predicated region fallthrough
CT: control target
= control target key end

     0   :  { %s60_s6 = smov 3  ;;  %s63_s7 = smov 12  ;;  %vm65_vm0 = vcmask 1043458   ;;  %vm70_vm1 = vcmask 1045508   ;;  %vm75_vm2 = vcmask 1047558   ;;  %vm4_vm3 = vcmask 1047556   ;;  %s1502_s0 = inlined_call_operand.vmem [shape: f32[16,16,16], index: 0, kind: input, shape index: {}]   ;;  %s1503_s1 = inlined_call_operand.vmem [shape: f32[16,256], index: 1, kind: output, shape index: {}]  }
   0x1   :  { %v717_v0 = vld [vmem:[%s1502_s0 + $0x7] ss:$16 sm:%s60_s6]   ;;  %s68_s12 = smov 48  ;;  %s73_s13 = smov 192  ;;  %vm6_vm4 = vcmask 130048   ;;  %vm79_vm5 = vcmask 1048448  }
   0x2   :  { %v718_v1 = vld [vmem:[%s1502_s0 + $0x7] ss:$16 sm:%s63_s7]   ;;  %s105_s18 = smov 3  ;;  %s108_s21 = smov 12  ;;  %vm170_vm6 = vcmask 917248   ;;  %vm261_vm7 = vcmask 786048  }
   0x3   :  { %v66_v2 = vsel %vm65_vm0, %v718_v1, %v717_v0  ;;  %v719_v3 = vld [vmem:[%s1502_s0 + $0x7] ss:$16 sm:%s68_s12]   ;;  %s113_s22 = smov 48  ;;  %s118_s27 = smov 192  ;;  %vm352_vm8 = vcmask 654848   ;;  %vm443_vm9 = vcmask 523648  }
   0x4   :  { %v720_v4 = vld [vmem:[%s1502_s0 + $0x7] ss:$16 sm:%s73_s13]   ;;  %v71_v5 = vsel %vm70_vm1, %v719_v3, %v66_v2  ;;  %s82_s28 = smov 3  ;;  %s857_s29 = smov 112   ;;  %vm534_vm10 = vcmask 392448   ;;  %vm625_vm11 = vcmask 261248  }
   0x5   :  { %v726_v6 = vld [vmem:[%s1502_s0 + $0x87] ss:$16 sm:%s105_s18]   ;;  %v76_v7 = vsel %vm75_vm2, %v720_v4, %v71_v5  ;;  %s85_s3 = smov 12  ;;  %s90_s4 = smov 48  ;;  %v721_v13 = vld [vmem:[%s1502_s0 + $0xf] ss:$16 sm:%s82_s28]  }
   0x6   :  { %v727_v8 = vld [vmem:[%s1502_s0 + $0x87] ss:$16 sm:%s108_s21]   ;;  %77 = vrot.lane.b32.xlu0 %v76_v7, %s857_s29  ;;  %s95_s9 = smov 192  ;;  %s128_s10 = smov 3 }
   0x7   :  { %v728_v9 = vld [vmem:[%s1502_s0 + $0x87] ss:$16 sm:%s113_s22]   ;;  %v111_v10 = vsel %vm65_vm0, %v727_v8, %v726_v6  ;;  %v722_v14 = vld [vmem:[%s1502_s0 + $0xf] ss:$16 sm:%s85_s3]   ;;  %s131_s15 = smov 12  ;;  %s136_s16 = smov 48 }
   0x8   :  { %v729_v11 = vld [vmem:[%s1502_s0 + $0x87] ss:$16 sm:%s118_s27]   ;;  %v116_v12 = vsel %vm70_vm1, %v728_v9, %v111_v10  ;;  %v88_v16 = vsel %vm65_vm0, %v722_v14, %v721_v13  ;;  %v723_v17 = vld [vmem:[%s1502_s0 + $0xf] ss:$16 sm:%s90_s4]   ;;  %s141_s19 = smov 192  ;;  %s196_s24 = smov 3 }
   0x9   :  { %v121_v15 = vsel %vm75_vm2, %v729_v11, %v116_v12  ;;  %v724_v18 = vld [vmem:[%s1502_s0 + $0xf] ss:$16 sm:%s95_s9]   ;;  %v93_v19 = vsel %vm70_vm1, %v723_v17, %v88_v16  ;;  %s199_s25 = smov 12  ;;  %v745_v26 = vld [vmem:[%s1502_s0 + $0x86] ss:$16 sm:%s196_s24]   ;;  %s204_s2 = smov 48 }
   0xa   :  { %122 = vrot.lane.b32.xlu1 %v121_v15, %s857_s29  ;;  %v731_v20 = vld [vmem:[%s1502_s0 + $0x8f] ss:$16 sm:%s128_s10]   ;;  %v98_v23 = vsel %vm75_vm2, %v724_v18, %v93_v19  ;;  %s219_s5 = smov 3  ;;  %s222_s6 = smov 12 }
   0xb   :  { %v732_v21 = vld [vmem:[%s1502_s0 + $0x8f] ss:$16 sm:%s131_s15]   ;;  %v746_v28 = vld [vmem:[%s1502_s0 + $0x86] ss:$16 sm:%s199_s25]   ;;  %s209_s9 = smov 192  ;;  %s227_s12 = smov 48 }
   0xc   :  { %v733_v22 = vld [vmem:[%s1502_s0 + $0x8f] ss:$16 sm:%s136_s16]   ;;  %v134_v24 = vsel %vm65_vm0, %v732_v21, %v731_v20  ;;  %v202_v29 = vsel %vm65_vm0, %v746_v28, %v745_v26  ;;  %v747_v30 = vld [vmem:[%s1502_s0 + $0x86] ss:$16 sm:%s204_s2]   ;;  %s232_s15 = smov 192  ;;  %s264_s16 = smov 3 }
   0xd   :  { %v734_v25 = vld [vmem:[%s1502_s0 + $0x8f] ss:$16 sm:%s141_s19]   ;;  %v139_v27 = vsel %vm70_vm1, %v733_v22, %v134_v24  ;;  %v750_v31 = vld [vmem:[%s1502_s0 + $0x8e] ss:$16 sm:%s219_s5]   ;;  %s267_s17 = smov 12  ;;  %v207_v34 = vsel %vm70_vm1, %v747_v30, %v202_v29  ;;  %s272_s22 = smov 48 }
   0xe   :  { %99 = vrot.lane.b32.xlu0 %v98_v23, %s857_s29  ;;  %v144_v32 = vsel %vm75_vm2, %v734_v25, %v139_v27  ;;  %v751_v33 = vld [vmem:[%s1502_s0 + $0x8e] ss:$16 sm:%s222_s6]   ;;  %s151_s23 = smov 3  ;;  %s154_s27 = smov 12 }
   0xf   :  { %v748_v35 = vld [vmem:[%s1502_s0 + $0x86] ss:$16 sm:%s209_s9]   ;;  %v225_v36 = vsel %vm65_vm0, %v751_v33, %v750_v31  ;;  %v752_v37 = vld [vmem:[%s1502_s0 + $0x8e] ss:$16 sm:%s227_s12]   ;;  %s159_s28 = smov 48  ;;  %s164_s5 = smov 192 }
  0x10   :  { %v753_v38 = vld [vmem:[%s1502_s0 + $0x8e] ss:$16 sm:%s232_s15]   ;;  %v759_v39 = vld [vmem:[%s1502_s0 + $0xd] ss:$16 sm:%s264_s16]   ;;  %s287_s6 = smov 3  ;;  %v212_v42 = vsel %vm75_vm2, %v748_v35, %v207_v34  ;;  %v230_v43 = vsel %vm70_vm1, %v752_v37, %v225_v36  ;;  %s290_s11 = smov 12 }
  0x11   :  { %v760_v40 = vld [vmem:[%s1502_s0 + $0xd] ss:$16 sm:%s267_s17]   ;;  %v736_v41 = vld [vmem:[%s1502_s0 + $0x6] ss:$16 sm:%s151_s23]   ;;  %s277_s14 = smov 192  ;;  %s295_s21 = smov 48  ;;  %v235_v53 = vsel %vm75_vm2, %v753_v38, %v230_v43 }
  0x12   :  { %145 = vrot.lane.b32.xlu1 %v144_v32, %s857_s29  ;;  %v737_v44 = vld [vmem:[%s1502_s0 + $0x6] ss:$16 sm:%s154_s27]   ;;  %v270_v49 = vsel %vm65_vm0, %v760_v40, %v759_v39  ;;  %s858_s23 = smov 96   ;;  %s300_s29 = smov 192 }
  0x13   :  { %v738_v45 = vld [vmem:[%s1502_s0 + $0x6] ss:$16 sm:%s159_s28]   ;;  %v761_v46 = vld [vmem:[%s1502_s0 + $0xd] ss:$16 sm:%s272_s22]   ;;  %v157_v47 = vsel %vm65_vm0, %v737_v44, %v736_v41  ;;  %s333_s22 = smov 3  ;;  %s336_s24 = smov 12 }
  0x14   :  { %v739_v48 = vld [vmem:[%s1502_s0 + $0x6] ss:$16 sm:%s164_s5]   ;;  %v162_v50 = vsel %vm70_vm1, %v738_v45, %v157_v47  ;;  %v764_v51 = vld [vmem:[%s1502_s0 + $0x85] ss:$16 sm:%s287_s6]   ;;  %s173_s27 = smov 3  ;;  %s176_s28 = smov 12  ;;  %v275_v56 = vsel %vm70_vm1, %v761_v46, %v270_v49 }
  0x15   :  { %v765_v52 = vld [vmem:[%s1502_s0 + $0x85] ss:$16 sm:%s290_s11]   ;;  %v167_v54 = vsel %vm75_vm2, %v739_v48, %v162_v50  ;;  %v762_v55 = vld [vmem:[%s1502_s0 + $0xd] ss:$16 sm:%s277_s14]   ;;  %s181_s5 = smov 48  ;;  %s186_s6 = smov 192 }
  0x16   :  { %213 = vrot.lane.b32.xlu0 %v212_v42, %s858_s23  ;;  %168 = vrot.lane.b32.xlu2 %v167_v54, %s858_s23  ;;  %v293_v57 = vsel %vm65_vm0, %v765_v52, %v764_v51  ;;  %v766_v58 = vld [vmem:[%s1502_s0 + $0x85] ss:$16 sm:%s295_s21]   ;;  %s341_s11 = smov 48  ;;  %s355_s16 = smov 3  ;;  %v280_v0 = vsel %vm75_vm2, %v762_v55, %v275_v56 }
  0x17   :  { %v774_v59 = vld [vmem:[%s1502_s0 + $0x4] ss:$16 sm:%s333_s22]   ;;  %v767_v60 = vld [vmem:[%s1502_s0 + $0x85] ss:$16 sm:%s300_s29]   ;;  %s358_s17 = smov 12  ;;  %v298_v1 = vsel %vm70_vm1, %v766_v58, %v293_v57  ;;  %s346_s18 = smov 192 }
  0x18   :  { %v775_v61 = vld [vmem:[%s1502_s0 + $0x4] ss:$16 sm:%s336_s24]   ;;  %v740_v62 = vld [vmem:[%s1502_s0 + $0xe] ss:$16 sm:%s173_s27]   ;;  %s363_s25 = smov 48  ;;  %s401_s2 = smov 3  ;;  %v303_v11 = vsel %vm75_vm2, %v767_v60, %v298_v1 }
  0x19   :  { %v741_v63 = vld [vmem:[%s1502_s0 + $0xe] ss:$16 sm:%s176_s28]   ;;  %v776_v5 = vld [vmem:[%s1502_s0 + $0x4] ss:$16 sm:%s341_s11]   ;;  %v339_v7 = vsel %vm65_vm0, %v775_v61, %v774_v59  ;;  %s404_s3 = smov 12  ;;  %s859_s4 = smov 80  }
  0x1a   :  { %236 = vrot.lane.b32.xlu1 %v235_v53, %s858_s23  ;;  %v179_v2 = vsel %vm65_vm0, %v741_v63, %v740_v62  ;;  %v742_v3 = vld [vmem:[%s1502_s0 + $0xe] ss:$16 sm:%s181_s5]   ;;  %s242_s7 = smov 3  ;;  %s245_s9 = smov 12  ;;  %v344_v14 = vsel %vm70_vm1, %v776_v5, %v339_v7 }
  0x1b   :  { %v743_v4 = vld [vmem:[%s1502_s0 + $0xe] ss:$16 sm:%s186_s6]   ;;  %v184_v6 = vsel %vm70_vm1, %v742_v3, %v179_v2  ;;  %v778_v9 = vld [vmem:[%s1502_s0 + $0xc] ss:$16 sm:%s355_s16]   ;;  %s250_s10 = smov 48  ;;  %s368_s11 = smov 192 }
  0x1c   :  { %v189_v8 = vsel %vm75_vm2, %v743_v4, %v184_v6  ;;  %v779_v10 = vld [vmem:[%s1502_s0 + $0xc] ss:$16 sm:%s358_s17]   ;;  %v777_v12 = vld [vmem:[%s1502_s0 + $0x4] ss:$16 sm:%s346_s18]   ;;  %s255_s16 = smov 192  ;;  %s409_s17 = smov 48 }
  0x1d   :  { %v780_v13 = vld [vmem:[%s1502_s0 + $0xc] ss:$16 sm:%s363_s25]   ;;  %v361_v15 = vsel %vm65_vm0, %v779_v10, %v778_v9  ;;  %v755_v18 = vld [vmem:[%s1502_s0 + $0x5] ss:$16 sm:%s242_s7]   ;;  %s424_s24 = smov 3  ;;  %s427_s25 = smov 12  ;;  %v349_v21 = vsel %vm75_vm2, %v777_v12, %v344_v14 }
  0x1e   :  { %281 = vrot.lane.b32.xlu0 %v280_v0, %s859_s4  ;;  %190 = vrot.lane.b32.xlu2 %v189_v8, %s858_s23  ;;  %v788_v16 = vld [vmem:[%s1502_s0 + $0x8c] ss:$16 sm:%s401_s2]   ;;  %v366_v22 = vsel %vm70_vm1, %v780_v13, %v361_v15  ;;  %s414_s28 = smov 192  ;;  %s432_s6 = smov 48 }
  0x1f   :  { %v789_v17 = vld [vmem:[%s1502_s0 + $0x8c] ss:$16 sm:%s404_s3]   ;;  %v756_v19 = vld [vmem:[%s1502_s0 + $0x5] ss:$16 sm:%s245_s9]   ;;  %s469_s7 = smov 3  ;;  %s310_s12 = smov 3 }
  0x20   :  { %v757_v20 = vld [vmem:[%s1502_s0 + $0x5] ss:$16 sm:%s250_s10]   ;;  %v781_v23 = vld [vmem:[%s1502_s0 + $0xc] ss:$16 sm:%s368_s11]   ;;  %v248_v24 = vsel %vm65_vm0, %v756_v19, %v755_v18  ;;  %v407_v28 = vsel %vm65_vm0, %v789_v17, %v788_v16  ;;  %s472_s11 = smov 12  ;;  %s860_s13 = smov 64  }
  0x21   :  { %v758_v25 = vld [vmem:[%s1502_s0 + $0x5] ss:$16 sm:%s255_s16]   ;;  %v790_v26 = vld [vmem:[%s1502_s0 + $0x8c] ss:$16 sm:%s409_s17]   ;;  %v253_v27 = vsel %vm70_vm1, %v757_v20, %v248_v24  ;;  %v371_v32 = vsel %vm75_vm2, %v781_v23, %v366_v22  ;;  %s313_s16 = smov 12  ;;  %s318_s19 = smov 48 }
  0x22   :  { %304 = vrot.lane.b32.xlu1 %v303_v11, %s859_s4  ;;  %v258_v29 = vsel %vm75_vm2, %v758_v25, %v253_v27  ;;  %v793_v30 = vld [vmem:[%s1502_s0 + $0x3] ss:$16 sm:%s424_s24]   ;;  %s323_s20 = smov 192  ;;  %v412_v35 = vsel %vm70_vm1, %v790_v26, %v407_v28  ;;  %s437_s21 = smov 192 }
  0x23   :  { %v794_v31 = vld [vmem:[%s1502_s0 + $0x3] ss:$16 sm:%s427_s25]   ;;  %v791_v33 = vld [vmem:[%s1502_s0 + $0x8c] ss:$16 sm:%s414_s28]   ;;  %s477_s28 = smov 48  ;;  %s492_s23 = smov 3 }
  0x24   :  { %v795_v34 = vld [vmem:[%s1502_s0 + $0x3] ss:$16 sm:%s432_s6]   ;;  %v430_v36 = vsel %vm65_vm0, %v794_v31, %v793_v30  ;;  %v769_v39 = vld [vmem:[%s1502_s0 + $0x8d] ss:$16 sm:%s310_s12]   ;;  %s495_s8 = smov 12  ;;  %v417_v44 = vsel %vm75_vm2, %v791_v33, %v412_v35  ;;  %s500_s15 = smov 48 }
  0x25   :  { %v802_v37 = vld [vmem:[%s1502_s0 + $0x83] ss:$16 sm:%s469_s7]   ;;  %v770_v40 = vld [vmem:[%s1502_s0 + $0x8d] ss:$16 sm:%s313_s16]   ;;  %v435_v45 = vsel %vm70_vm1, %v795_v34, %v430_v36  ;;  %s537_s16 = smov 3  ;;  %s381_s22 = smov 12 }
  0x26   :  { %350 = vrot.lane.b32.xlu0 %v349_v21, %s860_s13  ;;  %259 = vrot.lane.b32.xlu2 %v258_v29, %s859_s4  ;;  %v803_v38 = vld [vmem:[%s1502_s0 + $0x83] ss:$16 sm:%s472_s11]   ;;  %v316_v41 = vsel %vm65_vm0, %v770_v40, %v769_v39  ;;  %s482_s11 = smov 192  ;;  %s386_s25 = smov 48 }
  0x27   :  { %v771_v42 = vld [vmem:[%s1502_s0 + $0x8d] ss:$16 sm:%s318_s19]   ;;  %v796_v46 = vld [vmem:[%s1502_s0 + $0x3] ss:$16 sm:%s437_s21]   ;;  %v475_v50 = vsel %vm65_vm0, %v803_v38, %v802_v37  ;;  %s378_s21 = smov 3  ;;  %s540_s27 = smov 12 }
  0x28   :  { %v772_v43 = vld [vmem:[%s1502_s0 + $0x8d] ss:$16 sm:%s323_s20]   ;;  %v321_v47 = vsel %vm70_vm1, %v771_v42, %v316_v41  ;;  %v804_v48 = vld [vmem:[%s1502_s0 + $0x83] ss:$16 sm:%s477_s28]   ;;  %v440_v53 = vsel %vm75_vm2, %v796_v46, %v435_v45  ;;  %s391_s28 = smov 192  ;;  %s505_s30 = smov 192 }
  0x29   :  { %v326_v49 = vsel %vm75_vm2, %v772_v43, %v321_v47  ;;  %v807_v51 = vld [vmem:[%s1502_s0 + $0x8b] ss:$16 sm:%s492_s23]   ;;  %v805_v54 = vld [vmem:[%s1502_s0 + $0x83] ss:$16 sm:%s482_s11]   ;;  %v480_v56 = vsel %vm70_vm1, %v804_v48, %v475_v50  ;;  %s545_s9 = smov 48  ;;  %s560_s17 = smov 3 }
  0x2a   :  { %372 = vrot.lane.b32.xlu1 %v371_v32, %s860_s13  ;;  %v808_v52 = vld [vmem:[%s1502_s0 + $0x8b] ss:$16 sm:%s495_s8]   ;;  %s861_s8 = smov 48   ;;  %s563_s18 = smov 12  ;;  %v485_v2 = vsel %vm75_vm2, %v805_v54, %v480_v56 }
  0x2b   :  { %v809_v55 = vld [vmem:[%s1502_s0 + $0x8b] ss:$16 sm:%s500_s15]   ;;  %v498_v57 = vsel %vm65_vm0, %v808_v52, %v807_v51  ;;  %v816_v58 = vld [vmem:[%s1502_s0 + $0xa] ss:$16 sm:%s537_s16]   ;;  %s454_s2 = smov 48  ;;  %s459_s23 = smov 192 }
  0x2c   :  { %v783_v59 = vld [vmem:[%s1502_s0 + $0x84] ss:$16 sm:%s378_s21]   ;;  %v817_v63 = vld [vmem:[%s1502_s0 + $0xa] ss:$16 sm:%s540_s27]   ;;  %v503_v3 = vsel %vm70_vm1, %v809_v55, %v498_v57  ;;  %s550_s21 = smov 192  ;;  %s573_s12 = smov 192 }
  0x2d   :  { %v784_v60 = vld [vmem:[%s1502_s0 + $0x84] ss:$16 sm:%s381_s22]   ;;  %v810_v4 = vld [vmem:[%s1502_s0 + $0x8b] ss:$16 sm:%s505_s30]   ;;  %s568_s22 = smov 48  ;;  %v543_v7 = vsel %vm65_vm0, %v817_v63, %v816_v58  ;;  %s449_s30 = smov 12 }
  0x2e   :  { %418 = vrot.lane.b32.xlu0 %v417_v44, %s860_s13  ;;  %327 = vrot.lane.b32.xlu2 %v326_v49, %s859_s4  ;;  %v384_v61 = vsel %vm65_vm0, %v784_v60, %v783_v59  ;;  %v785_v62 = vld [vmem:[%s1502_s0 + $0x84] ss:$16 sm:%s386_s25]   ;;  %s446_s25 = smov 3  ;;  %v508_v10 = vsel %vm75_vm2, %v810_v4, %v503_v3  ;;  %s631_s4 = smov 12 }
  0x2f   :  { %v389_v0 = vsel %vm70_vm1, %v785_v62, %v384_v61  ;;  %v786_v1 = vld [vmem:[%s1502_s0 + $0x84] ss:$16 sm:%s391_s28]   ;;  %v818_v5 = vld [vmem:[%s1502_s0 + $0xa] ss:$16 sm:%s545_s9]   ;;  %s609_s9 = smov 12  ;;  %s619_s28 = smov 192 }
  0x30   :  { %v394_v6 = vsel %vm75_vm2, %v786_v1, %v389_v0  ;;  %v821_v8 = vld [vmem:[%s1502_s0 + $0x82] ss:$16 sm:%s560_s17]   ;;  %v819_v11 = vld [vmem:[%s1502_s0 + $0xa] ss:$16 sm:%s550_s21]   ;;  %v548_v14 = vsel %vm70_vm1, %v818_v5, %v543_v7  ;;  %s518_s5 = smov 12  ;;  %s523_s10 = smov 48 }
  0x31   :  { %v822_v9 = vld [vmem:[%s1502_s0 + $0x82] ss:$16 sm:%s563_s18]   ;;  %v797_v13 = vld [vmem:[%s1502_s0 + $0xb] ss:$16 sm:%s446_s25]   ;;  %s614_s18 = smov 48  ;;  %s628_s25 = smov 3  ;;  %v553_v23 = vsel %vm75_vm2, %v819_v11, %v548_v14 }
  0x32   :  { %441 = vrot.lane.b32.xlu1 %v440_v53, %s861_s8  ;;  %v823_v12 = vld [vmem:[%s1502_s0 + $0x82] ss:$16 sm:%s568_s22]   ;;  %v566_v15 = vsel %vm65_vm0, %v822_v9, %v821_v8  ;;  %s862_s11 = smov 32   ;;  %s641_s15 = smov 192 }
  0x33   :  { %v798_v16 = vld [vmem:[%s1502_s0 + $0xb] ss:$16 sm:%s449_s30]   ;;  %v832_v21 = vld [vmem:[%s1502_s0 + $0x1] ss:$16 sm:%s609_s9]   ;;  %v571_v24 = vsel %vm70_vm1, %v823_v12, %v566_v15  ;;  %s515_s30 = smov 3  ;;  %s636_s9 = smov 48 }
  0x34   :  { %v799_v17 = vld [vmem:[%s1502_s0 + $0xb] ss:$16 sm:%s454_s2]   ;;  %v452_v18 = vsel %vm65_vm0, %v798_v16, %v797_v13  ;;  %v824_v25 = vld [vmem:[%s1502_s0 + $0x82] ss:$16 sm:%s573_s12]   ;;  %s677_s19 = smov 12  ;;  %s586_s26 = smov 12 }
  0x35   :  { %v800_v19 = vld [vmem:[%s1502_s0 + $0xb] ss:$16 sm:%s459_s23]   ;;  %v457_v22 = vsel %vm70_vm1, %v799_v17, %v452_v18  ;;  %v833_v26 = vld [vmem:[%s1502_s0 + $0x1] ss:$16 sm:%s614_s18]   ;;  %v576_v31 = vsel %vm75_vm2, %v824_v25, %v571_v24  ;;  %s528_s18 = smov 192  ;;  %s682_s23 = smov 48 }
  0x36   :  { %486 = vrot.lane.b32.xlu0 %v485_v2, %s861_s8  ;;  %395 = vrot.lane.b32.xlu2 %v394_v6, %s860_s13  ;;  %s606_s13 = smov 3  ;;  %v462_v27 = vsel %vm75_vm2, %v800_v19, %v457_v22  ;;  %v835_v29 = vld [vmem:[%s1502_s0 + $0x9] ss:$16 sm:%s628_s25]   ;;  %s591_s14 = smov 48 }
  0x37   :  { %v831_v20 = vld [vmem:[%s1502_s0 + $0x1] ss:$16 sm:%s606_s13]   ;;  %v836_v30 = vld [vmem:[%s1502_s0 + $0x9] ss:$16 sm:%s631_s4]   ;;  %s583_s4 = smov 3  ;;  %s687_s17 = smov 192 }
  0x38   :  { %v612_v28 = vsel %vm65_vm0, %v832_v21, %v831_v20  ;;  %v834_v32 = vld [vmem:[%s1502_s0 + $0x1] ss:$16 sm:%s619_s28]   ;;  %v812_v33 = vld [vmem:[%s1502_s0 + $0x2] ss:$16 sm:%s515_s30]   ;;  %v634_v36 = vsel %vm65_vm0, %v836_v30, %v835_v29  ;;  %s596_s20 = smov 192  ;;  %s651_s29 = smov 3 }
  0x39   :  { %v813_v34 = vld [vmem:[%s1502_s0 + $0x2] ss:$16 sm:%s518_s5]   ;;  %v617_v35 = vsel %vm70_vm1, %v833_v26, %v612_v28  ;;  %v837_v37 = vld [vmem:[%s1502_s0 + $0x9] ss:$16 sm:%s636_s9]   ;;  %s654_s24 = smov 12  ;;  %s659_s2 = smov 48 }
  0x3a   :  { %509 = vrot.lane.b32.xlu1 %v508_v10, %s861_s8  ;;  %v521_v38 = vsel %vm65_vm0, %v813_v34, %v812_v33  ;;  %v814_v39 = vld [vmem:[%s1502_s0 + $0x2] ss:$16 sm:%s523_s10]   ;;  %v622_v45 = vsel %vm75_vm2, %v834_v32, %v617_v35  ;;  %v639_v46 = vsel %vm70_vm1, %v837_v37, %v634_v36  ;;  %s664_s6 = smov 192  ;;  %v2_v4 = vld [vmem:[%s1502_s0] ss:$8 sm:$0xf]  }
  0x3b   :  { %v838_v40 = vld [vmem:[%s1502_s0 + $0x9] ss:$16 sm:%s641_s15]   ;;  %v526_v41 = vsel %vm70_vm1, %v814_v39, %v521_v38  ;;  %v815_v42 = vld [vmem:[%s1502_s0 + $0x2] ss:$16 sm:%s528_s18]   ;;  %s863_s18 = smov 16  }
  0x3c   :  { %v846_v44 = vld [vmem:[%s1502_s0 + $0x89] ss:$16 sm:%s677_s19]   ;;  %v826_v47 = vld [vmem:[%s1502_s0 + $0x8a] ss:$16 sm:%s583_s4]   ;;  %v531_v49 = vsel %vm75_vm2, %v815_v42, %v526_v41  ;;  %v644_v52 = vsel %vm75_vm2, %v838_v40, %v639_v46 }
  0x3d   :  { %v827_v48 = vld [vmem:[%s1502_s0 + $0x8a] ss:$16 sm:%s586_s26]   ;;  %v847_v51 = vld [vmem:[%s1502_s0 + $0x89] ss:$16 sm:%s682_s23]  }
  0x3e   :  { %554 = vrot.lane.b32.xlu0 %v553_v23, %s862_s11  ;;  %463 = vrot.lane.b32.xlu2 %v462_v27, %s861_s8  ;;  %s674_s8 = smov 3  ;;  %v589_v53 = vsel %vm65_vm0, %v827_v48, %v826_v47  ;;  %v828_v54 = vld [vmem:[%s1502_s0 + $0x8a] ss:$16 sm:%s591_s14]  }
  0x3f   :  { %v845_v43 = vld [vmem:[%s1502_s0 + $0x89] ss:$16 sm:%s674_s8]   ;;  %v594_v57 = vsel %vm70_vm1, %v828_v54, %v589_v53  ;;  %v829_v58 = vld [vmem:[%s1502_s0 + $0x8a] ss:$16 sm:%s596_s20]  }
  0x40   :  { %v680_v50 = vsel %vm65_vm0, %v846_v44, %v845_v43  ;;  %v848_v56 = vld [vmem:[%s1502_s0 + $0x89] ss:$16 sm:%s687_s17]   ;;  %v840_v60 = vld [vmem:[%s1502_s0 + $0x81] ss:$16 sm:%s651_s29]   ;;  %v599_v62 = vsel %vm75_vm2, %v829_v58, %v594_v57 }
  0x41   :  { %v685_v55 = vsel %vm70_vm1, %v847_v51, %v680_v50  ;;  %v841_v61 = vld [vmem:[%s1502_s0 + $0x81] ss:$16 sm:%s654_s24]   ;;  %v3_v5 = vld [vmem:[%s1502_s0] ss:$8 sm:$0xf0]  }
  0x42   :  { %577 = vrot.lane.b32.xlu1 %v576_v31, %s862_s11  ;;  %v690_v59 = vsel %vm75_vm2, %v848_v56, %v685_v55  ;;  %v657_v63 = vsel %vm65_vm0, %v841_v61, %v840_v60  ;;  %v842_v0 = vld [vmem:[%s1502_s0 + $0x81] ss:$16 sm:%s659_s2]   ;;  %v5_v6 = vsel %vm4_vm3, %v3_v5, %v2_v4  ;;  %v699_v7 = vld [vmem:[%s1502_s0 + $0x40] ss:$8 sm:$0xf]  }
  0x43   :  { %v662_v1 = vsel %vm70_vm1, %v842_v0, %v657_v63  ;;  %v843_v2 = vld [vmem:[%s1502_s0 + $0x81] ss:$16 sm:%s664_s6]   ;;  %7 = vst.msk [vmem:[%s1503_s1] ss:$8 sm:$0x3] %vm6_vm4, %v5_v6  }
  0x44   :  { %v667_v3 = vsel %vm75_vm2, %v843_v2, %v662_v1  ;;  %v700_v8 = vld [vmem:[%s1502_s0 + $0x40] ss:$8 sm:$0xf0]   ;;  %696 = vst.msk [vmem:[%s1503_s1 - $0xf] ss:$8 sm:$0xc] %vm6_vm4, %v5_v6  }
  0x45   :  { %v19_v9 = vsel %vm4_vm3, %v700_v8, %v699_v7  ;;  %697 = vst.msk [vmem:[%s1503_s1 - $0x1e] ss:$8 sm:$0x30] %vm6_vm4, %v5_v6   ;;  %v705_v10 = vld [vmem:[%s1502_s0 + $0x80] ss:$8 sm:$0xf]  }
  0x46   :  { %623 = vrot.lane.b32.xlu0 %v622_v45, %s863_s18  ;;  %532 = vrot.lane.b32.xlu2 %v531_v49, %s862_s11  ;;  %698 = vst.msk [vmem:[%s1503_s1 - $0x2d] ss:$8 sm:$0xc0] %vm6_vm4, %v5_v6   ;;  %v706_v11 = vld [vmem:[%s1502_s0 + $0x80] ss:$8 sm:$0xf0]  }
  0x47   :  { %701 = vst.msk [vmem:[%s1503_s1 + $0x4] ss:$8 sm:$0x3] %vm6_vm4, %v19_v9   ;;  %v34_v12 = vsel %vm4_vm3, %v706_v11, %v705_v10  ;;  %v711_v13 = vld [vmem:[%s1502_s0 + $0xc0] ss:$8 sm:$0xf]  }
  0x48   :  { %702 = vst.msk [vmem:[%s1503_s1 - $0xb] ss:$8 sm:$0xc] %vm6_vm4, %v19_v9   ;;  %v712_v14 = vld [vmem:[%s1502_s0 + $0xc0] ss:$8 sm:$0xf0]  }
  0x49   :  { %703 = vst.msk [vmem:[%s1503_s1 - $0x1a] ss:$8 sm:$0x30] %vm6_vm4, %v19_v9   ;;  %v49_v15 = vsel %vm4_vm3, %v712_v14, %v711_v13 }
  0x4a   :  { %645 = vrot.lane.b32.xlu1 %v644_v52, %s863_s18  ;;  %704 = vst.msk [vmem:[%s1503_s1 - $0x29] ss:$8 sm:$0xc0] %vm6_vm4, %v19_v9  }
  0x4b   :  { %707 = vst.msk [vmem:[%s1503_s1 + $0x10] ss:$8 sm:$0x3] %vm6_vm4, %v34_v12  }
  0x4c   :  { %708 = vst.msk [vmem:[%s1503_s1 + $0x1] ss:$8 sm:$0xc] %vm6_vm4, %v34_v12  }
  0x4d   :  { %709 = vst.msk [vmem:[%s1503_s1 - $0xe] ss:$8 sm:$0x30] %vm6_vm4, %v34_v12  }
  0x4e   :  { %691 = vrot.lane.b32.xlu0 %v690_v59, %s863_s18  ;;  %600 = vrot.lane.b32.xlu2 %v599_v62, %s862_s11  ;;  %710 = vst.msk [vmem:[%s1503_s1 - $0x1d] ss:$8 sm:$0xc0] %vm6_vm4, %v34_v12  }
  0x4f   :  { %713 = vst.msk [vmem:[%s1503_s1 + $0x14] ss:$8 sm:$0x3] %vm6_vm4, %v49_v15  }
  0x50   :  { %714 = vst.msk [vmem:[%s1503_s1 + $0x5] ss:$8 sm:$0xc] %vm6_vm4, %v49_v15  }
  0x51   :  { %715 = vst.msk [vmem:[%s1503_s1 - $0xa] ss:$8 sm:$0x30] %vm6_vm4, %v49_v15  }
  0x52   :  { %716 = vst.msk [vmem:[%s1503_s1 - $0x19] ss:$8 sm:$0xc0] %vm6_vm4, %v49_v15  }
  0x56   :  { %668 = vrot.lane.b32.xlu2 %v667_v3, %s863_s18 }
  0x70   :  { %v169_v16 = vpop.permute.xlu2 %168  }
  0x78   :  { %v78_v17 = vpop.permute.xlu0 %77   ;;  %v191_v18 = vpop.permute.xlu2 %190  }
  0x79   :  { %80 = vst.msk [vmem:[%s1503_s1] sm:$0xff] %vm79_vm5, %v78_v17  }
  0x7a   :  { %171 = vst.msk [vmem:[%s1503_s1] sm:$0xff] %vm170_vm6, %v169_v16  }
  0x7c   :  { %v123_v19 = vpop.permute.xlu1 %122  }
  0x7d   :  { %730 = vst.msk [vmem:[%s1503_s1 + $0x10] sm:$0xff] %vm79_vm5, %v123_v19  }
  0x80   :  { %v100_v20 = vpop.permute.xlu0 %99   ;;  %v260_v21 = vpop.permute.xlu2 %259  }
  0x81   :  { %725 = vst.msk [vmem:[%s1503_s1 + $0x8] sm:$0xff] %vm79_vm5, %v100_v20  }
  0x82   :  { %744 = vst.msk [vmem:[%s1503_s1 + $0x8] sm:$0xff] %vm170_vm6, %v191_v18  }
  0x83   :  { %262 = vst.msk [vmem:[%s1503_s1] sm:$0xff] %vm261_vm7, %v260_v21  }
  0x84   :  { %v146_v22 = vpop.permute.xlu1 %145  }
  0x85   :  { %735 = vst.msk [vmem:[%s1503_s1 + $0x18] sm:$0xff] %vm79_vm5, %v146_v22  }
  0x88   :  { %v214_v23 = vpop.permute.xlu0 %213   ;;  %v328_v24 = vpop.permute.xlu2 %327  }
  0x89   :  { %749 = vst.msk [vmem:[%s1503_s1 + $0x10] sm:$0xff] %vm170_vm6, %v214_v23  }
  0x8c   :  { %v237_v25 = vpop.permute.xlu1 %236  }
  0x8d   :  { %754 = vst.msk [vmem:[%s1503_s1 + $0x18] sm:$0xff] %vm170_vm6, %v237_v25  }
  0x8e   :  { %773 = vst.msk [vmem:[%s1503_s1 + $0x18] sm:$0xff] %vm261_vm7, %v328_v24  }
  0x90   :  { %v282_v26 = vpop.permute.xlu0 %281   ;;  %v396_v27 = vpop.permute.xlu2 %395  }
  0x91   :  { %763 = vst.msk [vmem:[%s1503_s1 + $0x8] sm:$0xff] %vm261_vm7, %v282_v26  }
  0x94   :  { %v305_v28 = vpop.permute.xlu1 %304  }
  0x95   :  { %768 = vst.msk [vmem:[%s1503_s1 + $0x10] sm:$0xff] %vm261_vm7, %v305_v28  }
  0x96   :  { %787 = vst.msk [vmem:[%s1503_s1 + $0x10] sm:$0xff] %vm352_vm8, %v396_v27  }
  0x98   :  { %v351_v29 = vpop.permute.xlu0 %350   ;;  %v464_v30 = vpop.permute.xlu2 %463  }
  0x99   :  { %353 = vst.msk [vmem:[%s1503_s1] sm:$0xff] %vm352_vm8, %v351_v29  }
  0x9c   :  { %v373_v31 = vpop.permute.xlu1 %372  }
  0x9d   :  { %782 = vst.msk [vmem:[%s1503_s1 + $0x8] sm:$0xff] %vm352_vm8, %v373_v31  }
  0x9e   :  { %801 = vst.msk [vmem:[%s1503_s1 + $0x8] sm:$0xff] %vm443_vm9, %v464_v30  }
  0xa0   :  { %v419_v32 = vpop.permute.xlu0 %418   ;;  %v533_v33 = vpop.permute.xlu2 %532  }
  0xa1   :  { %792 = vst.msk [vmem:[%s1503_s1 + $0x18] sm:$0xff] %vm352_vm8, %v419_v32  }
  0xa4   :  { %v442_v34 = vpop.permute.xlu1 %441  }
  0xa5   :  { %444 = vst.msk [vmem:[%s1503_s1] sm:$0xff] %vm443_vm9, %v442_v34  }
  0xa6   :  { %535 = vst.msk [vmem:[%s1503_s1] sm:$0xff] %vm534_vm10, %v533_v33  }
  0xa8   :  { %v487_v35 = vpop.permute.xlu0 %486   ;;  %v601_v36 = vpop.permute.xlu2 %600  }
  0xa9   :  { %806 = vst.msk [vmem:[%s1503_s1 + $0x10] sm:$0xff] %vm443_vm9, %v487_v35  }
  0xac   :  { %v510_v37 = vpop.permute.xlu1 %509  }
  0xad   :  { %811 = vst.msk [vmem:[%s1503_s1 + $0x18] sm:$0xff] %vm443_vm9, %v510_v37  }
  0xae   :  { %830 = vst.msk [vmem:[%s1503_s1 + $0x18] sm:$0xff] %vm534_vm10, %v601_v36  }
  0xb0   :  { %v555_v38 = vpop.permute.xlu0 %554   ;;  %v669_v39 = vpop.permute.xlu2 %668  }
  0xb1   :  { %820 = vst.msk [vmem:[%s1503_s1 + $0x8] sm:$0xff] %vm534_vm10, %v555_v38  }
  0xb4   :  { %v578_v40 = vpop.permute.xlu1 %577  }
  0xb5   :  { %825 = vst.msk [vmem:[%s1503_s1 + $0x10] sm:$0xff] %vm534_vm10, %v578_v40  }
  0xb6   :  { %844 = vst.msk [vmem:[%s1503_s1 + $0x10] sm:$0xff] %vm625_vm11, %v669_v39  }
  0xb8   :  { %v624_v41 = vpop.permute.xlu0 %623  }
  0xb9   :  { %626 = vst.msk [vmem:[%s1503_s1] sm:$0xff] %vm625_vm11, %v624_v41  }
  0xbc   :  { %v646_v42 = vpop.permute.xlu1 %645  }
  0xbd   :  { %839 = vst.msk [vmem:[%s1503_s1 + $0x8] sm:$0xff] %vm625_vm11, %v646_v42  }
  0xc0   :  { %v692_v43 = vpop.permute.xlu0 %691  }
  0xc1   :  { %849 = vst.msk [vmem:[%s1503_s1 + $0x18] sm:$0xff] %vm625_vm11, %v692_v43  }

// kernel: ca_resblock.1
= control target key start
LH: loop header
LB: loop body
LE: loop exit
PB: predicated region body
PF: predicated region fallthrough
CT: control target
= control target key end

     0   :  { %s5190_s0 = inlined_call_operand.vmem [shape: f32[2,16,256], index: 0, kind: input, shape index: {}]   ;;  %s5191_s1 = inlined_call_operand.vmem [shape: bf16[2,768,256], index: 1, kind: input, shape index: {}]   ;;  %s5192_s2 = inlined_call_operand.vmem [shape: f32[1,256], index: 2, kind: input, shape index: {}]   ;;  %s5193_s3 = inlined_call_operand.vmem [shape: f32[1,256], index: 3, kind: input, shape index: {}]   ;;  %s5194_s4 = inlined_call_operand.vmem [shape: f32[1,256], index: 4, kind: input, shape index: {}]   ;;  %s5195_s5 = inlined_call_operand.vmem [shape: f32[1,256], index: 5, kind: input, shape index: {}]   ;;  %s5196_s6 = inlined_call_operand.vmem [shape: f32[16,2], index: 6, kind: input, shape index: {}]   ;;  %s5197_s7 = inlined_call_operand.vmem [shape: f32[1,2], index: 7, kind: input, shape index: {}]   ;;  %s5198_s8 = inlined_call_operand.vmem [shape: f32[2,16], index: 8, kind: input, shape index: {}]   ;;  %s5199_s9 = inlined_call_operand.vmem [shape: f32[1,16], index: 9, kind: input, shape index: {}]   ;;  %s5200_s10 = inlined_call_operand.vmem [shape: f32[16,256], index: 10, kind: input, shape index: {}]   ;;  %s5201_s11 = inlined_call_operand.vmem [shape: f32[2,16,256], index: 11, kind: output, shape index: {}]  }
   0x1   :  { %v47_v0 = vld [vmem:[%s5191_s1] sm:$0xff]  ;;  %v49_v1 = vld [vmem:[%s5191_s1 + $0x8] sm:$0xff]  ;;  %v51_v2 = vld [vmem:[%s5191_s1 + $0x10] sm:$0xff] }
   0x2   :  { %48 = vst [vmem:[#allocation3] sm:$0xff] %v47_v0  ;;  %v53_v3 = vld [vmem:[%s5191_s1 + $0x18] sm:$0xff]  ;;  %v55_v4 = vld [vmem:[%s5191_s1 + $0x20] sm:$0xff]  ;;  %v57_v5 = vld [vmem:[%s5191_s1 + $0x28] sm:$0xff] }
   0x3   :  { %50 = vst [vmem:[#allocation3 + $0x8] sm:$0xff] %v49_v1  ;;  %v59_v6 = vld [vmem:[%s5191_s1 + $0x30] sm:$0xff]  ;;  %v61_v7 = vld [vmem:[%s5191_s1 + $0x38] sm:$0xff]  ;;  %v63_v8 = vld [vmem:[%s5191_s1 + $0x40] sm:$0xff] }
   0x4   :  { %52 = vst [vmem:[#allocation3 + $0x10] sm:$0xff] %v51_v2  ;;  %v65_v9 = vld [vmem:[%s5191_s1 + $0x48] sm:$0xff]  ;;  %v67_v10 = vld [vmem:[%s5191_s1 + $0x50] sm:$0xff]  ;;  %v69_v11 = vld [vmem:[%s5191_s1 + $0x58] sm:$0xff] }
   0x5   :  { %54 = vst [vmem:[#allocation3 + $0x18] sm:$0xff] %v53_v3  ;;  %v71_v12 = vld [vmem:[%s5191_s1 + $0x60] sm:$0xff]  ;;  %v73_v13 = vld [vmem:[%s5191_s1 + $0x68] sm:$0xff]  ;;  %v75_v14 = vld [vmem:[%s5191_s1 + $0x70] sm:$0xff] }
   0x6   :  { %56 = vst [vmem:[#allocation3 + $0x20] sm:$0xff] %v55_v4  ;;  %v77_v15 = vld [vmem:[%s5191_s1 + $0x78] sm:$0xff]  ;;  %v79_v16 = vld [vmem:[%s5191_s1 + $0x80] sm:$0xff]  ;;  %v81_v17 = vld [vmem:[%s5191_s1 + $0x88] sm:$0xff] }
   0x7   :  { %58 = vst [vmem:[#allocation3 + $0x28] sm:$0xff] %v57_v5  ;;  %v83_v18 = vld [vmem:[%s5191_s1 + $0x90] sm:$0xff]  ;;  %v85_v19 = vld [vmem:[%s5191_s1 + $0x98] sm:$0xff]  ;;  %v87_v20 = vld [vmem:[%s5191_s1 + $0xa0] sm:$0xff] }
   0x8   :  { %60 = vst [vmem:[#allocation3 + $0x30] sm:$0xff] %v59_v6  ;;  %v89_v21 = vld [vmem:[%s5191_s1 + $0xa8] sm:$0xff]  ;;  %v91_v22 = vld [vmem:[%s5191_s1 + $0xb0] sm:$0xff]  ;;  %v93_v23 = vld [vmem:[%s5191_s1 + $0xb8] sm:$0xff] }
   0x9   :  { %62 = vst [vmem:[#allocation3 + $0x38] sm:$0xff] %v61_v7  ;;  %v95_v24 = vld [vmem:[%s5191_s1 + $0xc0] sm:$0xff]  ;;  %v97_v25 = vld [vmem:[%s5191_s1 + $0xc8] sm:$0xff]  ;;  %v99_v26 = vld [vmem:[%s5191_s1 + $0xd0] sm:$0xff] }
   0xa   :  { %64 = vst [vmem:[#allocation3 + $0x40] sm:$0xff] %v63_v8  ;;  %v101_v27 = vld [vmem:[%s5191_s1 + $0xd8] sm:$0xff]  ;;  %v103_v28 = vld [vmem:[%s5191_s1 + $0xe0] sm:$0xff]  ;;  %v105_v29 = vld [vmem:[%s5191_s1 + $0xe8] sm:$0xff] }
   0xb   :  { %66 = vst [vmem:[#allocation3 + $0x48] sm:$0xff] %v65_v9  ;;  %v107_v30 = vld [vmem:[%s5191_s1 + $0xf0] sm:$0xff]  ;;  %v109_v31 = vld [vmem:[%s5191_s1 + $0xf8] sm:$0xff]  ;;  %v111_v32 = vld [vmem:[%s5191_s1 + $0x100] sm:$0xff] }
   0xc   :  { %68 = vst [vmem:[#allocation3 + $0x50] sm:$0xff] %v67_v10  ;;  %v113_v33 = vld [vmem:[%s5191_s1 + $0x108] sm:$0xff]  ;;  %v115_v34 = vld [vmem:[%s5191_s1 + $0x110] sm:$0xff]  ;;  %v117_v35 = vld [vmem:[%s5191_s1 + $0x118] sm:$0xff] }
   0xd   :  { %70 = vst [vmem:[#allocation3 + $0x58] sm:$0xff] %v69_v11  ;;  %v119_v36 = vld [vmem:[%s5191_s1 + $0x120] sm:$0xff]  ;;  %v121_v37 = vld [vmem:[%s5191_s1 + $0x128] sm:$0xff]  ;;  %v123_v38 = vld [vmem:[%s5191_s1 + $0x130] sm:$0xff] }
   0xe   :  { %72 = vst [vmem:[#allocation3 + $0x60] sm:$0xff] %v71_v12  ;;  %v125_v39 = vld [vmem:[%s5191_s1 + $0x138] sm:$0xff]  ;;  %v127_v40 = vld [vmem:[%s5191_s1 + $0x140] sm:$0xff]  ;;  %v129_v41 = vld [vmem:[%s5191_s1 + $0x148] sm:$0xff] }
   0xf   :  { %74 = vst [vmem:[#allocation3 + $0x68] sm:$0xff] %v73_v13  ;;  %v131_v42 = vld [vmem:[%s5191_s1 + $0x150] sm:$0xff]  ;;  %v133_v43 = vld [vmem:[%s5191_s1 + $0x158] sm:$0xff]  ;;  %v135_v44 = vld [vmem:[%s5191_s1 + $0x160] sm:$0xff] }
  0x10   :  { %76 = vst [vmem:[#allocation3 + $0x70] sm:$0xff] %v75_v14  ;;  %v137_v45 = vld [vmem:[%s5191_s1 + $0x168] sm:$0xff]  ;;  %v139_v46 = vld [vmem:[%s5191_s1 + $0x170] sm:$0xff]  ;;  %v141_v47 = vld [vmem:[%s5191_s1 + $0x178] sm:$0xff] }
  0x11   :  { %78 = vst [vmem:[#allocation3 + $0x78] sm:$0xff] %v77_v15  ;;  %v143_v48 = vld [vmem:[%s5191_s1 + $0x180] sm:$0xff]  ;;  %v145_v49 = vld [vmem:[%s5191_s1 + $0x188] sm:$0xff]  ;;  %v147_v50 = vld [vmem:[%s5191_s1 + $0x190] sm:$0xff] }
  0x12   :  { %80 = vst [vmem:[#allocation3 + $0x80] sm:$0xff] %v79_v16  ;;  %v149_v51 = vld [vmem:[%s5191_s1 + $0x198] sm:$0xff]  ;;  %v151_v52 = vld [vmem:[%s5191_s1 + $0x1a0] sm:$0xff]  ;;  %v153_v53 = vld [vmem:[%s5191_s1 + $0x1a8] sm:$0xff] }
  0x13   :  { %82 = vst [vmem:[#allocation3 + $0x88] sm:$0xff] %v81_v17  ;;  %v155_v54 = vld [vmem:[%s5191_s1 + $0x1b0] sm:$0xff]  ;;  %v157_v55 = vld [vmem:[%s5191_s1 + $0x1b8] sm:$0xff]  ;;  %v159_v56 = vld [vmem:[%s5191_s1 + $0x1c0] sm:$0xff] }
  0x14   :  { %84 = vst [vmem:[#allocation3 + $0x90] sm:$0xff] %v83_v18  ;;  %v161_v57 = vld [vmem:[%s5191_s1 + $0x1c8] sm:$0xff]  ;;  %v163_v58 = vld [vmem:[%s5191_s1 + $0x1d0] sm:$0xff]  ;;  %v165_v59 = vld [vmem:[%s5191_s1 + $0x1d8] sm:$0xff] }
  0x15   :  { %86 = vst [vmem:[#allocation3 + $0x98] sm:$0xff] %v85_v19  ;;  %v167_v60 = vld [vmem:[%s5191_s1 + $0x1e0] sm:$0xff]  ;;  %v169_v61 = vld [vmem:[%s5191_s1 + $0x1e8] sm:$0xff]  ;;  %v171_v62 = vld [vmem:[%s5191_s1 + $0x1f0] sm:$0xff] }
  0x16   :  { %88 = vst [vmem:[#allocation3 + $0xa0] sm:$0xff] %v87_v20  ;;  %v173_v63 = vld [vmem:[%s5191_s1 + $0x1f8] sm:$0xff]  ;;  %v175_v0 = vld [vmem:[%s5191_s1 + $0x200] sm:$0xff]  ;;  %v177_v1 = vld [vmem:[%s5191_s1 + $0x208] sm:$0xff] }
  0x17   :  { %90 = vst [vmem:[#allocation3 + $0xa8] sm:$0xff] %v89_v21  ;;  %v179_v2 = vld [vmem:[%s5191_s1 + $0x210] sm:$0xff]  ;;  %v181_v3 = vld [vmem:[%s5191_s1 + $0x218] sm:$0xff]  ;;  %v183_v4 = vld [vmem:[%s5191_s1 + $0x220] sm:$0xff] }
  0x18   :  { %92 = vst [vmem:[#allocation3 + $0xb0] sm:$0xff] %v91_v22  ;;  %v185_v5 = vld [vmem:[%s5191_s1 + $0x228] sm:$0xff]  ;;  %v187_v6 = vld [vmem:[%s5191_s1 + $0x230] sm:$0xff]  ;;  %v189_v7 = vld [vmem:[%s5191_s1 + $0x238] sm:$0xff] }
  0x19   :  { %94 = vst [vmem:[#allocation3 + $0xb8] sm:$0xff] %v93_v23  ;;  %v191_v8 = vld [vmem:[%s5191_s1 + $0x240] sm:$0xff]  ;;  %v193_v9 = vld [vmem:[%s5191_s1 + $0x248] sm:$0xff]  ;;  %v195_v10 = vld [vmem:[%s5191_s1 + $0x250] sm:$0xff] }
  0x1a   :  { %96 = vst [vmem:[#allocation3 + $0xc0] sm:$0xff] %v95_v24  ;;  %v197_v11 = vld [vmem:[%s5191_s1 + $0x258] sm:$0xff]  ;;  %v199_v12 = vld [vmem:[%s5191_s1 + $0x260] sm:$0xff]  ;;  %v201_v13 = vld [vmem:[%s5191_s1 + $0x268] sm:$0xff] }
  0x1b   :  { %98 = vst [vmem:[#allocation3 + $0xc8] sm:$0xff] %v97_v25  ;;  %v203_v14 = vld [vmem:[%s5191_s1 + $0x270] sm:$0xff]  ;;  %v205_v15 = vld [vmem:[%s5191_s1 + $0x278] sm:$0xff]  ;;  %v207_v16 = vld [vmem:[%s5191_s1 + $0x280] sm:$0xff] }
  0x1c   :  { %100 = vst [vmem:[#allocation3 + $0xd0] sm:$0xff] %v99_v26  ;;  %v209_v17 = vld [vmem:[%s5191_s1 + $0x288] sm:$0xff]  ;;  %v211_v18 = vld [vmem:[%s5191_s1 + $0x290] sm:$0xff]  ;;  %v213_v19 = vld [vmem:[%s5191_s1 + $0x298] sm:$0xff] }
  0x1d   :  { %102 = vst [vmem:[#allocation3 + $0xd8] sm:$0xff] %v101_v27  ;;  %v215_v20 = vld [vmem:[%s5191_s1 + $0x2a0] sm:$0xff]  ;;  %v217_v21 = vld [vmem:[%s5191_s1 + $0x2a8] sm:$0xff]  ;;  %v219_v22 = vld [vmem:[%s5191_s1 + $0x2b0] sm:$0xff] }
  0x1e   :  { %104 = vst [vmem:[#allocation3 + $0xe0] sm:$0xff] %v103_v28  ;;  %v221_v23 = vld [vmem:[%s5191_s1 + $0x2b8] sm:$0xff]  ;;  %v223_v24 = vld [vmem:[%s5191_s1 + $0x2c0] sm:$0xff]  ;;  %v225_v25 = vld [vmem:[%s5191_s1 + $0x2c8] sm:$0xff] }
  0x1f   :  { %106 = vst [vmem:[#allocation3 + $0xe8] sm:$0xff] %v105_v29  ;;  %v227_v26 = vld [vmem:[%s5191_s1 + $0x2d0] sm:$0xff]  ;;  %v229_v27 = vld [vmem:[%s5191_s1 + $0x2d8] sm:$0xff]  ;;  %v231_v28 = vld [vmem:[%s5191_s1 + $0x2e0] sm:$0xff] }
  0x20   :  { %108 = vst [vmem:[#allocation3 + $0xf0] sm:$0xff] %v107_v30  ;;  %v233_v29 = vld [vmem:[%s5191_s1 + $0x2e8] sm:$0xff]  ;;  %v235_v30 = vld [vmem:[%s5191_s1 + $0x2f0] sm:$0xff] }
  0x21   :  { %110 = vst [vmem:[#allocation3 + $0xf8] sm:$0xff] %v109_v31  ;;  %v237_v31 = vld [vmem:[%s5191_s1 + $0x2f8] sm:$0xff] }
  0x22   :  { %112 = vst [vmem:[#allocation3 + $0x100] sm:$0xff] %v111_v32 }
  0x23   :  { %114 = vst [vmem:[#allocation3 + $0x108] sm:$0xff] %v113_v33 }
  0x24   :  { %116 = vst [vmem:[#allocation3 + $0x110] sm:$0xff] %v115_v34 }
  0x25   :  { %118 = vst [vmem:[#allocation3 + $0x118] sm:$0xff] %v117_v35 }
  0x26   :  { %120 = vst [vmem:[#allocation3 + $0x120] sm:$0xff] %v119_v36 }
  0x27   :  { %122 = vst [vmem:[#allocation3 + $0x128] sm:$0xff] %v121_v37 }
  0x28   :  { %124 = vst [vmem:[#allocation3 + $0x130] sm:$0xff] %v123_v38 }
  0x29   :  { %126 = vst [vmem:[#allocation3 + $0x138] sm:$0xff] %v125_v39 }
  0x2a   :  { %128 = vst [vmem:[#allocation3 + $0x140] sm:$0xff] %v127_v40 }
  0x2b   :  { %130 = vst [vmem:[#allocation3 + $0x148] sm:$0xff] %v129_v41 }
  0x2c   :  { %132 = vst [vmem:[#allocation3 + $0x150] sm:$0xff] %v131_v42 }
  0x2d   :  { %134 = vst [vmem:[#allocation3 + $0x158] sm:$0xff] %v133_v43 }
  0x2e   :  { %136 = vst [vmem:[#allocation3 + $0x160] sm:$0xff] %v135_v44 }
  0x2f   :  { %138 = vst [vmem:[#allocation3 + $0x168] sm:$0xff] %v137_v45 }
  0x30   :  { %140 = vst [vmem:[#allocation3 + $0x170] sm:$0xff] %v139_v46 }
  0x31   :  { %142 = vst [vmem:[#allocation3 + $0x178] sm:$0xff] %v141_v47 }
  0x32   :  { %144 = vst [vmem:[#allocation3 + $0x180] sm:$0xff] %v143_v48 }
  0x33   :  { %146 = vst [vmem:[#allocation3 + $0x188] sm:$0xff] %v145_v49 }
  0x34   :  { %148 = vst [vmem:[#allocation3 + $0x190] sm:$0xff] %v147_v50 }
  0x35   :  { %150 = vst [vmem:[#allocation3 + $0x198] sm:$0xff] %v149_v51 }
  0x36   :  { %152 = vst [vmem:[#allocation3 + $0x1a0] sm:$0xff] %v151_v52 }
  0x37   :  { %154 = vst [vmem:[#allocation3 + $0x1a8] sm:$0xff] %v153_v53 }
  0x38   :  { %156 = vst [vmem:[#allocation3 + $0x1b0] sm:$0xff] %v155_v54 }
  0x39   :  { %158 = vst [vmem:[#allocation3 + $0x1b8] sm:$0xff] %v157_v55 }
  0x3a   :  { %160 = vst [vmem:[#allocation3 + $0x1c0] sm:$0xff] %v159_v56 }
  0x3b   :  { %162 = vst [vmem:[#allocation3 + $0x1c8] sm:$0xff] %v161_v57 }
  0x3c   :  { %164 = vst [vmem:[#allocation3 + $0x1d0] sm:$0xff] %v163_v58 }
  0x3d   :  { %166 = vst [vmem:[#allocation3 + $0x1d8] sm:$0xff] %v165_v59 }
  0x3e   :  { %168 = vst [vmem:[#allocation3 + $0x1e0] sm:$0xff] %v167_v60 }
  0x3f   :  { %170 = vst [vmem:[#allocation3 + $0x1e8] sm:$0xff] %v169_v61 }
  0x40   :  { %172 = vst [vmem:[#allocation3 + $0x1f0] sm:$0xff] %v171_v62 }
  0x41   :  { %174 = vst [vmem:[#allocation3 + $0x1f8] sm:$0xff] %v173_v63 }
  0x42   :  { %176 = vst [vmem:[#allocation3 + $0x200] sm:$0xff] %v175_v0 }
  0x43   :  { %178 = vst [vmem:[#allocation3 + $0x208] sm:$0xff] %v177_v1 }
  0x44   :  { %180 = vst [vmem:[#allocation3 + $0x210] sm:$0xff] %v179_v2 }
  0x45   :  { %182 = vst [vmem:[#allocation3 + $0x218] sm:$0xff] %v181_v3 }
  0x46   :  { %184 = vst [vmem:[#allocation3 + $0x220] sm:$0xff] %v183_v4 }
  0x47   :  { %186 = vst [vmem:[#allocation3 + $0x228] sm:$0xff] %v185_v5 }
  0x48   :  { %188 = vst [vmem:[#allocation3 + $0x230] sm:$0xff] %v187_v6 }
  0x49   :  { %190 = vst [vmem:[#allocation3 + $0x238] sm:$0xff] %v189_v7 }
  0x4a   :  { %192 = vst [vmem:[#allocation3 + $0x240] sm:$0xff] %v191_v8 }
  0x4b   :  { %194 = vst [vmem:[#allocation3 + $0x248] sm:$0xff] %v193_v9 }
  0x4c   :  { %196 = vst [vmem:[#allocation3 + $0x250] sm:$0xff] %v195_v10 }
  0x4d   :  { %198 = vst [vmem:[#allocation3 + $0x258] sm:$0xff] %v197_v11 }
  0x4e   :  { %200 = vst [vmem:[#allocation3 + $0x260] sm:$0xff] %v199_v12 }
  0x4f   :  { %202 = vst [vmem:[#allocation3 + $0x268] sm:$0xff] %v201_v13 }
  0x50   :  { %204 = vst [vmem:[#allocation3 + $0x270] sm:$0xff] %v203_v14 }
  0x51   :  { %206 = vst [vmem:[#allocation3 + $0x278] sm:$0xff] %v205_v15 }
  0x52   :  { %208 = vst [vmem:[#allocation3 + $0x280] sm:$0xff] %v207_v16 }
  0x53   :  { %210 = vst [vmem:[#allocation3 + $0x288] sm:$0xff] %v209_v17 }
  0x54   :  { %212 = vst [vmem:[#allocation3 + $0x290] sm:$0xff] %v211_v18 }
  0x55   :  { %214 = vst [vmem:[#allocation3 + $0x298] sm:$0xff] %v213_v19 }
  0x56   :  { %216 = vst [vmem:[#allocation3 + $0x2a0] sm:$0xff] %v215_v20 }
  0x57   :  { %218 = vst [vmem:[#allocation3 + $0x2a8] sm:$0xff] %v217_v21 }
  0x58   :  { %220 = vst [vmem:[#allocation3 + $0x2b0] sm:$0xff] %v219_v22 }
  0x59   :  { %222 = vst [vmem:[#allocation3 + $0x2b8] sm:$0xff] %v221_v23 }
  0x5a   :  { %224 = vst [vmem:[#allocation3 + $0x2c0] sm:$0xff] %v223_v24 }
  0x5b   :  { %226 = vst [vmem:[#allocation3 + $0x2c8] sm:$0xff] %v225_v25 }
  0x5c   :  { %228 = vst [vmem:[#allocation3 + $0x2d0] sm:$0xff] %v227_v26 }
  0x5d   :  { %230 = vst [vmem:[#allocation3 + $0x2d8] sm:$0xff] %v229_v27 }
  0x5e   :  { %232 = vst [vmem:[#allocation3 + $0x2e0] sm:$0xff] %v231_v28 }
  0x5f   :  { %234 = vst [vmem:[#allocation3 + $0x2e8] sm:$0xff] %v233_v29 }
  0x60   :  { %236 = vst [vmem:[#allocation3 + $0x2f0] sm:$0xff] %v235_v30 }
  0x61   :  { %238 = vst [vmem:[#allocation3 + $0x2f8] sm:$0xff] %v237_v31 }
  0x62   :  { %244 = vsyncadd [#allocation4], 12288  ;;  %vm245_vm0 = vcmask 1040384   ;;  %vm246_vm1 = vsmask.f32 256  ;;  %vm248_vm2 = vcmask 1044484  }
  0x63   :  { %vm247_vm3 = vmand %vm245_vm0, %vm246_vm1  ;;  %vm249_vm4 = vsmask.f32 4352  ;;  %v252_v32 = vld [vmem:[#allocation2 + $0x20] sm:$0x11]  ;;  %v255_v33 = vld [vmem:[#allocation2 + $0x10] sm:$0x11] }
  0x64   :  { %vm250_vm5 = vmand %vm248_vm2, %vm249_vm4  ;;  %vm258_vm6 = vsmask.f32 7938  ;;  %vm260_vm7 = vsmask.f32 7954  ;;  %v263_v34 = vld [vmem:[#allocation2 + $0x18] sm:$0x11] }
  0x65   :  { %vm4430_vm8 = vmor %vm250_vm5, %vm247_vm3  ;;  %v266_v36 = vld [vmem:[#allocation2] sm:$0x11]  ;;  %v269_v37 = vld [vmem:[%s5190_s0] sm:$0xff]  ;;  %vm323_vm10 = vcmask 1043456   ;;  %vm325_vm12 = vcmask 1047556   ;;  %vm443_vm5 = vcmask 1046528  }
  0x66   :  { %v253_v38 = vsel %vm4430_vm8, 0, %v252_v32  ;;  %v256_v39 = vsel %vm4430_vm8, 0, %v255_v33  ;;  %vm4443_vm9 = vmand %vm245_vm0, %vm258_vm6  ;;  %v270_v41 = vld [vmem:[%s5190_s0 + $0x8] sm:$0xff]  ;;  %v271_v42 = vld [vmem:[%s5190_s0 + $0x10] sm:$0xff]  ;;  %vm281_vm14 = vsmask.f32 4368 }
  0x67   :  { %254 = vst [vmem:[#allocation2 + $0x20] sm:$0x11] %v253_v38  ;;  %vm261_vm11 = vmand %vm248_vm2, %vm260_vm7  ;;  %v277_v43 = vpack.c.bf16 %v270_v41, %v269_v37  ;;  %v272_v44 = vld [vmem:[%s5190_s0 + $0x18] sm:$0xff]  ;;  %v273_v45 = vld [vmem:[%s5190_s0 + $0x20] sm:$0xff] }
  0x68   :  { %257 = vst [vmem:[#allocation2 + $0x10] sm:$0x11] %v256_v39  ;;  %vm262_vm13 = vmor %vm261_vm11, %vm4443_vm9  ;;  %v278_v46 = vpack.c.bf16 %v272_v44, %v271_v42  ;;  %v274_v47 = vld [vmem:[%s5190_s0 + $0x28] sm:$0xff]  ;;  %v275_v48 = vld [vmem:[%s5190_s0 + $0x30] sm:$0xff] }
  0x69   :  { %v264_v49 = vsel %vm262_vm13, 0, %v263_v34  ;;  %vm324_vm15 = vmand %vm323_vm10, %vm258_vm6  ;;  %v267_v50 = vsel %vm262_vm13, 0, %v266_v36  ;;  %v284_v51 = vshrl.u32 %v277_v43, 16  ;;  %v287_v52 = vshll.u32 %v277_v43, 16  ;;  %v276_v53 = vld [vmem:[%s5190_s0 + $0x38] sm:$0xff] }
  0x6a   :  { %265 = vst [vmem:[#allocation2 + $0x18] sm:$0x11] %v264_v49  ;;  %vm326_vm2 = vmand %vm325_vm12, %vm260_vm7  ;;  %v292_v54 = vshrl.u32 %v278_v46, 16  ;;  %v295_v55 = vshll.u32 %v278_v46, 16  ;;  %v279_v56 = vpack.c.bf16 %v274_v47, %v273_v45  ;;  %v280_v57 = vpack.c.bf16 %v276_v53, %v275_v48 }
  0x6b   :  { %268 = vst [vmem:[#allocation2] sm:$0x11] %v267_v50  ;;  %v286_v58 = vrot.slane %v284_v51, 7  ;;  %vm4476_vm3 = vmor %vm326_vm2, %vm324_vm15 }
  0x6c   :  { %v294_v60 = vrot.slane %v292_v54, 7  ;;  %v301_v61 = vshrl.u32 %v279_v56, 16  ;;  %v304_v62 = vshll.u32 %v279_v56, 16  ;;  %v309_v63 = vshrl.u32 %v280_v57, 16  ;;  %vm4482_vm4 = vmor %vm246_vm1, %vm281_vm14 }
  0x6d   :  { %v289_v0 = vor.u32 %v287_v52, %v286_v58  ;;  %v290_v2 = vrot.slane %v286_v58, 4  ;;  %v312_v3 = vshll.u32 %v280_v57, 16  ;;  %vm380_vm1 = vsmask.f32 7424 }
  0x6e   :  { %v328_v4 = vld [vmem:[#allocation2 + $0x20] sm:$0xff]  ;;  %v297_v5 = vor.u32 %v295_v55, %v294_v60  ;;  %v299_v6 = vrot.slane %v294_v60, 4  ;;  %v303_v7 = vrot.slane %v301_v61, 7  ;;  %v311_v8 = vrot.slane %v309_v63, 7 }
  0x6f   :  { %v329_v9 = vsel %vm4476_vm3, %v289_v0, %v328_v4  ;;  %v335_v10 = vld [vmem:[#allocation2 + $0x10] sm:$0xff] }
  0x70   :  { %330 = vst [vmem:[#allocation2 + $0x20] sm:$0xff] %v329_v9  ;;  %v354_v11 = vunpack.c.l.b16 %v329_v9  ;;  %v355_v12 = vunpack.c.h.b16 %v329_v9  ;;  %v298_v13 = vsel %vm4482_vm4, %v290_v2, %v297_v5  ;;  %v306_v14 = vor.u32 %v304_v62, %v303_v7 }
  0x71   :  { %v356_v15 = vunpack.c.l.b16 %v298_v13  ;;  %v357_v16 = vunpack.c.h.b16 %v298_v13  ;;  %v332_v17 = vld [vmem:[#allocation2 + $0x18] sm:$0x11]  ;;  %v307_v18 = vrot.slane %v303_v7, 4  ;;  %v314_v19 = vor.u32 %v312_v3, %v311_v8 }
  0x72   :  { %v333_v20 = vsel %vm4430_vm8, %v299_v6, %v332_v17  ;;  %v336_v21 = vsel %vm4476_vm3, %v306_v14, %v335_v10  ;;  %v316_v22 = vrot.slane %v311_v8, 4  ;;  %v339_v23 = vld [vmem:[#allocation2] sm:$0x11] }
  0x73   :  { %v4494_v24 = vpack.c.b16 %v356_v15, %v354_v11  ;;  %v4496_v25 = vpack.c.b16 %v357_v16, %v355_v12  ;;  %334 = vst [vmem:[#allocation2 + $0x18] sm:$0x11] %v333_v20  ;;  %v358_v26 = vunpack.c.l.b16 %v336_v21  ;;  %v359_v27 = vunpack.c.h.b16 %v336_v21 }
  0x74   :  { %337 = vst [vmem:[#allocation2 + $0x10] sm:$0xff] %v336_v21  ;;  %v315_v28 = vsel %vm4482_vm4, %v307_v18, %v314_v19  ;;  %v340_v29 = vsel %vm4430_vm8, %v316_v22, %v339_v23 }
  0x75   :  { %v384_v30 = vshll.u32 %v4494_v24, 16  ;;  %v396_v31 = vshll.u32 %v4496_v25, 16  ;;  %v360_v32 = vunpack.c.l.b16 %v315_v28  ;;  %v361_v33 = vunpack.c.h.b16 %v315_v28  ;;  %341 = vst [vmem:[#allocation2] sm:$0x11] %v340_v29 }
  0x76   :  { %v382_v36 = vshrl.u32 %v4494_v24, 16  ;;  %v394_v38 = vshrl.u32 %v4496_v25, 16 }
  0x77   :  { %v348_v34 = vld [vmem:[#allocation2 + $0x20] sm:$0xee]  ;;  %v386_v37 = vrot.slane %v384_v30, 1  ;;  %v398_v39 = vrot.slane %v396_v31, 1  ;;  %v4506_v42 = vpack.c.b16 %v360_v32, %v358_v26  ;;  %v4508_v43 = vpack.c.b16 %v361_v33, %v359_v27 }
  0x78   :  { %v435_v40 = vunpack.c.l.b16 %v348_v34  ;;  %v436_v41 = vunpack.c.h.b16 %v348_v34 }
  0x79   :  { %v387_v47 = vor.u32 %v386_v37, %v382_v36  ;;  %v399_v48 = vor.u32 %v398_v39, %v394_v38  ;;  %v408_v54 = vshll.u32 %v4506_v42, 16  ;;  %v420_v55 = vshll.u32 %v4508_v43, 16 }
  0x7a   :  { %v439_v44 = vpack.c.b16 %v356_v15, %v435_v40  ;;  %v440_v45 = vpack.c.b16 %v357_v16, %v436_v41  ;;  %v346_v46 = vld [vmem:[#allocation2 + $0x18] sm:$0x11]  ;;  %v406_v7 = vshrl.u32 %v4506_v42, 16  ;;  %v418_v9 = vshrl.u32 %v4508_v43, 16 }
  0x7b   :  { %v372_v49 = vunpack.c.l.b16 %v346_v46  ;;  %v373_v50 = vunpack.c.h.b16 %v346_v46  ;;  %v349_v51 = vld [vmem:[#allocation2 + $0x10] sm:$0xee]  ;;  %v410_v8 = vrot.slane %v408_v54, 1  ;;  %v422_v10 = vrot.slane %v420_v55, 1 }
  0x7c   :  { %v437_v52 = vunpack.c.l.b16 %v349_v51  ;;  %v438_v53 = vunpack.c.h.b16 %v349_v51  ;;  %v444_v56 = vrot.slane %v439_v44, 1  ;;  %v447_v57 = vrot.slane %v440_v45, 1  ;;  %v347_v61 = vld [vmem:[#allocation2] sm:$0x11] }
  0x7d   :  { %v376_v58 = vpack.c.b16 %v372_v49, %v372_v49  ;;  %v377_v60 = vpack.c.b16 %v373_v50, %v373_v50  ;;  %v374_v0 = vunpack.c.l.b16 %v347_v61  ;;  %v375_v2 = vunpack.c.h.b16 %v347_v61 }
  0x7e   :  { %v441_v62 = vpack.c.b16 %v360_v32, %v437_v52  ;;  %v442_v63 = vpack.c.b16 %v361_v33, %v438_v53  ;;  %v411_v27 = vor.u32 %v410_v8, %v406_v7  ;;  %v423_v28 = vor.u32 %v422_v10, %v418_v9 }
  0x7f   :  { %v389_v3 = vshll.u32 %v376_v58, 16  ;;  %v401_v4 = vshll.u32 %v377_v60, 16  ;;  %v445_v5 = vrot.slane %v376_v58, 1  ;;  %v448_v6 = vrot.slane %v377_v60, 1 }
  0x80   :  { %v450_v15 = vrot.slane %v441_v62, 1  ;;  %v453_v16 = vrot.slane %v442_v63, 1  ;;  %v378_v17 = vpack.c.b16 %v374_v0, %v374_v0  ;;  %v379_v18 = vpack.c.b16 %v375_v2, %v375_v2 }
  0x81   :  { %v391_v11 = vrot.slane %v389_v3, 1  ;;  %v403_v12 = vrot.slane %v401_v4, 1  ;;  %v4515_v13 = vsel %vm443_vm5, %v444_v56, %v445_v5  ;;  %v4518_v14 = vsel %vm443_vm5, %v447_v57, %v448_v6 }
  0x82   :  { %v413_v21 = vshll.u32 %v378_v17, 16  ;;  %v425_v22 = vshll.u32 %v379_v18, 16  ;;  %v451_v23 = vrot.slane %v378_v17, 1  ;;  %v454_v26 = vrot.slane %v379_v18, 1 }
  0x83   :  { %v4521_v19 = vsel %vm380_vm1, %v387_v47, %v391_v11  ;;  %v4524_v20 = vsel %vm380_vm1, %v399_v48, %v403_v12 }
  0x84   :  { %v415_v29 = vrot.slane %v413_v21, 1  ;;  %v427_v30 = vrot.slane %v425_v22, 1  ;;  %v4527_v31 = vsel %vm443_vm5, %v450_v15, %v451_v23  ;;  %v4530_v32 = vsel %vm443_vm5, %v453_v16, %v454_v26 }
  0x86   :  { %v4533_v33 = vsel %vm380_vm1, %v411_v27, %v415_v29  ;;  %v4536_v34 = vsel %vm380_vm1, %v423_v28, %v427_v30 }
  0x87   :  { %4072 = dma.done.wait [#allocation4], 12288 }
  0x88   :  { %4073 = vsyncadd [#allocation4], 4294955008  ;;  %v2996_v36 = vld [vmem:[%s5191_s1 + $0x300] sm:$0xff]  ;;  %v2997_v37 = vld [vmem:[%s5191_s1 + $0x308] sm:$0xff] }
  0x89   :  { %v2998_v38 = vld [vmem:[%s5191_s1 + $0x310] sm:$0xff]  ;;  %478 = vst [vmem:[#allocation3 + $0x300] sm:$0xff] %v2996_v36  ;;  %v2999_v39 = vld [vmem:[%s5191_s1 + $0x318] sm:$0xff]  ;;  %v3000_v40 = vld [vmem:[%s5191_s1 + $0x320] sm:$0xff] }
  0x8a   :  { %480 = vst [vmem:[#allocation3 + $0x308] sm:$0xff] %v2997_v37  ;;  %v3001_v41 = vld [vmem:[%s5191_s1 + $0x328] sm:$0xff]  ;;  %v3002_v44 = vld [vmem:[%s5191_s1 + $0x330] sm:$0xff]  ;;  %v3003_v45 = vld [vmem:[%s5191_s1 + $0x338] sm:$0xff] }
  0x8b   :  { %482 = vst [vmem:[#allocation3 + $0x310] sm:$0xff] %v2998_v38  ;;  %v3004_v46 = vld [vmem:[%s5191_s1 + $0x340] sm:$0xff]  ;;  %v3005_v47 = vld [vmem:[%s5191_s1 + $0x348] sm:$0xff]  ;;  %v3006_v48 = vld [vmem:[%s5191_s1 + $0x350] sm:$0xff] }
  0x8c   :  { %484 = vst [vmem:[#allocation3 + $0x318] sm:$0xff] %v2999_v39  ;;  %v3007_v49 = vld [vmem:[%s5191_s1 + $0x358] sm:$0xff]  ;;  %v3008_v50 = vld [vmem:[%s5191_s1 + $0x360] sm:$0xff]  ;;  %v3009_v51 = vld [vmem:[%s5191_s1 + $0x368] sm:$0xff] }
  0x8d   :  { %486 = vst [vmem:[#allocation3 + $0x320] sm:$0xff] %v3000_v40  ;;  %v3010_v52 = vld [vmem:[%s5191_s1 + $0x370] sm:$0xff]  ;;  %v3011_v53 = vld [vmem:[%s5191_s1 + $0x378] sm:$0xff]  ;;  %v3012_v54 = vld [vmem:[%s5191_s1 + $0x380] sm:$0xff] }
  0x8e   :  { %488 = vst [vmem:[#allocation3 + $0x328] sm:$0xff] %v3001_v41  ;;  %v3013_v55 = vld [vmem:[%s5191_s1 + $0x388] sm:$0xff]  ;;  %v3014_v56 = vld [vmem:[%s5191_s1 + $0x390] sm:$0xff]  ;;  %v3015_v57 = vld [vmem:[%s5191_s1 + $0x398] sm:$0xff] }
  0x8f   :  { %490 = vst [vmem:[#allocation3 + $0x330] sm:$0xff] %v3002_v44  ;;  %v3016_v58 = vld [vmem:[%s5191_s1 + $0x3a0] sm:$0xff]  ;;  %v3017_v60 = vld [vmem:[%s5191_s1 + $0x3a8] sm:$0xff]  ;;  %v3018_v61 = vld [vmem:[%s5191_s1 + $0x3b0] sm:$0xff] }
  0x90   :  { %492 = vst [vmem:[#allocation3 + $0x338] sm:$0xff] %v3003_v45  ;;  %v3019_v62 = vld [vmem:[%s5191_s1 + $0x3b8] sm:$0xff]  ;;  %v3020_v63 = vld [vmem:[%s5191_s1 + $0x3c0] sm:$0xff]  ;;  %v3021_v0 = vld [vmem:[%s5191_s1 + $0x3c8] sm:$0xff] }
  0x91   :  { %494 = vst [vmem:[#allocation3 + $0x340] sm:$0xff] %v3004_v46  ;;  %v3022_v2 = vld [vmem:[%s5191_s1 + $0x3d0] sm:$0xff]  ;;  %v3023_v3 = vld [vmem:[%s5191_s1 + $0x3d8] sm:$0xff]  ;;  %v3024_v4 = vld [vmem:[%s5191_s1 + $0x3e0] sm:$0xff] }
  0x92   :  { %496 = vst [vmem:[#allocation3 + $0x348] sm:$0xff] %v3005_v47  ;;  %v3025_v5 = vld [vmem:[%s5191_s1 + $0x3e8] sm:$0xff]  ;;  %v3026_v6 = vld [vmem:[%s5191_s1 + $0x3f0] sm:$0xff]  ;;  %v3027_v7 = vld [vmem:[%s5191_s1 + $0x3f8] sm:$0xff] }
  0x93   :  { %498 = vst [vmem:[#allocation3 + $0x350] sm:$0xff] %v3006_v48  ;;  %v3028_v8 = vld [vmem:[%s5191_s1 + $0x400] sm:$0xff]  ;;  %v3029_v9 = vld [vmem:[%s5191_s1 + $0x408] sm:$0xff]  ;;  %v3030_v10 = vld [vmem:[%s5191_s1 + $0x410] sm:$0xff] }
  0x94   :  { %500 = vst [vmem:[#allocation3 + $0x358] sm:$0xff] %v3007_v49  ;;  %v3031_v11 = vld [vmem:[%s5191_s1 + $0x418] sm:$0xff]  ;;  %v3032_v12 = vld [vmem:[%s5191_s1 + $0x420] sm:$0xff]  ;;  %v3033_v15 = vld [vmem:[%s5191_s1 + $0x428] sm:$0xff] }
  0x95   :  { %502 = vst [vmem:[#allocation3 + $0x360] sm:$0xff] %v3008_v50  ;;  %v3034_v16 = vld [vmem:[%s5191_s1 + $0x430] sm:$0xff]  ;;  %v3035_v17 = vld [vmem:[%s5191_s1 + $0x438] sm:$0xff]  ;;  %v3036_v18 = vld [vmem:[%s5191_s1 + $0x440] sm:$0xff] }
  0x96   :  { %504 = vst [vmem:[#allocation3 + $0x368] sm:$0xff] %v3009_v51  ;;  %v3037_v21 = vld [vmem:[%s5191_s1 + $0x448] sm:$0xff]  ;;  %v3038_v22 = vld [vmem:[%s5191_s1 + $0x450] sm:$0xff]  ;;  %v3039_v23 = vld [vmem:[%s5191_s1 + $0x458] sm:$0xff] }
  0x97   :  { %506 = vst [vmem:[#allocation3 + $0x370] sm:$0xff] %v3010_v52  ;;  %v3040_v26 = vld [vmem:[%s5191_s1 + $0x460] sm:$0xff]  ;;  %v3041_v27 = vld [vmem:[%s5191_s1 + $0x468] sm:$0xff]  ;;  %v3042_v28 = vld [vmem:[%s5191_s1 + $0x470] sm:$0xff] }
  0x98   :  { %508 = vst [vmem:[#allocation3 + $0x378] sm:$0xff] %v3011_v53  ;;  %v3043_v29 = vld [vmem:[%s5191_s1 + $0x478] sm:$0xff]  ;;  %v3044_v30 = vld [vmem:[%s5191_s1 + $0x480] sm:$0xff]  ;;  %v3045_v36 = vld [vmem:[%s5191_s1 + $0x488] sm:$0xff] }
  0x99   :  { %510 = vst [vmem:[#allocation3 + $0x380] sm:$0xff] %v3012_v54  ;;  %v3046_v37 = vld [vmem:[%s5191_s1 + $0x490] sm:$0xff]  ;;  %v3047_v38 = vld [vmem:[%s5191_s1 + $0x498] sm:$0xff]  ;;  %v3048_v39 = vld [vmem:[%s5191_s1 + $0x4a0] sm:$0xff] }
  0x9a   :  { %512 = vst [vmem:[#allocation3 + $0x388] sm:$0xff] %v3013_v55  ;;  %v3049_v40 = vld [vmem:[%s5191_s1 + $0x4a8] sm:$0xff]  ;;  %v3050_v41 = vld [vmem:[%s5191_s1 + $0x4b0] sm:$0xff]  ;;  %v3051_v44 = vld [vmem:[%s5191_s1 + $0x4b8] sm:$0xff] }
  0x9b   :  { %514 = vst [vmem:[#allocation3 + $0x390] sm:$0xff] %v3014_v56  ;;  %v3052_v45 = vld [vmem:[%s5191_s1 + $0x4c0] sm:$0xff]  ;;  %v3053_v46 = vld [vmem:[%s5191_s1 + $0x4c8] sm:$0xff]  ;;  %v3054_v47 = vld [vmem:[%s5191_s1 + $0x4d0] sm:$0xff] }
  0x9c   :  { %516 = vst [vmem:[#allocation3 + $0x398] sm:$0xff] %v3015_v57  ;;  %v3055_v48 = vld [vmem:[%s5191_s1 + $0x4d8] sm:$0xff]  ;;  %v3056_v49 = vld [vmem:[%s5191_s1 + $0x4e0] sm:$0xff]  ;;  %v3057_v50 = vld [vmem:[%s5191_s1 + $0x4e8] sm:$0xff] }
  0x9d   :  { %518 = vst [vmem:[#allocation3 + $0x3a0] sm:$0xff] %v3016_v58  ;;  %v3058_v51 = vld [vmem:[%s5191_s1 + $0x4f0] sm:$0xff]  ;;  %v3059_v52 = vld [vmem:[%s5191_s1 + $0x4f8] sm:$0xff]  ;;  %v3060_v53 = vld [vmem:[%s5191_s1 + $0x500] sm:$0xff] }
  0x9e   :  { %520 = vst [vmem:[#allocation3 + $0x3a8] sm:$0xff] %v3017_v60  ;;  %v3061_v54 = vld [vmem:[%s5191_s1 + $0x508] sm:$0xff]  ;;  %v3062_v55 = vld [vmem:[%s5191_s1 + $0x510] sm:$0xff]  ;;  %v3063_v56 = vld [vmem:[%s5191_s1 + $0x518] sm:$0xff] }
  0x9f   :  { %522 = vst [vmem:[#allocation3 + $0x3b0] sm:$0xff] %v3018_v61  ;;  %v3064_v57 = vld [vmem:[%s5191_s1 + $0x520] sm:$0xff]  ;;  %v3065_v58 = vld [vmem:[%s5191_s1 + $0x528] sm:$0xff]  ;;  %v3066_v60 = vld [vmem:[%s5191_s1 + $0x530] sm:$0xff] }
  0xa0   :  { %524 = vst [vmem:[#allocation3 + $0x3b8] sm:$0xff] %v3019_v62  ;;  %v3067_v61 = vld [vmem:[%s5191_s1 + $0x538] sm:$0xff]  ;;  %v3068_v62 = vld [vmem:[%s5191_s1 + $0x540] sm:$0xff] }
  0xa1   :  { %526 = vst [vmem:[#allocation3 + $0x3c0] sm:$0xff] %v3020_v63  ;;  %v3069_v63 = vld [vmem:[%s5191_s1 + $0x548] sm:$0xff] }
  0xa2   :  { %528 = vst [vmem:[#allocation3 + $0x3c8] sm:$0xff] %v3021_v0  ;;  %v3070_v0 = vld [vmem:[%s5191_s1 + $0x550] sm:$0xff] }
  0xa3   :  { %530 = vst [vmem:[#allocation3 + $0x3d0] sm:$0xff] %v3022_v2  ;;  %v3071_v2 = vld [vmem:[%s5191_s1 + $0x558] sm:$0xff] }
  0xa4   :  { %532 = vst [vmem:[#allocation3 + $0x3d8] sm:$0xff] %v3023_v3  ;;  %v3072_v3 = vld [vmem:[%s5191_s1 + $0x560] sm:$0xff] }
  0xa5   :  { %534 = vst [vmem:[#allocation3 + $0x3e0] sm:$0xff] %v3024_v4  ;;  %v3073_v4 = vld [vmem:[%s5191_s1 + $0x568] sm:$0xff] }
  0xa6   :  { %536 = vst [vmem:[#allocation3 + $0x3e8] sm:$0xff] %v3025_v5  ;;  %v3074_v5 = vld [vmem:[%s5191_s1 + $0x570] sm:$0xff] }
  0xa7   :  { %538 = vst [vmem:[#allocation3 + $0x3f0] sm:$0xff] %v3026_v6  ;;  %v3075_v6 = vld [vmem:[%s5191_s1 + $0x578] sm:$0xff] }
  0xa8   :  { %540 = vst [vmem:[#allocation3 + $0x3f8] sm:$0xff] %v3027_v7  ;;  %v3076_v7 = vld [vmem:[%s5191_s1 + $0x580] sm:$0xff] }
  0xa9   :  { %542 = vst [vmem:[#allocation3 + $0x400] sm:$0xff] %v3028_v8  ;;  %v3077_v8 = vld [vmem:[%s5191_s1 + $0x588] sm:$0xff] }
  0xaa   :  { %544 = vst [vmem:[#allocation3 + $0x408] sm:$0xff] %v3029_v9  ;;  %v3078_v9 = vld [vmem:[%s5191_s1 + $0x590] sm:$0xff] }
  0xab   :  { %546 = vst [vmem:[#allocation3 + $0x410] sm:$0xff] %v3030_v10  ;;  %v3079_v10 = vld [vmem:[%s5191_s1 + $0x598] sm:$0xff] }
  0xac   :  { %548 = vst [vmem:[#allocation3 + $0x418] sm:$0xff] %v3031_v11  ;;  %v3080_v11 = vld [vmem:[%s5191_s1 + $0x5a0] sm:$0xff] }
  0xad   :  { %550 = vst [vmem:[#allocation3 + $0x420] sm:$0xff] %v3032_v12  ;;  %v3081_v12 = vld [vmem:[%s5191_s1 + $0x5a8] sm:$0xff] }
  0xae   :  { %552 = vst [vmem:[#allocation3 + $0x428] sm:$0xff] %v3033_v15  ;;  %v3082_v15 = vld [vmem:[%s5191_s1 + $0x5b0] sm:$0xff] }
  0xaf   :  { %554 = vst [vmem:[#allocation3 + $0x430] sm:$0xff] %v3034_v16  ;;  %v3083_v16 = vld [vmem:[%s5191_s1 + $0x5b8] sm:$0xff] }
  0xb0   :  { %556 = vst [vmem:[#allocation3 + $0x438] sm:$0xff] %v3035_v17  ;;  %v3084_v17 = vld [vmem:[%s5191_s1 + $0x5c0] sm:$0xff] }
  0xb1   :  { %558 = vst [vmem:[#allocation3 + $0x440] sm:$0xff] %v3036_v18  ;;  %v3085_v18 = vld [vmem:[%s5191_s1 + $0x5c8] sm:$0xff] }
  0xb2   :  { %560 = vst [vmem:[#allocation3 + $0x448] sm:$0xff] %v3037_v21  ;;  %v3086_v21 = vld [vmem:[%s5191_s1 + $0x5d0] sm:$0xff] }
  0xb3   :  { %562 = vst [vmem:[#allocation3 + $0x450] sm:$0xff] %v3038_v22  ;;  %v3087_v22 = vld [vmem:[%s5191_s1 + $0x5d8] sm:$0xff] }
  0xb4   :  { %564 = vst [vmem:[#allocation3 + $0x458] sm:$0xff] %v3039_v23  ;;  %v3088_v23 = vld [vmem:[%s5191_s1 + $0x5e0] sm:$0xff] }
  0xb5   :  { %566 = vst [vmem:[#allocation3 + $0x460] sm:$0xff] %v3040_v26  ;;  %v3089_v26 = vld [vmem:[%s5191_s1 + $0x5e8] sm:$0xff] }
  0xb6   :  { %568 = vst [vmem:[#allocation3 + $0x468] sm:$0xff] %v3041_v27  ;;  %v3090_v27 = vld [vmem:[%s5191_s1 + $0x5f0] sm:$0xff] }
  0xb7   :  { %570 = vst [vmem:[#allocation3 + $0x470] sm:$0xff] %v3042_v28  ;;  %v3091_v28 = vld [vmem:[%s5191_s1 + $0x5f8] sm:$0xff] }
  0xb8   :  { %572 = vst [vmem:[#allocation3 + $0x478] sm:$0xff] %v3043_v29 }
  0xb9   :  { %574 = vst [vmem:[#allocation3 + $0x480] sm:$0xff] %v3044_v30 }
  0xba   :  { %576 = vst [vmem:[#allocation3 + $0x488] sm:$0xff] %v3045_v36 }
  0xbb   :  { %578 = vst [vmem:[#allocation3 + $0x490] sm:$0xff] %v3046_v37 }
  0xbc   :  { %580 = vst [vmem:[#allocation3 + $0x498] sm:$0xff] %v3047_v38 }
  0xbd   :  { %582 = vst [vmem:[#allocation3 + $0x4a0] sm:$0xff] %v3048_v39 }
  0xbe   :  { %584 = vst [vmem:[#allocation3 + $0x4a8] sm:$0xff] %v3049_v40 }
  0xbf   :  { %586 = vst [vmem:[#allocation3 + $0x4b0] sm:$0xff] %v3050_v41 }
  0xc0   :  { %588 = vst [vmem:[#allocation3 + $0x4b8] sm:$0xff] %v3051_v44 }
  0xc1   :  { %590 = vst [vmem:[#allocation3 + $0x4c0] sm:$0xff] %v3052_v45 }
  0xc2   :  { %592 = vst [vmem:[#allocation3 + $0x4c8] sm:$0xff] %v3053_v46 }
  0xc3   :  { %594 = vst [vmem:[#allocation3 + $0x4d0] sm:$0xff] %v3054_v47 }
  0xc4   :  { %596 = vst [vmem:[#allocation3 + $0x4d8] sm:$0xff] %v3055_v48 }
  0xc5   :  { %598 = vst [vmem:[#allocation3 + $0x4e0] sm:$0xff] %v3056_v49 }
  0xc6   :  { %600 = vst [vmem:[#allocation3 + $0x4e8] sm:$0xff] %v3057_v50 }
  0xc7   :  { %602 = vst [vmem:[#allocation3 + $0x4f0] sm:$0xff] %v3058_v51 }
  0xc8   :  { %604 = vst [vmem:[#allocation3 + $0x4f8] sm:$0xff] %v3059_v52 }
  0xc9   :  { %606 = vst [vmem:[#allocation3 + $0x500] sm:$0xff] %v3060_v53 }
  0xca   :  { %608 = vst [vmem:[#allocation3 + $0x508] sm:$0xff] %v3061_v54 }
  0xcb   :  { %610 = vst [vmem:[#allocation3 + $0x510] sm:$0xff] %v3062_v55 }
  0xcc   :  { %612 = vst [vmem:[#allocation3 + $0x518] sm:$0xff] %v3063_v56 }
  0xcd   :  { %614 = vst [vmem:[#allocation3 + $0x520] sm:$0xff] %v3064_v57 }
  0xce   :  { %616 = vst [vmem:[#allocation3 + $0x528] sm:$0xff] %v3065_v58 }
  0xcf   :  { %618 = vst [vmem:[#allocation3 + $0x530] sm:$0xff] %v3066_v60 }
  0xd0   :  { %620 = vst [vmem:[#allocation3 + $0x538] sm:$0xff] %v3067_v61 }
  0xd1   :  { %622 = vst [vmem:[#allocation3 + $0x540] sm:$0xff] %v3068_v62 }
  0xd2   :  { %624 = vst [vmem:[#allocation3 + $0x548] sm:$0xff] %v3069_v63 }
  0xd3   :  { %626 = vst [vmem:[#allocation3 + $0x550] sm:$0xff] %v3070_v0 }
  0xd4   :  { %628 = vst [vmem:[#allocation3 + $0x558] sm:$0xff] %v3071_v2 }
  0xd5   :  { %630 = vst [vmem:[#allocation3 + $0x560] sm:$0xff] %v3072_v3 }
  0xd6   :  { %632 = vst [vmem:[#allocation3 + $0x568] sm:$0xff] %v3073_v4 }
  0xd7   :  { %634 = vst [vmem:[#allocation3 + $0x570] sm:$0xff] %v3074_v5 }
  0xd8   :  { %636 = vst [vmem:[#allocation3 + $0x578] sm:$0xff] %v3075_v6 }
  0xd9   :  { %638 = vst [vmem:[#allocation3 + $0x580] sm:$0xff] %v3076_v7 }
  0xda   :  { %640 = vst [vmem:[#allocation3 + $0x588] sm:$0xff] %v3077_v8 }
  0xdb   :  { %642 = vst [vmem:[#allocation3 + $0x590] sm:$0xff] %v3078_v9 }
  0xdc   :  { %644 = vst [vmem:[#allocation3 + $0x598] sm:$0xff] %v3079_v10 }
  0xdd   :  { %646 = vst [vmem:[#allocation3 + $0x5a0] sm:$0xff] %v3080_v11 }
  0xde   :  { %648 = vst [vmem:[#allocation3 + $0x5a8] sm:$0xff] %v3081_v12 }
  0xdf   :  { %650 = vst [vmem:[#allocation3 + $0x5b0] sm:$0xff] %v3082_v15 }
  0xe0   :  { %652 = vst [vmem:[#allocation3 + $0x5b8] sm:$0xff] %v3083_v16 }
  0xe1   :  { %654 = vst [vmem:[#allocation3 + $0x5c0] sm:$0xff] %v3084_v17 }
  0xe2   :  { %656 = vst [vmem:[#allocation3 + $0x5c8] sm:$0xff] %v3085_v18 }
  0xe3   :  { %658 = vst [vmem:[#allocation3 + $0x5d0] sm:$0xff] %v3086_v21 }
  0xe4   :  { %660 = vst [vmem:[#allocation3 + $0x5d8] sm:$0xff] %v3087_v22 }
  0xe5   :  { %662 = vst [vmem:[#allocation3 + $0x5e0] sm:$0xff] %v3088_v23 }
  0xe6   :  { %664 = vst [vmem:[#allocation3 + $0x5e8] sm:$0xff] %v3089_v26 }
  0xe7   :  { %666 = vst [vmem:[#allocation3 + $0x5f0] sm:$0xff] %v3090_v27 }
  0xe8   :  { %668 = vst [vmem:[#allocation3 + $0x5f8] sm:$0xff] %v3091_v28 }
  0xe9   :  { %674 = vsyncadd [#allocation4 + $0x1], 12288  ;;  %v3150_v29 = vld [vmem:[#allocation3 + $0x70] sm:$0xf]  ;;  %v3882_v30 = vld [vmem:[#allocation3 + $0x74] sm:$0xf0] }
  0xea   :  { %v3151_v36 = vor.u32 %v3882_v30, %v3150_v29  ;;  %v3214_v37 = vld [vmem:[#allocation3 + $0xf0] sm:$0xf]  ;;  %v3898_v38 = vld [vmem:[#allocation3 + $0xf4] sm:$0xf0]  ;;  %v3142_v48 = vld [vmem:[#allocation3 + $0x60] sm:$0xf] }
  0xeb   :  { %v3278_v39 = vld [vmem:[#allocation3 + $0x170] sm:$0xf]  ;;  %v3215_v40 = vor.u32 %v3898_v38, %v3214_v37  ;;  %v3914_v41 = vld [vmem:[#allocation3 + $0x174] sm:$0xf0]  ;;  %v3880_v49 = vld [vmem:[#allocation3 + $0x64] sm:$0xf0] }
  0xec   :  { %v3342_v44 = vld [vmem:[#allocation3 + $0x1f0] sm:$0xf]  ;;  %v3930_v45 = vld [vmem:[#allocation3 + $0x1f4] sm:$0xf0]  ;;  %1251 = vmatpush.bf16.msra.mxu0 %v3151_v36  ;;  %v3279_v46 = vor.u32 %v3914_v41, %v3278_v39  ;;  %v3206_v50 = vld [vmem:[#allocation3 + $0xe0] sm:$0xf]  ;;  %v3143_v51 = vor.u32 %v3880_v49, %v3142_v48 }
  0xed   :  { %v3343_v47 = vor.u32 %v3930_v45, %v3342_v44  ;;  %1270 = vmatpush.bf16.msra.mxu1 %v3215_v40  ;;  %v3896_v52 = vld [vmem:[#allocation3 + $0xe4] sm:$0xf0]  ;;  %v3270_v53 = vld [vmem:[#allocation3 + $0x160] sm:$0xf]  ;;  %v3134_v60 = vld [vmem:[#allocation3 + $0x50] sm:$0xf] }
  0xee   :  { %v3912_v54 = vld [vmem:[#allocation3 + $0x164] sm:$0xf0]  ;;  %1289 = vmatpush.bf16.msra.mxu2 %v3279_v46  ;;  %v3207_v55 = vor.u32 %v3896_v52, %v3206_v50  ;;  %v3334_v57 = vld [vmem:[#allocation3 + $0x1e0] sm:$0xf]  ;;  %v3878_v62 = vld [vmem:[#allocation3 + $0x54] sm:$0xf0] }
  0xef   :  { %1308 = vmatpush.bf16.msra.mxu3 %v3343_v47  ;;  %v3271_v56 = vor.u32 %v3912_v54, %v3270_v53  ;;  %v3928_v58 = vld [vmem:[#allocation3 + $0x1e4] sm:$0xf0]  ;;  %v3198_v63 = vld [vmem:[#allocation3 + $0xd0] sm:$0xf]  ;;  %v3894_v0 = vld [vmem:[#allocation3 + $0xd4] sm:$0xf0]  ;;  %v3135_v2 = vor.u32 %v3878_v62, %v3134_v60 }
  0xf0   :  { %v3335_v61 = vor.u32 %v3928_v58, %v3334_v57  ;;  %1252 = vmatpush.bf16.msra.mxu0 %v3143_v51  ;;  %v3262_v3 = vld [vmem:[#allocation3 + $0x150] sm:$0xf]  ;;  %v3910_v4 = vld [vmem:[#allocation3 + $0x154] sm:$0xf0]  ;;  %v3199_v6 = vor.u32 %v3894_v0, %v3198_v63  ;;  %v3126_v8 = vld [vmem:[#allocation3 + $0x40] sm:$0xf] }
  0xf1   :  { %v3326_v5 = vld [vmem:[#allocation3 + $0x1d0] sm:$0xf]  ;;  %1271 = vmatpush.bf16.msra.mxu1 %v3207_v55  ;;  %v3926_v7 = vld [vmem:[#allocation3 + $0x1d4] sm:$0xf0]  ;;  %v3876_v9 = vld [vmem:[#allocation3 + $0x44] sm:$0xf0]  ;;  %v3263_v10 = vor.u32 %v3910_v4, %v3262_v3 }
  0xf2   :  { %1290 = vmatpush.bf16.msra.mxu2 %v3271_v56  ;;  %v3327_v11 = vor.u32 %v3926_v7, %v3326_v5  ;;  %v3190_v12 = vld [vmem:[#allocation3 + $0xc0] sm:$0xf]  ;;  %v3892_v15 = vld [vmem:[#allocation3 + $0xc4] sm:$0xf0]  ;;  %v3127_v22 = vor.u32 %v3876_v9, %v3126_v8  ;;  %v3118_v26 = vld [vmem:[#allocation3 + $0x30] sm:$0xf] }
  0xf3   :  { %1309 = vmatpush.bf16.msra.mxu3 %v3335_v61  ;;  %v3254_v16 = vld [vmem:[#allocation3 + $0x140] sm:$0xf]  ;;  %v3908_v17 = vld [vmem:[#allocation3 + $0x144] sm:$0xf0]  ;;  %v3191_v23 = vor.u32 %v3892_v15, %v3190_v12  ;;  %v3874_v27 = vld [vmem:[#allocation3 + $0x34] sm:$0xf0] }
  0xf4   :  { %v3318_v18 = vld [vmem:[#allocation3 + $0x1c0] sm:$0xf]  ;;  %v3924_v21 = vld [vmem:[#allocation3 + $0x1c4] sm:$0xf0]  ;;  %1253 = vmatpush.bf16.msra.mxu0 %v3135_v2  ;;  %v3255_v28 = vor.u32 %v3908_v17, %v3254_v16  ;;  %v3182_v30 = vld [vmem:[#allocation3 + $0xb0] sm:$0xf]  ;;  %v3119_v41 = vor.u32 %v3874_v27, %v3118_v26 }
  0xf5   :  { %1272 = vmatpush.bf16.msra.mxu1 %v3199_v6  ;;  %v3319_v29 = vor.u32 %v3924_v21, %v3318_v18  ;;  %v3890_v36 = vld [vmem:[#allocation3 + $0xb4] sm:$0xf0]  ;;  %v3246_v37 = vld [vmem:[#allocation3 + $0x130] sm:$0xf]  ;;  %v3110_v45 = vld [vmem:[#allocation3 + $0x20] sm:$0xf] }
  0xf6   :  { %1291 = vmatpush.bf16.msra.mxu2 %v3263_v10  ;;  %v3906_v38 = vld [vmem:[#allocation3 + $0x134] sm:$0xf0]  ;;  %v3310_v39 = vld [vmem:[#allocation3 + $0x1b0] sm:$0xf]  ;;  %v3183_v44 = vor.u32 %v3890_v36, %v3182_v30  ;;  %v3872_v46 = vld [vmem:[#allocation3 + $0x24] sm:$0xf0] }
  0xf7   :  { %1310 = vmatpush.bf16.msra.mxu3 %v3327_v11  ;;  %v3922_v40 = vld [vmem:[#allocation3 + $0x1b4] sm:$0xf0]  ;;  %v3247_v47 = vor.u32 %v3906_v38, %v3246_v37  ;;  %v3174_v49 = vld [vmem:[#allocation3 + $0xa0] sm:$0xf]  ;;  %v3888_v50 = vld [vmem:[#allocation3 + $0xa4] sm:$0xf0]  ;;  %v3111_v55 = vor.u32 %v3872_v46, %v3110_v45 }
  0xf8   :  { %1254 = vmatpush.bf16.msra.mxu0 %v3127_v22  ;;  %v3311_v48 = vor.u32 %v3922_v40, %v3310_v39  ;;  %v3238_v51 = vld [vmem:[#allocation3 + $0x120] sm:$0xf]  ;;  %v3904_v52 = vld [vmem:[#allocation3 + $0x124] sm:$0xf0]  ;;  %v3175_v56 = vor.u32 %v3888_v50, %v3174_v49  ;;  %v3102_v57 = vld [vmem:[#allocation3 + $0x10] sm:$0xf] }
  0xf9   :  { %1273 = vmatpush.bf16.msra.mxu1 %v3191_v23  ;;  %v3302_v53 = vld [vmem:[#allocation3 + $0x1a0] sm:$0xf]  ;;  %v3920_v54 = vld [vmem:[#allocation3 + $0x1a4] sm:$0xf0]  ;;  %v3870_v58 = vld [vmem:[#allocation3 + $0x14] sm:$0xf0]  ;;  %v3239_v60 = vor.u32 %v3904_v52, %v3238_v51 }
  0xfa   :  { %1292 = vmatpush.bf16.msra.mxu2 %v3255_v28  ;;  %v3303_v61 = vor.u32 %v3920_v54, %v3302_v53  ;;  %v3166_v62 = vld [vmem:[#allocation3 + $0x90] sm:$0xf]  ;;  %v3886_v63 = vld [vmem:[#allocation3 + $0x94] sm:$0xf0]  ;;  %v3103_v5 = vor.u32 %v3870_v58, %v3102_v57  ;;  %v3094_v6 = vld [vmem:[#allocation3] sm:$0xf] }
  0xfb   :  { %1311 = vmatpush.bf16.msra.mxu3 %v3319_v29  ;;  %v3230_v0 = vld [vmem:[#allocation3 + $0x110] sm:$0xf]  ;;  %v3902_v2 = vld [vmem:[#allocation3 + $0x114] sm:$0xf0]  ;;  %v3167_v7 = vor.u32 %v3886_v63, %v3166_v62  ;;  %v3868_v8 = vld [vmem:[#allocation3 + $0x4] sm:$0xf0] }
  0xfc   :  { %1255 = vmatpush.bf16.msra.mxu0 %v3119_v41  ;;  %v3294_v3 = vld [vmem:[#allocation3 + $0x190] sm:$0xf]  ;;  %v3918_v4 = vld [vmem:[#allocation3 + $0x194] sm:$0xf0]  ;;  %v3158_v9 = vld [vmem:[#allocation3 + $0x80] sm:$0xf]  ;;  %v3231_v11 = vor.u32 %v3902_v2, %v3230_v0  ;;  %v3095_v23 = vor.u32 %v3868_v8, %v3094_v6 }
  0xfd   :  { %1274 = vmatpush.bf16.msra.mxu1 %v3183_v44  ;;  %v3884_v10 = vld [vmem:[#allocation3 + $0x84] sm:$0xf0]  ;;  %v3295_v12 = vor.u32 %v3918_v4, %v3294_v3  ;;  %v3222_v15 = vld [vmem:[#allocation3 + $0x100] sm:$0xf]  ;;  %v3406_v16 = vld [vmem:[#allocation3 + $0x270] sm:$0xf] }
  0xfe   :  { %1293 = vmatpush.bf16.msra.mxu2 %v3247_v47  ;;  %v3946_v17 = vld [vmem:[#allocation3 + $0x274] sm:$0xf0]  ;;  %v3900_v18 = vld [vmem:[#allocation3 + $0x104] sm:$0xf0]  ;;  %v3286_v21 = vld [vmem:[#allocation3 + $0x180] sm:$0xf]  ;;  %v3159_v28 = vor.u32 %v3884_v10, %v3158_v9 }
  0xff   :  { %1312 = vmatpush.bf16.msra.mxu3 %v3311_v48  ;;  %v3916_v22 = vld [vmem:[#allocation3 + $0x184] sm:$0xf0]  ;;  %v3881_v26 = vld [vmem:[#allocation3 + $0x74] sm:$0xf]  ;;  %v3152_v27 = vld [vmem:[#allocation3 + $0x78] sm:$0xf0]  ;;  %v3407_v29 = vor.u32 %v3946_v17, %v3406_v16  ;;  %v3223_v37 = vor.u32 %v3900_v18, %v3222_v15 }
 0x100   :  { %1256 = vmatpush.bf16.msra.mxu0 %v3111_v55  ;;  %v3897_v30 = vld [vmem:[#allocation3 + $0xf4] sm:$0xf]  ;;  %v3216_v36 = vld [vmem:[#allocation3 + $0xf8] sm:$0xf0]  ;;  %v3287_v38 = vor.u32 %v3916_v22, %v3286_v21  ;;  %v3470_v39 = vld [vmem:[#allocation3 + $0x2f0] sm:$0xf]  ;;  %v3155_v40 = vor.u32 %v3881_v26, %v3152_v27 }
 0x101   :  { %1275 = vmatpush.bf16.msra.mxu1 %v3175_v56  ;;  %v3962_v41 = vld [vmem:[#allocation3 + $0x2f4] sm:$0xf0]  ;;  %v3398_v44 = vld [vmem:[#allocation3 + $0x260] sm:$0xf]  ;;  %v3944_v45 = vld [vmem:[#allocation3 + $0x264] sm:$0xf0]  ;;  %v3219_v46 = vor.u32 %v3897_v30, %v3216_v36 }
 0x102   :  { %1294 = vmatpush.bf16.msra.mxu2 %v3239_v60  ;;  %v3879_v47 = vld [vmem:[#allocation3 + $0x64] sm:$0xf]  ;;  %v3144_v48 = vld [vmem:[#allocation3 + $0x68] sm:$0xf0]  ;;  %v3471_v51 = vor.u32 %v3962_v41, %v3470_v39  ;;  %v3399_v52 = vor.u32 %v3944_v45, %v3398_v44  ;;  %v3462_v53 = vld [vmem:[#allocation3 + $0x2e0] sm:$0xf] }
 0x103   :  { %1313 = vmatpush.bf16.msra.mxu3 %v3303_v61  ;;  %v3895_v49 = vld [vmem:[#allocation3 + $0xe4] sm:$0xf]  ;;  %v3208_v50 = vld [vmem:[#allocation3 + $0xe8] sm:$0xf0]  ;;  %v3147_v54 = vor.u32 %v3879_v47, %v3144_v48  ;;  %v3960_v55 = vld [vmem:[#allocation3 + $0x2e4] sm:$0xf0] }
 0x104   :  { %1257 = vmatpush.bf16.msra.mxu0 %v3103_v5  ;;  %v3390_v56 = vld [vmem:[#allocation3 + $0x250] sm:$0xf]  ;;  %v3942_v57 = vld [vmem:[#allocation3 + $0x254] sm:$0xf0]  ;;  %v3211_v58 = vor.u32 %v3895_v49, %v3208_v50  ;;  %v3877_v60 = vld [vmem:[#allocation3 + $0x54] sm:$0xf]  ;;  %v3463_v0 = vor.u32 %v3960_v55, %v3462_v53 }
 0x105   :  { %1276 = vmatpush.bf16.msra.mxu1 %v3167_v7  ;;  %v3136_v61 = vld [vmem:[#allocation3 + $0x58] sm:$0xf0]  ;;  %v3893_v62 = vld [vmem:[#allocation3 + $0xd4] sm:$0xf]  ;;  %v3391_v2 = vor.u32 %v3942_v57, %v3390_v56  ;;  %v3454_v3 = vld [vmem:[#allocation3 + $0x2d0] sm:$0xf] }
 0x106   :  { %1295 = vmatpush.bf16.msra.mxu2 %v3231_v11  ;;  %v3200_v63 = vld [vmem:[#allocation3 + $0xd8] sm:$0xf0]  ;;  %v3139_v4 = vor.u32 %v3877_v60, %v3136_v61  ;;  %v3958_v5 = vld [vmem:[#allocation3 + $0x2d4] sm:$0xf0]  ;;  %v3382_v6 = vld [vmem:[#allocation3 + $0x240] sm:$0xf] }
 0x107   :  { %1314 = vmatpush.bf16.msra.mxu3 %v3295_v12  ;;  %v3940_v7 = vld [vmem:[#allocation3 + $0x244] sm:$0xf0]  ;;  %v3203_v8 = vor.u32 %v3893_v62, %v3200_v63  ;;  %v3875_v9 = vld [vmem:[#allocation3 + $0x44] sm:$0xf]  ;;  %v3128_v10 = vld [vmem:[#allocation3 + $0x48] sm:$0xf0]  ;;  %v3455_v15 = vor.u32 %v3958_v5, %v3454_v3 }
 0x108   :  { %1258 = vmatpush.bf16.msra.mxu0 %v3095_v23  ;;  %v3891_v11 = vld [vmem:[#allocation3 + $0xc4] sm:$0xf]  ;;  %v3192_v12 = vld [vmem:[#allocation3 + $0xc8] sm:$0xf0]  ;;  %v3383_v16 = vor.u32 %v3940_v7, %v3382_v6  ;;  %v3446_v17 = vld [vmem:[#allocation3 + $0x2c0] sm:$0xf]  ;;  %v3131_v18 = vor.u32 %v3875_v9, %v3128_v10 }
 0x109   :  { %1277 = vmatpush.bf16.msra.mxu1 %v3159_v28  ;;  %v3956_v21 = vld [vmem:[#allocation3 + $0x2c4] sm:$0xf0]  ;;  %v3374_v22 = vld [vmem:[#allocation3 + $0x230] sm:$0xf]  ;;  %v3938_v23 = vld [vmem:[#allocation3 + $0x234] sm:$0xf0]  ;;  %v3195_v26 = vor.u32 %v3891_v11, %v3192_v12 }
 0x10a   :  { %1296 = vmatpush.bf16.msra.mxu2 %v3223_v37  ;;  %v3873_v27 = vld [vmem:[#allocation3 + $0x34] sm:$0xf]  ;;  %v3120_v28 = vld [vmem:[#allocation3 + $0x38] sm:$0xf0]  ;;  %v3447_v36 = vor.u32 %v3956_v21, %v3446_v17  ;;  %v3375_v37 = vor.u32 %v3938_v23, %v3374_v22  ;;  %v3366_v41 = vld [vmem:[#allocation3 + $0x220] sm:$0xf] }
 0x10b   :  { %1315 = vmatpush.bf16.msra.mxu3 %v3287_v38  ;;  %1259 = vmatmul.bf16.vlgmr.msra.gmra.mxu0 %v4494_v24  ;;  %v3184_v30 = vld [vmem:[#allocation3 + $0xb8] sm:$0xf0]  ;;  %v3438_v38 = vld [vmem:[#allocation3 + $0x2b0] sm:$0xf]  ;;  %v3123_v39 = vor.u32 %v3873_v27, %v3120_v28  ;;  %v3936_v44 = vld [vmem:[#allocation3 + $0x224] sm:$0xf0] }
 0x10c   :  { %1327 = vmatpush.bf16.msrb.mxu0 %v3407_v29  ;;  %1278 = vmatmul.bf16.vlgmr.msra.gmra.mxu1 %v4496_v25  ;;  %v3889_v29 = vld [vmem:[#allocation3 + $0xb4] sm:$0xf]  ;;  %v3112_v47 = vld [vmem:[#allocation3 + $0x28] sm:$0xf0]  ;;  %v3887_v48 = vld [vmem:[#allocation3 + $0xa4] sm:$0xf] }
 0x10d   :  { %1297 = vmatmul.bf16.vlgmr.msra.gmra.mxu2 %v4521_v19  ;;  %1346 = vmatpush.bf16.msrb.mxu1 %v3471_v51  ;;  %v3187_v45 = vor.u32 %v3889_v29, %v3184_v30  ;;  %v3176_v49 = vld [vmem:[#allocation3 + $0xa8] sm:$0xf0]  ;;  %v3367_v51 = vor.u32 %v3936_v44, %v3366_v41  ;;  %v3358_v55 = vld [vmem:[#allocation3 + $0x210] sm:$0xf]  ;;  %v3934_v56 = vld [vmem:[#allocation3 + $0x214] sm:$0xf0] }
 0x10e   :  { %1365 = vmatpush.bf16.msrb.mxu2 %v3155_v40  ;;  %1316 = vmatmul.bf16.vlgmr.msra.gmra.mxu3 %v4524_v20  ;;  %v3954_v40 = vld [vmem:[#allocation3 + $0x2b4] sm:$0xf0]  ;;  %v3179_v57 = vor.u32 %v3887_v48, %v3176_v49  ;;  %v3104_v60 = vld [vmem:[#allocation3 + $0x18] sm:$0xf0]  ;;  %v3885_v61 = vld [vmem:[#allocation3 + $0x94] sm:$0xf] }
 0x10f   :  { %1384 = vmatpush.bf16.msrb.mxu3 %v3219_v46  ;;  %v3871_v46 = vld [vmem:[#allocation3 + $0x24] sm:$0xf]  ;;  %v3439_v50 = vor.u32 %v3954_v40, %v3438_v38  ;;  %v3168_v62 = vld [vmem:[#allocation3 + $0x98] sm:$0xf0]  ;;  %v3950_v3 = vld [vmem:[#allocation3 + $0x294] sm:$0xf0] }
 0x110   :  { %1328 = vmatpush.bf16.msrb.mxu0 %v3399_v52  ;;  %v3430_v52 = vld [vmem:[#allocation3 + $0x2a0] sm:$0xf]  ;;  %v3115_v53 = vor.u32 %v3871_v46, %v3112_v47  ;;  %v3096_v6 = vld [vmem:[#allocation3 + $0x8] sm:$0xf0]  ;;  %v3171_v9 = vor.u32 %v3885_v61, %v3168_v62  ;;  %v3883_v10 = vld [vmem:[#allocation3 + $0x84] sm:$0xf] }
 0x111   :  { %1347 = vmatpush.bf16.msrb.mxu1 %v3463_v0  ;;  %v3359_v0 = vor.u32 %v3934_v56, %v3358_v55  ;;  %v3350_v7 = vld [vmem:[#allocation3 + $0x200] sm:$0xf]  ;;  %v3913_v11 = vld [vmem:[#allocation3 + $0x174] sm:$0xf]  ;;  %v3280_v12 = vld [vmem:[#allocation3 + $0x178] sm:$0xf0] }
 0x112   :  { %1366 = vmatpush.bf16.msrb.mxu2 %v3147_v54  ;;  %v3952_v54 = vld [vmem:[#allocation3 + $0x2a4] sm:$0xf0]  ;;  %v3408_v17 = vld [vmem:[#allocation3 + $0x278] sm:$0xf0]  ;;  %v3961_v22 = vld [vmem:[#allocation3 + $0x2f4] sm:$0xf]  ;;  %v3283_v29 = vor.u32 %v3913_v11, %v3280_v12 }
 0x113   :  { %1385 = vmatpush.bf16.msrb.mxu3 %v3211_v58  ;;  %v3869_v58 = vld [vmem:[#allocation3 + $0x14] sm:$0xf]  ;;  %v3431_v63 = vor.u32 %v3952_v54, %v3430_v52  ;;  %v3472_v23 = vld [vmem:[#allocation3 + $0x2f8] sm:$0xf0]  ;;  %v3414_v27 = vld [vmem:[#allocation3 + $0x280] sm:$0xf] }
 0x114   :  { %1329 = vmatpush.bf16.msrb.mxu0 %v3391_v2  ;;  %v3422_v2 = vld [vmem:[#allocation3 + $0x290] sm:$0xf]  ;;  %v3107_v5 = vor.u32 %v3869_v58, %v3104_v60  ;;  %v3948_v28 = vld [vmem:[#allocation3 + $0x284] sm:$0xf0]  ;;  %v3344_v38 = vld [vmem:[#allocation3 + $0x1f8] sm:$0xf0]  ;;  %v3475_v40 = vor.u32 %v3961_v22, %v3472_v23 }
 0x115   :  { %1348 = vmatpush.bf16.msrb.mxu1 %v3455_v15  ;;  %v3160_v15 = vld [vmem:[#allocation3 + $0x88] sm:$0xf0]  ;;  %v3911_v44 = vld [vmem:[#allocation3 + $0x164] sm:$0xf]  ;;  %v3415_v46 = vor.u32 %v3948_v28, %v3414_v27  ;;  %v3941_v54 = vld [vmem:[#allocation3 + $0x254] sm:$0xf] }
 0x116   :  { %1367 = vmatpush.bf16.msrb.mxu2 %v3139_v4  ;;  %v3867_v4 = vld [vmem:[#allocation3 + $0x4] sm:$0xf]  ;;  %v3163_v30 = vor.u32 %v3883_v10, %v3160_v15  ;;  %v3400_v41 = vld [vmem:[#allocation3 + $0x268] sm:$0xf0]  ;;  %v3392_v55 = vld [vmem:[#allocation3 + $0x258] sm:$0xf0] }
 0x117   :  { %1386 = vmatpush.bf16.msrb.mxu3 %v3203_v8  ;;  %v3932_v8 = vld [vmem:[#allocation3 + $0x204] sm:$0xf0]  ;;  %v3927_v48 = vld [vmem:[#allocation3 + $0x1e4] sm:$0xf]  ;;  %v3336_v49 = vld [vmem:[#allocation3 + $0x1e8] sm:$0xf0] }
 0x118   :  { %1330 = vmatpush.bf16.msrb.mxu0 %v3383_v16  ;;  %v3945_v16 = vld [vmem:[#allocation3 + $0x274] sm:$0xf]  ;;  %v3351_v21 = vor.u32 %v3932_v8, %v3350_v7  ;;  %v3959_v52 = vld [vmem:[#allocation3 + $0x2e4] sm:$0xf]  ;;  %v3339_v58 = vor.u32 %v3927_v48, %v3336_v49  ;;  %v3328_v62 = vld [vmem:[#allocation3 + $0x1d8] sm:$0xf0] }
 0x119   :  { %1349 = vmatpush.bf16.msrb.mxu1 %v3447_v36  ;;  %v3411_v36 = vor.u32 %v3945_v16, %v3408_v17  ;;  %v3909_v56 = vld [vmem:[#allocation3 + $0x154] sm:$0xf]  ;;  %v3256_v7 = vld [vmem:[#allocation3 + $0x148] sm:$0xf0]  ;;  %v3923_v10 = vld [vmem:[#allocation3 + $0x1c4] sm:$0xf] }
 0x11a   :  { %1368 = vmatpush.bf16.msrb.mxu2 %v3131_v18  ;;  %v3423_v18 = vor.u32 %v3950_v3, %v3422_v2  ;;  %v3925_v61 = vld [vmem:[#allocation3 + $0x1d4] sm:$0xf]  ;;  %v3456_v3 = vld [vmem:[#allocation3 + $0x2d8] sm:$0xf0]  ;;  %v3320_v11 = vld [vmem:[#allocation3 + $0x1c8] sm:$0xf0] }
 0x11b   :  { %1387 = vmatpush.bf16.msrb.mxu3 %v3195_v26  ;;  %1264 = vmatmul.bf16.gmra.mxu0 %v4506_v42  ;;  %v3099_v26 = vor.u32 %v3867_v4, %v3096_v6  ;;  %v3957_v2 = vld [vmem:[#allocation3 + $0x2d4] sm:$0xf]  ;;  %v3939_v4 = vld [vmem:[#allocation3 + $0x244] sm:$0xf]  ;;  %v3331_v8 = vor.u32 %v3925_v61, %v3328_v62  ;;  %v3448_v17 = vld [vmem:[#allocation3 + $0x2c8] sm:$0xf0]  ;;  %v3323_v23 = vor.u32 %v3923_v10, %v3320_v11 }
 0x11c   :  { %1331 = vmatpush.bf16.msrb.mxu0 %v3375_v37  ;;  %1283 = vmatmul.bf16.gmra.mxu1 %v4508_v43  ;;  %v3929_v37 = vld [vmem:[#allocation3 + $0x1f4] sm:$0xf]  ;;  %v3907_v6 = vld [vmem:[#allocation3 + $0x144] sm:$0xf]  ;;  %v3248_v22 = vld [vmem:[#allocation3 + $0x138] sm:$0xf0] }
 0x11d   :  { %1302 = vmatmul.bf16.gmra.mxu2 %v4533_v33  ;;  %1350 = vmatpush.bf16.msrb.mxu1 %v3439_v50  ;;  %v3347_v47 = vor.u32 %v3929_v37, %v3344_v38  ;;  %v3259_v15 = vor.u32 %v3907_v6, %v3256_v7  ;;  %v3955_v16 = vld [vmem:[#allocation3 + $0x2c4] sm:$0xf]  ;;  %v3921_v28 = vld [vmem:[#allocation3 + $0x1b4] sm:$0xf]  ;;  %v3368_v38 = vld [vmem:[#allocation3 + $0x228] sm:$0xf0] }
 0x11e   :  { %1369 = vmatpush.bf16.msrb.mxu2 %v3123_v39  ;;  %1321 = vmatmul.bf16.gmra.mxu3 %v4536_v34  ;;  %v3943_v39 = vld [vmem:[#allocation3 + $0x264] sm:$0xf]  ;;  %v3432_v49 = vld [vmem:[#allocation3 + $0x2a8] sm:$0xf0]  ;;  %v3949_v61 = vld [vmem:[#allocation3 + $0x294] sm:$0xf] }
 0x11f   :  { %1388 = vmatpush.bf16.msrb.mxu3 %v3187_v45  ;;  %v3272_v45 = vld [vmem:[#allocation3 + $0x168] sm:$0xf0]  ;;  %v3403_v50 = vor.u32 %v3943_v39, %v3400_v41  ;;  %v3935_v37 = vld [vmem:[#allocation3 + $0x224] sm:$0xf]  ;;  %v3424_v62 = vld [vmem:[#allocation3 + $0x298] sm:$0xf0] }
 0x120   :  { %1332 = vmatpush.bf16.msrb.mxu0 %v3367_v51  ;;  %v3275_v51 = vor.u32 %v3911_v44, %v3272_v45  ;;  %v3240_v41 = vld [vmem:[#allocation3 + $0x128] sm:$0xf0]  ;;  %v3371_v45 = vor.u32 %v3935_v37, %v3368_v38  ;;  %v3951_v48 = vld [vmem:[#allocation3 + $0x2a4] sm:$0xf]  ;;  %v3427_v6 = vor.u32 %v3949_v61, %v3424_v62  ;;  %s4076_s1 = smov 16   ;;  %s4077_s18 = smov 32  }
 0x121   :  { %1351 = vmatpush.bf16.msrb.mxu1 %v3431_v63  ;;  %v3395_v63 = vor.u32 %v3941_v54, %v3392_v55  ;;  %v3901_v54 = vld [vmem:[#allocation3 + $0x114] sm:$0xf]  ;;  %v3232_v55 = vld [vmem:[#allocation3 + $0x118] sm:$0xf0]  ;;  %v3947_v10 = vld [vmem:[#allocation3 + $0x284] sm:$0xf] }
 0x122   :  { %1370 = vmatpush.bf16.msrb.mxu2 %v3115_v53  ;;  %v3464_v53 = vld [vmem:[#allocation3 + $0x2e8] sm:$0xf0]  ;;  %s4078_s19 = smov 64  }
 0x123   :  { %1389 = vmatpush.bf16.msrb.mxu3 %v3179_v57  ;;  %v3264_v57 = vld [vmem:[#allocation3 + $0x158] sm:$0xf0]  ;;  %v3467_v60 = vor.u32 %v3959_v52, %v3464_v53  ;;  %v3416_v11 = vld [vmem:[#allocation3 + $0x288] sm:$0xf0] }
 0x124   :  { %1333 = vmatpush.bf16.msrb.mxu0 %v3359_v0  ;;  %v3267_v0 = vor.u32 %v3909_v56, %v3264_v57  ;;  %v3435_v56 = vor.u32 %v3951_v48, %v3432_v49 }
 0x125   :  { %1352 = vmatpush.bf16.msrb.mxu1 %v3423_v18  ;;  %v3937_v18 = vld [vmem:[#allocation3 + $0x234] sm:$0xf] }
 0x126   :  { %1371 = vmatpush.bf16.msrb.mxu2 %v3107_v5  ;;  %v3384_v5 = vld [vmem:[#allocation3 + $0x248] sm:$0xf0] }
 0x127   :  { %1390 = vmatpush.bf16.msrb.mxu3 %v3171_v9  ;;  %v3459_v9 = vor.u32 %v3957_v2, %v3456_v3  ;;  %v3387_v12 = vor.u32 %v3939_v4, %v3384_v5  ;;  %v3235_v2 = vor.u32 %v3901_v54, %v3232_v55  ;;  %v3899_v4 = vld [vmem:[#allocation3 + $0x104] sm:$0xf]  ;;  %v3224_v5 = vld [vmem:[#allocation3 + $0x108] sm:$0xf0] }
 0x128   :  { %1334 = vmatpush.bf16.msrb.mxu0 %v3351_v21  ;;  %v3376_v21 = vld [vmem:[#allocation3 + $0x238] sm:$0xf0] }
 0x129   :  { %1353 = vmatpush.bf16.msrb.mxu1 %v3415_v46  ;;  %v3919_v46 = vld [vmem:[#allocation3 + $0x1a4] sm:$0xf] }
 0x12a   :  { %1372 = vmatpush.bf16.msrb.mxu2 %v3099_v26  ;;  %v3379_v26 = vor.u32 %v3937_v18, %v3376_v21 }
 0x12b   :  { %1391 = vmatpush.bf16.msrb.mxu3 %v3163_v30  ;;  %1335 = vmatmul.bf16.vlgmr.msrb.gmra.mxu0 %v4515_v13  ;;  %v3953_v30 = vld [vmem:[#allocation3 + $0x2b4] sm:$0xf] }
 0x12c   :  { %1403 = vmatpush.bf16.msra.mxu0 %v3283_v29  ;;  %1354 = vmatmul.bf16.vlgmr.msrb.gmra.mxu1 %v4518_v14  ;;  %v3312_v29 = vld [vmem:[#allocation3 + $0x1b8] sm:$0xf0] }
 0x12d   :  { %1422 = vmatpush.bf16.msra.mxu1 %v3347_v47  ;;  %1373 = vmatmul.bf16.vlgmr.msrb.gmra.mxu2 %v4494_v24  ;;  %v3905_v24 = vld [vmem:[#allocation3 + $0x134] sm:$0xf]  ;;  %v3315_v39 = vor.u32 %v3921_v28, %v3312_v29  ;;  %v3304_v47 = vld [vmem:[#allocation3 + $0x1a8] sm:$0xf0] }
 0x12e   :  { %1441 = vmatpush.bf16.msra.mxu2 %v3411_v36  ;;  %1392 = vmatmul.bf16.vlgmr.msrb.gmra.mxu3 %v4496_v25  ;;  %v3451_v25 = vor.u32 %v3955_v16, %v3448_v17  ;;  %v3251_v27 = vor.u32 %v3905_v24, %v3248_v22  ;;  %v3440_v36 = vld [vmem:[#allocation3 + $0x2b8] sm:$0xf0]  ;;  %v3307_v53 = vor.u32 %v3919_v46, %v3304_v47 }
 0x12f   :  { %1460 = vmatpush.bf16.msra.mxu3 %v3475_v40  ;;  %v3903_v40 = vld [vmem:[#allocation3 + $0x124] sm:$0xf]  ;;  %v3443_v44 = vor.u32 %v3953_v30, %v3440_v36 }
 0x130   :  { %1404 = vmatpush.bf16.msra.mxu0 %v3275_v51  ;;  %v3360_v51 = vld [vmem:[#allocation3 + $0x218] sm:$0xf0]  ;;  %v3243_v52 = vor.u32 %v3903_v40, %v3240_v41 }
 0x131   :  { %1423 = vmatpush.bf16.msra.mxu1 %v3339_v58  ;;  %v3917_v58 = vld [vmem:[#allocation3 + $0x194] sm:$0xf] }
 0x132   :  { %1442 = vmatpush.bf16.msra.mxu2 %v3403_v50  ;;  %v3933_v50 = vld [vmem:[#allocation3 + $0x214] sm:$0xf] }
 0x133   :  { %1461 = vmatpush.bf16.msra.mxu3 %v3467_v60  ;;  %v3363_v57 = vor.u32 %v3933_v50, %v3360_v51  ;;  %v3296_v60 = vld [vmem:[#allocation3 + $0x198] sm:$0xf0] }
 0x134   :  { %1405 = vmatpush.bf16.msra.mxu0 %v3267_v0  ;;  %v3352_v0 = vld [vmem:[#allocation3 + $0x208] sm:$0xf0]  ;;  %v3299_v3 = vor.u32 %v3917_v58, %v3296_v60 }
 0x135   :  { %1424 = vmatpush.bf16.msra.mxu1 %v3331_v8  ;;  %v3915_v8 = vld [vmem:[#allocation3 + $0x184] sm:$0xf] }
 0x136   :  { %1443 = vmatpush.bf16.msra.mxu2 %v3395_v63  ;;  %v3931_v63 = vld [vmem:[#allocation3 + $0x204] sm:$0xf] }
 0x137   :  { %1462 = vmatpush.bf16.msra.mxu3 %v3459_v9  ;;  %v3355_v7 = vor.u32 %v3931_v63, %v3352_v0  ;;  %v3288_v9 = vld [vmem:[#allocation3 + $0x188] sm:$0xf0] }
 0x138   :  { %1406 = vmatpush.bf16.msra.mxu0 %v3259_v15 }
 0x139   :  { %1425 = vmatpush.bf16.msra.mxu1 %v3323_v23 }
 0x13a   :  { %1444 = vmatpush.bf16.msra.mxu2 %v3387_v12  ;;  %v3291_v12 = vor.u32 %v3915_v8, %v3288_v9 }
 0x13b   :  { %1463 = vmatpush.bf16.msra.mxu3 %v3451_v25  ;;  %1340 = vmatmul.bf16.gmra.mxu0 %v4527_v31 }
 0x13c   :  { %1407 = vmatpush.bf16.msra.mxu0 %v3251_v27  ;;  %1359 = vmatmul.bf16.gmra.mxu1 %v4530_v32 }
 0x13d   :  { %1426 = vmatpush.bf16.msra.mxu1 %v3315_v39  ;;  %1378 = vmatmul.bf16.gmra.mxu2 %v4506_v42  ;;  %v3227_v42 = vor.u32 %v3899_v4, %v3224_v5 }
 0x13e   :  { %1445 = vmatpush.bf16.msra.mxu2 %v3379_v26  ;;  %1397 = vmatmul.bf16.gmra.mxu3 %v4508_v43  ;;  %v3419_v43 = vor.u32 %v3947_v10, %v3416_v11 }
 0x13f   :  { %1464 = vmatpush.bf16.msra.mxu3 %v3443_v44 }
 0x140   :  { %1408 = vmatpush.bf16.msra.mxu0 %v3243_v52 }
 0x141   :  { %1427 = vmatpush.bf16.msra.mxu1 %v3307_v53 }
 0x142   :  { %1446 = vmatpush.bf16.msra.mxu2 %v3371_v45 }
 0x143   :  { %1465 = vmatpush.bf16.msra.mxu3 %v3435_v56 }
 0x144   :  { %1409 = vmatpush.bf16.msra.mxu0 %v3235_v2 }
 0x145   :  { %1428 = vmatpush.bf16.msra.mxu1 %v3299_v3 }
 0x146   :  { %1447 = vmatpush.bf16.msra.mxu2 %v3363_v57 }
 0x147   :  { %1466 = vmatpush.bf16.msra.mxu3 %v3427_v6 }
 0x148   :  { %1410 = vmatpush.bf16.msra.mxu0 %v3227_v42 }
 0x149   :  { %1429 = vmatpush.bf16.msra.mxu1 %v3291_v12 }
 0x14a   :  { %1448 = vmatpush.bf16.msra.mxu2 %v3355_v7 }
 0x14b   :  { %1467 = vmatpush.bf16.msra.mxu3 %v3419_v43  ;;  %1411 = vmatmul.bf16.vlgmr.msra.gmra.mxu0 %v4521_v19 }
 0x14c   :  { %1430 = vmatmul.bf16.vlgmr.msra.gmra.mxu1 %v4524_v20 }
 0x14d   :  { %1449 = vmatmul.bf16.vlgmr.msra.gmra.mxu2 %v4515_v13 }
 0x14e   :  { %1468 = vmatmul.bf16.vlgmr.msra.gmra.mxu3 %v4518_v14 }
 0x15b   :  { %1416 = vmatmul.bf16.gmra.mxu0 %v4533_v33 }
 0x15c   :  { %1435 = vmatmul.bf16.gmra.mxu1 %v4536_v34 }
 0x15d   :  { %1454 = vmatmul.bf16.gmra.mxu2 %v4527_v31 }
 0x15e   :  { %1473 = vmatmul.bf16.gmra.mxu3 %v4530_v32 }
 0x188   :  { %v1260_v15 = vpop.f32.mrf.mxu0 }
 0x189   :  { %v1279_v16 = vpop.f32.mrf.mxu1 }
 0x18a   :  { %v1280_v36 = vadd.f32 %v1279_v16, %v1260_v15 }
 0x190   :  { %v1298_v17 = vpop.f32.mrf.mxu2  ;;  %v1262_v21 = vpop.f32.mrf.mxu0 }
 0x191   :  { %v1317_v18 = vpop.f32.mrf.mxu3  ;;  %v1281_v19 = vpop.f32.mrf.mxu1  ;;  %v1299_v40 = vadd.f32 %v1298_v17, %v1280_v36 }
 0x192   :  { %v1282_v28 = vadd.f32 %v1281_v19, %v1262_v21 }
 0x193   :  { %v1318_v45 = vadd.f32 %v1317_v18, %v1299_v40 }
 0x198   :  { %v1300_v24 = vpop.f32.mrf.mxu2  ;;  %v1265_v22 = vpop.f32.mrf.mxu0 }
 0x199   :  { %v1319_v20 = vpop.f32.mrf.mxu3  ;;  %v1284_v13 = vpop.f32.mrf.mxu1  ;;  %v1301_v37 = vadd.f32 %v1300_v24, %v1282_v28 }
 0x19a   :  { %v1285_v38 = vadd.f32 %v1284_v13, %v1265_v22 }
 0x19b   :  { %v1320_v44 = vadd.f32 %v1319_v20, %v1301_v37 }
 0x1a0   :  { %v1303_v23 = vpop.f32.mrf.mxu2  ;;  %v1267_v25 = vpop.f32.mrf.mxu0 }
 0x1a1   :  { %v1322_v14 = vpop.f32.mrf.mxu3  ;;  %v1286_v33 = vpop.f32.mrf.mxu1  ;;  %v1304_v41 = vadd.f32 %v1303_v23, %v1285_v38 }
 0x1a2   :  { %v1287_v51 = vadd.f32 %v1286_v33, %v1267_v25 }
 0x1a3   :  { %v1323_v46 = vadd.f32 %v1322_v14, %v1304_v41 }
 0x1a8   :  { %v1305_v26 = vpop.f32.mrf.mxu2  ;;  %v1336_v27 = vpop.f32.mrf.mxu0 }
 0x1a9   :  { %v1324_v34 = vpop.f32.mrf.mxu3  ;;  %v1355_v31 = vpop.f32.mrf.mxu1  ;;  %v1337_v52 = vadd.f32 %v1336_v27, %v1318_v45  ;;  %v1306_v55 = vadd.f32 %v1305_v26, %v1287_v51 }
 0x1ab   :  { %v4856_v57 = vadd.f32 %v1355_v31, %v1337_v52  ;;  %v1325_v60 = vadd.f32 %v1324_v34, %v1306_v55 }
 0x1ad   :  { %v1497_v2 = vmul.f32 %v4856_v57, %v4856_v57 }
 0x1b0   :  { %v4850_v32 = vpop.f32.mrf.mxu2  ;;  %v1338_v30 = vpop.f32.mrf.mxu0 }
 0x1b1   :  { %v4852_v29 = vpop.f32.mrf.mxu3  ;;  %v1357_v39 = vpop.f32.mrf.mxu1  ;;  %v1339_v47 = vadd.f32 %v1338_v30, %v1320_v44 }
 0x1b2   :  { %v1394_v38 = vadd.f32 %v4852_v29, %v4850_v32 }
 0x1b3   :  { %v4854_v56 = vadd.f32 %v1357_v39, %v1339_v47 }
 0x1b5   :  { %v1499_v61 = vmul.f32 %v4854_v56, %v4854_v56  ;;  %v1479_v3 = vadd.f32 %v4854_v56, %v4856_v57 }
 0x1b7   :  { %v1505_v7 = vadd.f32 %v1499_v61, %v1497_v2 }
 0x1b8   :  { %v1376_v48 = vpop.f32.mrf.mxu2  ;;  %v1341_v50 = vpop.f32.mrf.mxu0 }
 0x1b9   :  { %v1395_v49 = vpop.f32.mrf.mxu3  ;;  %v1342_v53 = vadd.f32 %v1341_v50, %v1323_v46  ;;  %v1360_v54 = vpop.f32.mrf.mxu1 }
 0x1ba   :  { %v1396_v36 = vadd.f32 %v1395_v49, %v1376_v48 }
 0x1bb   :  { %v4858_v58 = vadd.f32 %v1360_v54, %v1342_v53 }
 0x1bd   :  { %v1501_v4 = vmul.f32 %v4858_v58, %v4858_v58  ;;  %v1480_v8 = vadd.f32 %v1479_v3, %v4858_v58 }
 0x1bf   :  { %v1506_v10 = vadd.f32 %v1505_v7, %v1501_v4 }
 0x1c0   :  { %v1379_v62 = vpop.f32.mrf.mxu2  ;;  %v1343_v0 = vpop.f32.mrf.mxu0 }
 0x1c1   :  { %v1398_v63 = vpop.f32.mrf.mxu3  ;;  %v1344_v5 = vadd.f32 %v1343_v0, %v1325_v60  ;;  %v1362_v6 = vpop.f32.mrf.mxu1 }
 0x1c2   :  { %v1399_v39 = vadd.f32 %v1398_v63, %v1379_v62 }
 0x1c3   :  { %v4869_v9 = vadd.f32 %v1362_v6, %v1344_v5 }
 0x1c5   :  { %v1481_v11 = vadd.f32 %v1480_v8, %v4869_v9  ;;  %v1503_v42 = vmul.f32 %v4869_v9, %v4869_v9 }
 0x1c7   :  { %v1482_v12 = vrot.slane %v1481_v11, 4  ;;  %v1507_v43 = vadd.f32 %v1506_v10, %v1503_v42 }
 0x1c8   :  { %v1381_v15 = vpop.f32.mrf.mxu2  ;;  %v1412_v17 = vpop.f32.mrf.mxu0 }
 0x1c9   :  { %v1400_v16 = vpop.f32.mrf.mxu3  ;;  %v1431_v18 = vpop.f32.mrf.mxu1  ;;  %v1483_v21 = vadd.f32 %v1482_v12, %v1481_v11  ;;  %v1508_v19 = vrot.slane %v1507_v43, 4  ;;  %v1413_v45 = vadd.f32 %v1412_v17, %v1394_v38 }
 0x1ca   :  { %v1401_v49 = vadd.f32 %v1400_v16, %v1381_v15 }
 0x1cb   :  { %v1484_v24 = vrot.slane %v1483_v21, 2  ;;  %v1509_v20 = vadd.f32 %v1508_v19, %v1507_v43  ;;  %v1432_v51 = vadd.f32 %v1431_v18, %v1413_v45 }
 0x1cd   :  { %v1485_v22 = vadd.f32 %v1484_v24, %v1483_v21  ;;  %v1510_v13 = vrot.slane %v1509_v20, 2 }
 0x1cf   :  { %v1486_v14 = vrot.slane %v1485_v22, 1  ;;  %v1511_v25 = vadd.f32 %v1510_v13, %v1509_v20 }
 0x1d0   :  { %v1450_v23 = vpop.f32.mrf.mxu2  ;;  %v1414_v26 = vpop.f32.mrf.mxu0 }
 0x1d1   :  { %v1469_v33 = vpop.f32.mrf.mxu3  ;;  %v1433_v34 = vpop.f32.mrf.mxu1  ;;  %v1512_v27 = vrot.slane %v1511_v25, 1  ;;  %v1487_v31 = vadd.f32 %v1486_v14, %v1485_v22  ;;  %v1415_v40 = vadd.f32 %v1414_v26, %v1396_v36  ;;  %v1451_v54 = vadd.f32 %v1450_v23, %v1432_v51 }
 0x1d3   :  { %v1513_v28 = vadd.f32 %v1512_v27, %v1511_v25  ;;  %v1434_v50 = vadd.f32 %v1433_v34, %v1415_v40  ;;  %v4883_v29 = vadd.f32 %v1469_v33, %v1451_v54  ;;  %v1530_v27 = vlaneseq }
 0x1d5   :  { %v4875_v30 = vsel %vm245_vm0, %v1487_v31, %v1513_v28  ;;  %v1498_v5 = vmul.f32 %v4883_v29, %v4883_v29  ;;  %v4903_v28 = vand.u32 127, %v1530_v27 }
 0x1d6   :  { %1526 = vrot.lane.b32.xlu0 %v4875_v30, %s4076_s1 }
 0x1d7   :  { %vm1532_vm6 = vcmp.lt.s32.totalorder %v4903_v28, 16  ;;  %vm1541_vm7 = vcmp.lt.s32.totalorder %v4903_v28, 32  ;;  %vm1550_vm9 = vcmp.lt.s32.totalorder %v4903_v28, 64 }
 0x1d8   :  { %v1452_v37 = vpop.f32.mrf.mxu2  ;;  %v1417_v44 = vpop.f32.mrf.mxu0 }
 0x1d9   :  { %v1471_v41 = vpop.f32.mrf.mxu3  ;;  %v1418_v46 = vadd.f32 %v1417_v44, %v1399_v39  ;;  %v1436_v47 = vpop.f32.mrf.mxu1  ;;  %v1453_v52 = vadd.f32 %v1452_v37, %v1434_v50 }
 0x1db   :  { %v1437_v53 = vadd.f32 %v1436_v47, %v1418_v46  ;;  %v4881_v0 = vadd.f32 %v1471_v41, %v1453_v52 }
 0x1dd   :  { %v1500_v2 = vmul.f32 %v4881_v0, %v4881_v0  ;;  %v1488_v6 = vadd.f32 %v4881_v0, %v4883_v29 }
 0x1df   :  { %v1514_v42 = vadd.f32 %v1500_v2, %v1498_v5 }
 0x1e0   :  { %v1455_v48 = vpop.f32.mrf.mxu2  ;;  %v1419_v61 = vpop.f32.mrf.mxu0 }
 0x1e1   :  { %v1456_v55 = vadd.f32 %v1455_v48, %v1437_v53  ;;  %v1474_v60 = vpop.f32.mrf.mxu3  ;;  %v1420_v32 = vadd.f32 %v1419_v61, %v1401_v49  ;;  %v1438_v63 = vpop.f32.mrf.mxu1 }
 0x1e3   :  { %v4885_v62 = vadd.f32 %v1474_v60, %v1456_v55  ;;  %v1439_v3 = vadd.f32 %v1438_v63, %v1420_v32 }
 0x1e5   :  { %v1502_v7 = vmul.f32 %v4885_v62, %v4885_v62  ;;  %v1489_v11 = vadd.f32 %v1488_v6, %v4885_v62 }
 0x1e7   :  { %v1515_v43 = vadd.f32 %v1514_v42, %v1502_v7 }
 0x1e8   :  { %v1457_v4 = vpop.f32.mrf.mxu2 }
 0x1e9   :  { %v1458_v8 = vadd.f32 %v1457_v4, %v1439_v3  ;;  %v1476_v10 = vpop.f32.mrf.mxu3 }
 0x1eb   :  { %v4896_v12 = vadd.f32 %v1476_v10, %v1458_v8  ;;  %v1562_v10 = vld [vmem:[%s5192_s2] sm:$0x3] }
 0x1ed   :  { %v1490_v15 = vadd.f32 %v1489_v11, %v4896_v12  ;;  %v1504_v16 = vmul.f32 %v4896_v12, %v4896_v12 }
 0x1ef   :  { %v1491_v17 = vrot.slane %v1490_v15, 4  ;;  %v1516_v18 = vadd.f32 %v1515_v43, %v1504_v16 }
 0x1f1   :  { %v1492_v21 = vadd.f32 %v1491_v17, %v1490_v15  ;;  %v1517_v19 = vrot.slane %v1516_v18, 4  ;;  %v1581_v17 = vld [vmem:[%s5193_s3] sm:$0x3] }
 0x1f3   :  { %v1493_v24 = vrot.slane %v1492_v21, 2  ;;  %v1518_v20 = vadd.f32 %v1517_v19, %v1516_v18 }
 0x1f5   :  { %v1494_v22 = vadd.f32 %v1493_v24, %v1492_v21  ;;  %v1519_v13 = vrot.slane %v1518_v20, 2 }
 0x1f7   :  { %v1495_v23 = vrot.slane %v1494_v22, 1  ;;  %v1520_v14 = vadd.f32 %v1519_v13, %v1518_v20 }
 0x1f9   :  { %v1521_v25 = vrot.slane %v1520_v14, 1  ;;  %v1496_v33 = vadd.f32 %v1495_v23, %v1494_v22 }
 0x1fb   :  { %v1522_v26 = vadd.f32 %v1521_v25, %v1520_v14 }
 0x1fd   :  { %v1525_v34 = vsel %vm245_vm0, %v1496_v33, %v1522_v26 }
 0x1fe   :  { %1528 = vrot.lane.b32.xlu0 %v1525_v34, %s4076_s1 }
 0x248   :  { %v1527_v31 = vpop.permute.xlu0 %1526 }
 0x270   :  { %v1529_v36 = vpop.permute.xlu0 %1528 }
 0x271   :  { %v1534_v37 = vsel %vm1532_vm6, %v1529_v36, %v1527_v31  ;;  %v1533_v39 = vsel %vm1532_vm6, %v1527_v31, %v1529_v36 }
 0x272   :  { %v1535_v38 = vadd.f32 %v1534_v37, %v4875_v30  ;;  %v1536_v40 = vadd.f32 %v1533_v39, %v1525_v34 }
 0x274   :  { %1537 = vrot.lane.b32.xlu1 %v1535_v38, %s4077_s18 }
 0x27c   :  { %1539 = vrot.lane.b32.xlu1 %v1536_v40, %s4077_s18 }
 0x2e6   :  { %v1538_v41 = vpop.permute.xlu1 %1537 }
 0x2ee   :  { %v1540_v44 = vpop.permute.xlu1 %1539 }
 0x2ef   :  { %v1543_v45 = vsel %vm1541_vm7, %v1540_v44, %v1538_v41  ;;  %v1542_v30 = vsel %vm1541_vm7, %v1538_v41, %v1540_v44 }
 0x2f0   :  { %v1544_v46 = vadd.f32 %v1543_v45, %v1535_v38  ;;  %v1545_v47 = vadd.f32 %v1542_v30, %v1536_v40 }
 0x2f2   :  { %1546 = vrot.lane.b32.xlu2 %v1544_v46, %s4078_s19 }
 0x2fa   :  { %1548 = vrot.lane.b32.xlu2 %v1545_v47, %s4078_s19 }
 0x34c   :  { %v1547_v50 = vpop.permute.xlu2 %1546 }
 0x354   :  { %v1549_v51 = vpop.permute.xlu2 %1548 }
 0x355   :  { %v1551_v52 = vsel %vm1550_vm9, %v1547_v50, %v1549_v51  ;;  %v1552_v53 = vsel %vm1550_vm9, %v1549_v51, %v1547_v50 }
 0x356   :  { %v1553_v48 = vadd.f32 %v1552_v53, %v1544_v46  ;;  %v1554_v49 = vadd.f32 %v1551_v52, %v1545_v47 }
 0x358   :  { %v1555_v54 = vadd.f32 %v1554_v49, %v1553_v48  ;;  %v1668_v48 = vld [vmem:[#allocation2 + $0x20] sm:$0xff] }
 0x35a   :  { %v1556_v55 = vmul.f32 0.001953125, %v1555_v54 }
 0x35c   :  { %v1557_v60 = vmul.f32 %v1556_v55, %v1556_v55 }
 0x35e   :  { %v1559_v61 = vrot.slane %v1557_v60, 7 }
 0x360   :  { %v1561_v32 = vsub.f32 %v1556_v55, %v1559_v61  ;;  %v1672_v61 = vld [vmem:[#allocation2 + $0x18] sm:$0x11] }
 0x362   :  { %v1563_v63 = vadd.f32 1e-05, %v1561_v32 }
 0x364   :  { %4062 = vrsqrt.f32 %v1563_v63  ;;  %vm1570_vm11 = vweird.f32 %v1563_v63 }
 0x36a   :  { %v4063_v2 = vpop.eup %4062 }
 0x36b   :  { %v1565_v3 = vmul.f32 %v4063_v2, %v1563_v63  ;;  %vm1571_vm10 = vweird.f32 %v4063_v2 }
 0x36c   :  { %vm1572_vm12 = vmor %vm1570_vm11, %vm1571_vm10 }
 0x36d   :  { %v1566_v4 = vmul.f32 %v4063_v2, %v1565_v3 }
 0x36f   :  { %v1567_v5 = vmul.f32 0.5, %v1566_v4  ;;  %v1675_v4 = vld [vmem:[#allocation2 + $0x10] sm:$0xff] }
 0x371   :  { %v1568_v6 = vsub.f32 1.5, %v1567_v5 }
 0x373   :  { %v1569_v7 = vmul.f32 %v4063_v2, %v1568_v6 }
 0x375   :  { %v1573_v8 = vsel %vm1572_vm12, %v4063_v2, %v1569_v7 }
 0x376   :  { %1575 = vst [vmem:[#allocation1] sm:$0xff] %v1573_v8 }
 0x377   :  { %1576 = vst [vmem:[#allocation1 + $0x9] sm:$0xff] %v1573_v8 }
 0x37e   :  { %v1578_v11 = vld [vmem:[#allocation1 + $0x1] ss:$9 sm:$0xff] }
 0x37f   :  { %v1580_v42 = vmul.f32 %v1578_v11, %v1562_v10 }
 0x381   :  { %v1583_v43 = vperm.slane %v1580_v42, 0  ;;  %v1584_v15 = vperm.slane %v1580_v42, 1 }
 0x383   :  { %v1588_v16 = vmul.f32 %v1584_v15, %v1556_v55  ;;  %v1587_v18 = vmul.f32 %v1583_v43, %v1556_v55  ;;  %v1595_v20 = vmul.f32 %v1583_v43, %v4856_v57  ;;  %v1596_v22 = vmul.f32 %v1584_v15, %v4883_v29 }
 0x384   :  { %v1597_v13 = vmul.f32 %v1583_v43, %v4854_v56  ;;  %v1598_v23 = vmul.f32 %v1584_v15, %v4881_v0  ;;  %v1599_v33 = vmul.f32 %v1583_v43, %v4858_v58  ;;  %v1600_v26 = vmul.f32 %v1584_v15, %v4885_v62 }
 0x385   :  { %v1591_v21 = vrot.slane %v1588_v16, 7  ;;  %v1601_v34 = vmul.f32 %v1583_v43, %v4869_v9  ;;  %v1602_v27 = vmul.f32 %v1584_v15, %v4896_v12  ;;  %v1679_v15 = vld [vmem:[#allocation2] sm:$0x11] }
 0x387   :  { %v1592_v19 = vsel %vm245_vm0, %v1587_v18, %v1591_v21 }
 0x388   :  { %v1594_v24 = vsub.f32 %v1581_v17, %v1592_v19 }
 0x38a   :  { %v1604_v14 = vperm.slane %v1594_v24, 0  ;;  %v1605_v25 = vperm.slane %v1594_v24, 1 }
 0x38c   :  { %v1608_v31 = vadd.f32 %v1604_v14, %v1595_v20  ;;  %v1609_v36 = vadd.f32 %v1605_v25, %v1596_v22  ;;  %v1610_v37 = vadd.f32 %v1604_v14, %v1597_v13  ;;  %v1611_v57 = vadd.f32 %v1605_v25, %v1598_v23 }
 0x38d   :  { %v1612_v38 = vadd.f32 %v1604_v14, %v1599_v33  ;;  %v1613_v29 = vadd.f32 %v1605_v25, %v1600_v26  ;;  %v1614_v39 = vadd.f32 %v1604_v14, %v1601_v34  ;;  %v1615_v56 = vadd.f32 %v1605_v25, %v1602_v27 }
 0x38e   :  { %v1616_v40 = vmax.f32 %v1608_v31, 0.0  ;;  %v1617_v0 = vmax.f32 %v1609_v36, 0.0  ;;  %v1618_v41 = vmax.f32 %v1610_v37, 0.0  ;;  %v1619_v44 = vmax.f32 %v1611_v57, 0.0 }
 0x38f   :  { %v1620_v45 = vmax.f32 %v1612_v38, 0.0  ;;  %v1621_v58 = vmax.f32 %v1613_v29, 0.0  ;;  %v1622_v46 = vmax.f32 %v1614_v39, 0.0  ;;  %v1623_v62 = vmax.f32 %v1615_v56, 0.0 }
 0x390   :  { %v1624_v30 = vpack.c.bf16 %v1617_v0, %v1616_v40  ;;  %v1625_v9 = vpack.c.bf16 %v1619_v44, %v1618_v41 }
 0x391   :  { %v1626_v47 = vpack.c.bf16 %v1621_v58, %v1620_v45  ;;  %v1627_v12 = vpack.c.bf16 %v1623_v62, %v1622_v46 }
 0x392   :  { %v1629_v50 = vshrl.u32 %v1624_v30, 16  ;;  %v1637_v51 = vshrl.u32 %v1625_v9, 16  ;;  %v1632_v54 = vshll.u32 %v1624_v30, 16  ;;  %v1640_v60 = vshll.u32 %v1625_v9, 16 }
 0x393   :  { %v1646_v52 = vshrl.u32 %v1626_v47, 16  ;;  %v1654_v53 = vshrl.u32 %v1627_v12, 16  ;;  %v1649_v63 = vshll.u32 %v1626_v47, 16  ;;  %v1657_v3 = vshll.u32 %v1627_v12, 16 }
 0x394   :  { %v1631_v49 = vrot.slane %v1629_v50, 7  ;;  %v1639_v55 = vrot.slane %v1637_v51, 7 }
 0x395   :  { %v1648_v32 = vrot.slane %v1646_v52, 7  ;;  %v1656_v2 = vrot.slane %v1654_v53, 7 }
 0x396   :  { %v1634_v5 = vor.u32 %v1632_v54, %v1631_v49  ;;  %v1635_v6 = vrot.slane %v1631_v49, 4  ;;  %v1642_v7 = vor.u32 %v1640_v60, %v1639_v55  ;;  %v1644_v8 = vrot.slane %v1639_v55, 4 }
 0x397   :  { %v1651_v10 = vor.u32 %v1649_v63, %v1648_v32  ;;  %v1652_v11 = vrot.slane %v1648_v32, 4  ;;  %v1659_v42 = vor.u32 %v1657_v3, %v1656_v2  ;;  %v1661_v43 = vrot.slane %v1656_v2, 4 }
 0x398   :  { %v1643_v16 = vsel %vm4482_vm4, %v1635_v6, %v1642_v7  ;;  %v1669_v17 = vsel %vm4476_vm3, %v1634_v5, %v1668_v48  ;;  %v1673_v18 = vsel %vm4430_vm8, %v1644_v8, %v1672_v61 }
 0x399   :  { %v1660_v21 = vsel %vm4482_vm4, %v1652_v11, %v1659_v42  ;;  %1670 = vst [vmem:[#allocation2 + $0x20] sm:$0xff] %v1669_v17  ;;  %v1676_v19 = vsel %vm4476_vm3, %v1651_v10, %v1675_v4  ;;  %v1694_v24 = vunpack.c.l.b16 %v1669_v17  ;;  %v1695_v20 = vunpack.c.h.b16 %v1669_v17 }
 0x39a   :  { %v1696_v22 = vunpack.c.l.b16 %v1643_v16  ;;  %v1697_v13 = vunpack.c.h.b16 %v1643_v16  ;;  %v1698_v23 = vunpack.c.l.b16 %v1676_v19  ;;  %1674 = vst [vmem:[#allocation2 + $0x18] sm:$0x11] %v1673_v18  ;;  %v1680_v14 = vsel %vm4430_vm8, %v1661_v43, %v1679_v15 }
 0x39b   :  { %v1699_v25 = vunpack.c.h.b16 %v1676_v19  ;;  %v1700_v33 = vunpack.c.l.b16 %v1660_v21  ;;  %v1701_v26 = vunpack.c.h.b16 %v1660_v21  ;;  %1677 = vst [vmem:[#allocation2 + $0x10] sm:$0xff] %v1676_v19 }
 0x39c   :  { %v4952_v34 = vpack.c.b16 %v1696_v22, %v1694_v24  ;;  %v4954_v1 = vpack.c.b16 %v1697_v13, %v1695_v20  ;;  %1681 = vst [vmem:[#allocation2] sm:$0x11] %v1680_v14 }
 0x39d   :  { %v4956_v27 = vpack.c.b16 %v1700_v33, %v1698_v23  ;;  %v4958_v59 = vpack.c.b16 %v1701_v26, %v1699_v25 }
 0x39e   :  { %v1723_v31 = vshll.u32 %v4952_v34, 16  ;;  %v1735_v36 = vshll.u32 %v4954_v1, 16  ;;  %v1721_v38 = vshrl.u32 %v4952_v34, 16  ;;  %v1733_v44 = vshrl.u32 %v4954_v1, 16 }
 0x39f   :  { %v1747_v35 = vshll.u32 %v4956_v27, 16  ;;  %v1759_v37 = vshll.u32 %v4958_v59, 16  ;;  %v1745_v45 = vshrl.u32 %v4956_v27, 16  ;;  %v1757_v58 = vshrl.u32 %v4958_v59, 16 }
 0x3a0   :  { %v1688_v57 = vld [vmem:[#allocation2 + $0x20] sm:$0xee]  ;;  %v1725_v29 = vrot.slane %v1723_v31, 1  ;;  %v1737_v39 = vrot.slane %v1735_v36, 1 }
 0x3a1   :  { %v1749_v56 = vrot.slane %v1747_v35, 1  ;;  %v1774_v40 = vunpack.c.l.b16 %v1688_v57  ;;  %v1775_v0 = vunpack.c.h.b16 %v1688_v57  ;;  %v1686_v41 = vld [vmem:[#allocation2 + $0x18] sm:$0x11]  ;;  %v1761_v47 = vrot.slane %v1759_v37, 1 }
 0x3a2   :  { %v1689_v46 = vld [vmem:[#allocation2 + $0x10] sm:$0xee]  ;;  %v1712_v62 = vunpack.c.l.b16 %v1686_v41  ;;  %v1713_v30 = vunpack.c.h.b16 %v1686_v41  ;;  %v1726_v9 = vor.u32 %v1725_v29, %v1721_v38  ;;  %v1738_v54 = vor.u32 %v1737_v39, %v1733_v44 }
 0x3a3   :  { %v1776_v12 = vunpack.c.l.b16 %v1689_v46  ;;  %v1777_v50 = vunpack.c.h.b16 %v1689_v46  ;;  %v1778_v51 = vpack.c.b16 %v1696_v22, %v1774_v40  ;;  %v1779_v52 = vpack.c.b16 %v1697_v13, %v1775_v0  ;;  %v1687_v53 = vld [vmem:[#allocation2] sm:$0x11] }
 0x3a4   :  { %v1716_v48 = vpack.c.b16 %v1712_v62, %v1712_v62  ;;  %v1717_v49 = vpack.c.b16 %v1713_v30, %v1713_v30  ;;  %v1750_v55 = vor.u32 %v1749_v56, %v1745_v45  ;;  %v1714_v60 = vunpack.c.l.b16 %v1687_v53 }
 0x3a5   :  { %v1715_v61 = vunpack.c.h.b16 %v1687_v53  ;;  %v1780_v32 = vpack.c.b16 %v1700_v33, %v1776_v12  ;;  %v1781_v63 = vpack.c.b16 %v1701_v26, %v1777_v50  ;;  %v1782_v4 = vrot.slane %v1778_v51, 1 }
 0x3a6   :  { %v1728_v2 = vshll.u32 %v1716_v48, 16  ;;  %v1740_v3 = vshll.u32 %v1717_v49, 16  ;;  %v1783_v5 = vrot.slane %v1716_v48, 1  ;;  %v1718_v6 = vpack.c.b16 %v1714_v60, %v1714_v60 }
 0x3a7   :  { %v1719_v7 = vpack.c.b16 %v1715_v61, %v1715_v61  ;;  %v1785_v8 = vrot.slane %v1779_v52, 1  ;;  %v1786_v10 = vrot.slane %v1717_v49, 1  ;;  %v1788_v15 = vrot.slane %v1780_v32, 1 }
 0x3a8   :  { %v1730_v11 = vrot.slane %v1728_v2, 1  ;;  %v1742_v42 = vrot.slane %v1740_v3, 1  ;;  %v4969_v43 = vsel %vm443_vm5, %v1782_v4, %v1783_v5  ;;  %v1752_v16 = vshll.u32 %v1718_v6, 16 }
 0x3a9   :  { %v1764_v17 = vshll.u32 %v1719_v7, 16  ;;  %v4972_v18 = vsel %vm443_vm5, %v1785_v8, %v1786_v10  ;;  %v1789_v21 = vrot.slane %v1718_v6, 1  ;;  %v1791_v20 = vrot.slane %v1781_v63, 1 }
 0x3aa   :  { %v4975_v19 = vsel %vm380_vm1, %v1726_v9, %v1730_v11  ;;  %v4978_v24 = vsel %vm380_vm1, %v1738_v54, %v1742_v42  ;;  %v1792_v22 = vrot.slane %v1719_v7, 1  ;;  %v1754_v13 = vrot.slane %v1752_v16, 1 }
 0x3ab   :  { %v1762_v23 = vor.u32 %v1761_v47, %v1757_v58  ;;  %v1766_v14 = vrot.slane %v1764_v17, 1  ;;  %v4981_v25 = vsel %vm443_vm5, %v1788_v15, %v1789_v21 }
 0x3ac   :  { %v4984_v33 = vsel %vm443_vm5, %v1791_v20, %v1792_v22  ;;  %v4987_v26 = vsel %vm380_vm1, %v1750_v55, %v1754_v13 }
 0x3ad   :  { %v4990_v31 = vsel %vm380_vm1, %v1762_v23, %v1766_v14 }
 0x3ae   :  { %4074 = dma.done.wait [#allocation4 + $0x1], 12288 }
 0x3af   :  { %4075 = vsyncadd [#allocation4 + $0x1], 4294955008  ;;  %v3534_v36 = vld [vmem:[#allocation3 + $0x370] sm:$0xf]  ;;  %v3978_v35 = vld [vmem:[#allocation3 + $0x374] sm:$0xf0] }
 0x3b0   :  { %v3598_v37 = vld [vmem:[#allocation3 + $0x3f0] sm:$0xf]  ;;  %v3535_v57 = vor.u32 %v3978_v35, %v3534_v36  ;;  %v3994_v38 = vld [vmem:[#allocation3 + $0x3f4] sm:$0xf0]  ;;  %v3526_v44 = vld [vmem:[#allocation3 + $0x360] sm:$0xf] }
 0x3b1   :  { %v3662_v29 = vld [vmem:[#allocation3 + $0x470] sm:$0xf]  ;;  %v4010_v39 = vld [vmem:[#allocation3 + $0x474] sm:$0xf0]  ;;  %v3599_v56 = vor.u32 %v3994_v38, %v3598_v37  ;;  %v3976_v58 = vld [vmem:[#allocation3 + $0x364] sm:$0xf0] }
 0x3b2   :  { %v3663_v40 = vor.u32 %v4010_v39, %v3662_v29  ;;  %v3726_v0 = vld [vmem:[#allocation3 + $0x4f0] sm:$0xf]  ;;  %v4026_v41 = vld [vmem:[#allocation3 + $0x4f4] sm:$0xf0]  ;;  %2376 = vmatpush.bf16.msrb.mxu0 %v3535_v57  ;;  %v3590_v46 = vld [vmem:[#allocation3 + $0x3e0] sm:$0xf]  ;;  %v3527_v30 = vor.u32 %v3976_v58, %v3526_v44 }
 0x3b3   :  { %v3727_v45 = vor.u32 %v4026_v41, %v3726_v0  ;;  %v3992_v62 = vld [vmem:[#allocation3 + $0x3e4] sm:$0xf0]  ;;  %2395 = vmatpush.bf16.msrb.mxu1 %v3599_v56  ;;  %v3654_v47 = vld [vmem:[#allocation3 + $0x460] sm:$0xf]  ;;  %v3518_v53 = vld [vmem:[#allocation3 + $0x350] sm:$0xf] }
 0x3b4   :  { %2414 = vmatpush.bf16.msrb.mxu2 %v3663_v40  ;;  %v3591_v9 = vor.u32 %v3992_v62, %v3590_v46  ;;  %v4008_v12 = vld [vmem:[#allocation3 + $0x464] sm:$0xf0]  ;;  %v3718_v50 = vld [vmem:[#allocation3 + $0x4e0] sm:$0xf]  ;;  %v3974_v48 = vld [vmem:[#allocation3 + $0x354] sm:$0xf0] }
 0x3b5   :  { %2433 = vmatpush.bf16.msrb.mxu3 %v3727_v45  ;;  %v3655_v51 = vor.u32 %v4008_v12, %v3654_v47  ;;  %v4024_v52 = vld [vmem:[#allocation3 + $0x4e4] sm:$0xf0]  ;;  %v3582_v54 = vld [vmem:[#allocation3 + $0x3d0] sm:$0xf]  ;;  %v3990_v55 = vld [vmem:[#allocation3 + $0x3d4] sm:$0xf0]  ;;  %v3519_v61 = vor.u32 %v3974_v48, %v3518_v53 }
 0x3b6   :  { %v3719_v49 = vor.u32 %v4024_v52, %v3718_v50  ;;  %v3646_v60 = vld [vmem:[#allocation3 + $0x450] sm:$0xf]  ;;  %2377 = vmatpush.bf16.msrb.mxu0 %v3527_v30  ;;  %v4006_v32 = vld [vmem:[#allocation3 + $0x454] sm:$0xf0]  ;;  %v3583_v3 = vor.u32 %v3990_v55, %v3582_v54  ;;  %v3510_v5 = vld [vmem:[#allocation3 + $0x340] sm:$0xf] }
 0x3b7   :  { %v3710_v63 = vld [vmem:[#allocation3 + $0x4d0] sm:$0xf]  ;;  %v4022_v2 = vld [vmem:[#allocation3 + $0x4d4] sm:$0xf0]  ;;  %2396 = vmatpush.bf16.msrb.mxu1 %v3591_v9  ;;  %v3647_v4 = vor.u32 %v4006_v32, %v3646_v60  ;;  %v3972_v6 = vld [vmem:[#allocation3 + $0x344] sm:$0xf0] }
 0x3b8   :  { %2415 = vmatpush.bf16.msrb.mxu2 %v3655_v51  ;;  %v3574_v7 = vld [vmem:[#allocation3 + $0x3c0] sm:$0xf]  ;;  %v3711_v8 = vor.u32 %v4022_v2, %v3710_v63  ;;  %v3988_v10 = vld [vmem:[#allocation3 + $0x3c4] sm:$0xf0]  ;;  %v3511_v17 = vor.u32 %v3972_v6, %v3510_v5  ;;  %v3502_v22 = vld [vmem:[#allocation3 + $0x330] sm:$0xf] }
 0x3b9   :  { %2434 = vmatpush.bf16.msrb.mxu3 %v3719_v49  ;;  %v3638_v11 = vld [vmem:[#allocation3 + $0x440] sm:$0xf]  ;;  %v4004_v42 = vld [vmem:[#allocation3 + $0x444] sm:$0xf0]  ;;  %v3575_v21 = vor.u32 %v3988_v10, %v3574_v7  ;;  %v3970_v13 = vld [vmem:[#allocation3 + $0x334] sm:$0xf0] }
 0x3ba   :  { %v3702_v15 = vld [vmem:[#allocation3 + $0x4c0] sm:$0xf]  ;;  %v4020_v16 = vld [vmem:[#allocation3 + $0x4c4] sm:$0xf0]  ;;  %2378 = vmatpush.bf16.msrb.mxu0 %v3519_v61  ;;  %v3639_v20 = vor.u32 %v4004_v42, %v3638_v11  ;;  %v3566_v23 = vld [vmem:[#allocation3 + $0x3b0] sm:$0xf]  ;;  %v3503_v29 = vor.u32 %v3970_v13, %v3502_v22 }
 0x3bb   :  { %2397 = vmatpush.bf16.msrb.mxu1 %v3583_v3  ;;  %v3703_v14 = vor.u32 %v4020_v16, %v3702_v15  ;;  %v3986_v36 = vld [vmem:[#allocation3 + $0x3b4] sm:$0xf0]  ;;  %v3630_v35 = vld [vmem:[#allocation3 + $0x430] sm:$0xf]  ;;  %v3494_v40 = vld [vmem:[#allocation3 + $0x320] sm:$0xf] }
 0x3bc   :  { %2416 = vmatpush.bf16.msrb.mxu2 %v3647_v4  ;;  %v4002_v37 = vld [vmem:[#allocation3 + $0x434] sm:$0xf0]  ;;  %v3694_v57 = vld [vmem:[#allocation3 + $0x4b0] sm:$0xf]  ;;  %v3567_v39 = vor.u32 %v3986_v36, %v3566_v23  ;;  %v3968_v0 = vld [vmem:[#allocation3 + $0x324] sm:$0xf0] }
 0x3bd   :  { %2435 = vmatpush.bf16.msrb.mxu3 %v3711_v8  ;;  %v4018_v38 = vld [vmem:[#allocation3 + $0x4b4] sm:$0xf0]  ;;  %v3631_v56 = vor.u32 %v4002_v37, %v3630_v35  ;;  %v3558_v41 = vld [vmem:[#allocation3 + $0x3a0] sm:$0xf]  ;;  %v3984_v45 = vld [vmem:[#allocation3 + $0x3a4] sm:$0xf0]  ;;  %v3495_v9 = vor.u32 %v3968_v0, %v3494_v40 }
 0x3be   :  { %2379 = vmatpush.bf16.msrb.mxu0 %v3511_v17  ;;  %v3695_v44 = vor.u32 %v4018_v38, %v3694_v57  ;;  %v3622_v58 = vld [vmem:[#allocation3 + $0x420] sm:$0xf]  ;;  %v4000_v46 = vld [vmem:[#allocation3 + $0x424] sm:$0xf0]  ;;  %v3559_v47 = vor.u32 %v3984_v45, %v3558_v41  ;;  %v3486_v50 = vld [vmem:[#allocation3 + $0x310] sm:$0xf] }
 0x3bf   :  { %2398 = vmatpush.bf16.msrb.mxu1 %v3575_v21  ;;  %v3686_v62 = vld [vmem:[#allocation3 + $0x4a0] sm:$0xf]  ;;  %v4016_v30 = vld [vmem:[#allocation3 + $0x4a4] sm:$0xf0]  ;;  %v3623_v12 = vor.u32 %v4000_v46, %v3622_v58  ;;  %v3966_v51 = vld [vmem:[#allocation3 + $0x314] sm:$0xf0] }
 0x3c0   :  { %2417 = vmatpush.bf16.msrb.mxu2 %v3639_v20  ;;  %v3550_v52 = vld [vmem:[#allocation3 + $0x390] sm:$0xf]  ;;  %v3687_v53 = vor.u32 %v4016_v30, %v3686_v62  ;;  %v3982_v48 = vld [vmem:[#allocation3 + $0x394] sm:$0xf0]  ;;  %v3487_v61 = vor.u32 %v3966_v51, %v3486_v50  ;;  %v3478_v32 = vld [vmem:[#allocation3 + $0x300] sm:$0xf] }
 0x3c1   :  { %2436 = vmatpush.bf16.msrb.mxu3 %v3703_v14  ;;  %v3614_v49 = vld [vmem:[#allocation3 + $0x410] sm:$0xf]  ;;  %v3998_v54 = vld [vmem:[#allocation3 + $0x414] sm:$0xf0]  ;;  %v3551_v63 = vor.u32 %v3982_v48, %v3550_v52  ;;  %v3964_v3 = vld [vmem:[#allocation3 + $0x304] sm:$0xf0] }
 0x3c2   :  { %2380 = vmatpush.bf16.msrb.mxu0 %v3503_v29  ;;  %v3678_v55 = vld [vmem:[#allocation3 + $0x490] sm:$0xf]  ;;  %v4014_v60 = vld [vmem:[#allocation3 + $0x494] sm:$0xf0]  ;;  %v3615_v2 = vor.u32 %v3998_v54, %v3614_v49  ;;  %v3542_v4 = vld [vmem:[#allocation3 + $0x380] sm:$0xf]  ;;  %v3479_v16 = vor.u32 %v3964_v3, %v3478_v32 }
 0x3c3   :  { %2399 = vmatpush.bf16.msrb.mxu1 %v3567_v39  ;;  %v3980_v5 = vld [vmem:[#allocation3 + $0x384] sm:$0xf0]  ;;  %v3679_v6 = vor.u32 %v4014_v60, %v3678_v55  ;;  %v3606_v7 = vld [vmem:[#allocation3 + $0x400] sm:$0xf]  ;;  %v3977_v42 = vld [vmem:[#allocation3 + $0x374] sm:$0xf] }
 0x3c4   :  { %2418 = vmatpush.bf16.msrb.mxu2 %v3631_v56  ;;  %v3996_v8 = vld [vmem:[#allocation3 + $0x404] sm:$0xf0]  ;;  %v3670_v10 = vld [vmem:[#allocation3 + $0x480] sm:$0xf]  ;;  %v3536_v15 = vld [vmem:[#allocation3 + $0x378] sm:$0xf0]  ;;  %v3543_v20 = vor.u32 %v3980_v5, %v3542_v4 }
 0x3c5   :  { %2437 = vmatpush.bf16.msrb.mxu3 %v3695_v44  ;;  %v4012_v11 = vld [vmem:[#allocation3 + $0x484] sm:$0xf0]  ;;  %v3854_v17 = vld [vmem:[#allocation3 + $0x5f0] sm:$0xf]  ;;  %v4058_v21 = vld [vmem:[#allocation3 + $0x5f4] sm:$0xf0]  ;;  %v3607_v22 = vor.u32 %v3996_v8, %v3606_v7  ;;  %v3539_v23 = vor.u32 %v3977_v42, %v3536_v15 }
 0x3c6   :  { %2381 = vmatpush.bf16.msrb.mxu0 %v3495_v9  ;;  %v3671_v13 = vor.u32 %v4012_v11, %v3670_v10  ;;  %v3790_v14 = vld [vmem:[#allocation3 + $0x570] sm:$0xf]  ;;  %v4042_v36 = vld [vmem:[#allocation3 + $0x574] sm:$0xf0]  ;;  %v3993_v35 = vld [vmem:[#allocation3 + $0x3f4] sm:$0xf]  ;;  %v3855_v37 = vor.u32 %v4058_v21, %v3854_v17 }
 0x3c7   :  { %2400 = vmatpush.bf16.msrb.mxu1 %v3559_v47  ;;  %v3600_v57 = vld [vmem:[#allocation3 + $0x3f8] sm:$0xf0]  ;;  %v3975_v38 = vld [vmem:[#allocation3 + $0x364] sm:$0xf]  ;;  %v3528_v29 = vld [vmem:[#allocation3 + $0x368] sm:$0xf0]  ;;  %v3791_v40 = vor.u32 %v4042_v36, %v3790_v14 }
 0x3c8   :  { %2419 = vmatpush.bf16.msrb.mxu2 %v3623_v12  ;;  %v3846_v39 = vld [vmem:[#allocation3 + $0x5e0] sm:$0xf]  ;;  %v4056_v56 = vld [vmem:[#allocation3 + $0x5e4] sm:$0xf0]  ;;  %v3603_v0 = vor.u32 %v3993_v35, %v3600_v57  ;;  %v3531_v41 = vor.u32 %v3975_v38, %v3528_v29  ;;  %v3991_v58 = vld [vmem:[#allocation3 + $0x3e4] sm:$0xf] }
 0x3c9   :  { %2438 = vmatpush.bf16.msrb.mxu3 %v3687_v53  ;;  %v3782_v44 = vld [vmem:[#allocation3 + $0x560] sm:$0xf]  ;;  %v4040_v45 = vld [vmem:[#allocation3 + $0x564] sm:$0xf0]  ;;  %v3847_v46 = vor.u32 %v4056_v56, %v3846_v39  ;;  %v3592_v62 = vld [vmem:[#allocation3 + $0x3e8] sm:$0xf0] }
 0x3ca   :  { %2382 = vmatpush.bf16.msrb.mxu0 %v3487_v61  ;;  %v3973_v30 = vld [vmem:[#allocation3 + $0x354] sm:$0xf]  ;;  %v3520_v9 = vld [vmem:[#allocation3 + $0x358] sm:$0xf0]  ;;  %v3838_v47 = vld [vmem:[#allocation3 + $0x5d0] sm:$0xf]  ;;  %v3783_v50 = vor.u32 %v4040_v45, %v3782_v44  ;;  %v3595_v51 = vor.u32 %v3991_v58, %v3592_v62 }
 0x3cb   :  { %2401 = vmatpush.bf16.msrb.mxu1 %v3551_v63  ;;  %v4054_v12 = vld [vmem:[#allocation3 + $0x5d4] sm:$0xf0]  ;;  %v3523_v52 = vor.u32 %v3973_v30, %v3520_v9  ;;  %v3774_v53 = vld [vmem:[#allocation3 + $0x550] sm:$0xf]  ;;  %v3989_v49 = vld [vmem:[#allocation3 + $0x3d4] sm:$0xf] }
 0x3cc   :  { %2420 = vmatpush.bf16.msrb.mxu2 %v3615_v2  ;;  %v4038_v48 = vld [vmem:[#allocation3 + $0x554] sm:$0xf0]  ;;  %v3839_v54 = vor.u32 %v4054_v12, %v3838_v47  ;;  %v3584_v55 = vld [vmem:[#allocation3 + $0x3d8] sm:$0xf0]  ;;  %v3971_v60 = vld [vmem:[#allocation3 + $0x344] sm:$0xf] }
 0x3cd   :  { %2439 = vmatpush.bf16.msrb.mxu3 %v3679_v6  ;;  %v3512_v61 = vld [vmem:[#allocation3 + $0x348] sm:$0xf0]  ;;  %v3830_v32 = vld [vmem:[#allocation3 + $0x5c0] sm:$0xf]  ;;  %v4052_v63 = vld [vmem:[#allocation3 + $0x5c4] sm:$0xf0]  ;;  %v3775_v2 = vor.u32 %v4038_v48, %v3774_v53  ;;  %v3587_v3 = vor.u32 %v3989_v49, %v3584_v55 }
 0x3ce   :  { %2383 = vmatpush.bf16.msrb.mxu0 %v3479_v16  ;;  %v3515_v4 = vor.u32 %v3971_v60, %v3512_v61  ;;  %v3766_v5 = vld [vmem:[#allocation3 + $0x540] sm:$0xf]  ;;  %v4036_v6 = vld [vmem:[#allocation3 + $0x544] sm:$0xf0]  ;;  %v3987_v7 = vld [vmem:[#allocation3 + $0x3c4] sm:$0xf]  ;;  %v3831_v8 = vor.u32 %v4052_v63, %v3830_v32 }
 0x3cf   :  { %2402 = vmatpush.bf16.msrb.mxu1 %v3543_v20  ;;  %v3576_v10 = vld [vmem:[#allocation3 + $0x3c8] sm:$0xf0]  ;;  %v3969_v11 = vld [vmem:[#allocation3 + $0x334] sm:$0xf]  ;;  %v3504_v42 = vld [vmem:[#allocation3 + $0x338] sm:$0xf0]  ;;  %v3767_v17 = vor.u32 %v4036_v6, %v3766_v5 }
 0x3d0   :  { %2421 = vmatpush.bf16.msrb.mxu2 %v3607_v22  ;;  %v3822_v15 = vld [vmem:[#allocation3 + $0x5b0] sm:$0xf]  ;;  %v4050_v16 = vld [vmem:[#allocation3 + $0x5b4] sm:$0xf0]  ;;  %v3579_v21 = vor.u32 %v3987_v7, %v3576_v10  ;;  %v3507_v20 = vor.u32 %v3969_v11, %v3504_v42  ;;  %v3568_v36 = vld [vmem:[#allocation3 + $0x3b8] sm:$0xf0] }
 0x3d1   :  { %2440 = vmatpush.bf16.msrb.mxu3 %v3671_v13  ;;  %2384 = vmatmul.bf16.vlgmr.msrb.gmra.mxu0 %v4952_v34  ;;  %v3758_v22 = vld [vmem:[#allocation3 + $0x530] sm:$0xf]  ;;  %v4034_v13 = vld [vmem:[#allocation3 + $0x534] sm:$0xf0]  ;;  %v3823_v14 = vor.u32 %v4050_v16, %v3822_v15  ;;  %v3967_v35 = vld [vmem:[#allocation3 + $0x324] sm:$0xf] }
 0x3d2   :  { %2403 = vmatmul.bf16.vlgmr.msrb.gmra.mxu1 %v4954_v1  ;;  %2452 = vmatpush.bf16.msra.mxu0 %v3791_v40  ;;  %v3814_v57 = vld [vmem:[#allocation3 + $0x5a0] sm:$0xf]  ;;  %v4048_v38 = vld [vmem:[#allocation3 + $0x5a4] sm:$0xf0]  ;;  %v3759_v29 = vor.u32 %v4034_v13, %v3758_v22  ;;  %v3560_v45 = vld [vmem:[#allocation3 + $0x3a8] sm:$0xf0] }
 0x3d3   :  { %2471 = vmatpush.bf16.msra.mxu1 %v3855_v37  ;;  %2422 = vmatmul.bf16.vlgmr.msrb.gmra.mxu2 %v4975_v19  ;;  %v3496_v37 = vld [vmem:[#allocation3 + $0x328] sm:$0xf0]  ;;  %v3750_v40 = vld [vmem:[#allocation3 + $0x520] sm:$0xf]  ;;  %v3815_v44 = vor.u32 %v4048_v38, %v3814_v57  ;;  %v3965_v58 = vld [vmem:[#allocation3 + $0x314] sm:$0xf] }
 0x3d4   :  { %2490 = vmatpush.bf16.msra.mxu2 %v3539_v23  ;;  %2441 = vmatmul.bf16.vlgmr.msrb.gmra.mxu3 %v4978_v24  ;;  %v3985_v23 = vld [vmem:[#allocation3 + $0x3b4] sm:$0xf]  ;;  %v3499_v56 = vor.u32 %v3967_v35, %v3496_v37  ;;  %v3806_v62 = vld [vmem:[#allocation3 + $0x590] sm:$0xf]  ;;  %v4046_v30 = vld [vmem:[#allocation3 + $0x594] sm:$0xf0] }
 0x3d5   :  { %2509 = vmatpush.bf16.msra.mxu3 %v3603_v0  ;;  %v3571_v39 = vor.u32 %v3985_v23, %v3568_v36  ;;  %v4032_v0 = vld [vmem:[#allocation3 + $0x524] sm:$0xf0]  ;;  %v3742_v47 = vld [vmem:[#allocation3 + $0x510] sm:$0xf]  ;;  %v3552_v53 = vld [vmem:[#allocation3 + $0x398] sm:$0xf0]  ;;  %v3807_v48 = vor.u32 %v4046_v30, %v3806_v62 }
 0x3d6   :  { %2453 = vmatpush.bf16.msra.mxu0 %v3783_v50  ;;  %v3751_v9 = vor.u32 %v4032_v0, %v3750_v40  ;;  %v3963_v49 = vld [vmem:[#allocation3 + $0x304] sm:$0xf]  ;;  %v3798_v55 = vld [vmem:[#allocation3 + $0x580] sm:$0xf]  ;;  %v4044_v60 = vld [vmem:[#allocation3 + $0x584] sm:$0xf0] }
 0x3d7   :  { %2472 = vmatpush.bf16.msra.mxu1 %v3847_v46  ;;  %v3488_v46 = vld [vmem:[#allocation3 + $0x318] sm:$0xf0]  ;;  %v4041_v61 = vld [vmem:[#allocation3 + $0x574] sm:$0xf]  ;;  %v4028_v7 = vld [vmem:[#allocation3 + $0x504] sm:$0xf0]  ;;  %v3799_v11 = vor.u32 %v4044_v60, %v3798_v55 }
 0x3d8   :  { %2491 = vmatpush.bf16.msra.mxu2 %v3531_v41  ;;  %v3983_v41 = vld [vmem:[#allocation3 + $0x3a4] sm:$0xf]  ;;  %v3491_v50 = vor.u32 %v3965_v58, %v3488_v46  ;;  %v3792_v32 = vld [vmem:[#allocation3 + $0x578] sm:$0xf0]  ;;  %v3544_v10 = vld [vmem:[#allocation3 + $0x388] sm:$0xf0] }
 0x3d9   :  { %2510 = vmatpush.bf16.msra.mxu3 %v3595_v51  ;;  %v3563_v12 = vor.u32 %v3983_v41, %v3560_v45  ;;  %v4030_v51 = vld [vmem:[#allocation3 + $0x514] sm:$0xf0]  ;;  %v3795_v42 = vor.u32 %v4041_v61, %v3792_v32  ;;  %v4009_v15 = vld [vmem:[#allocation3 + $0x474] sm:$0xf]  ;;  %v3664_v16 = vld [vmem:[#allocation3 + $0x478] sm:$0xf0] }
 0x3da   :  { %2454 = vmatpush.bf16.msra.mxu0 %v3775_v2  ;;  %v3743_v63 = vor.u32 %v4030_v51, %v3742_v47  ;;  %v3734_v2 = vld [vmem:[#allocation3 + $0x500] sm:$0xf]  ;;  %v4039_v22 = vld [vmem:[#allocation3 + $0x564] sm:$0xf]  ;;  %v3784_v13 = vld [vmem:[#allocation3 + $0x568] sm:$0xf0]  ;;  %v3667_v36 = vor.u32 %v4009_v15, %v3664_v16 }
 0x3db   :  { %2473 = vmatpush.bf16.msra.mxu1 %v3839_v54  ;;  %v3480_v54 = vld [vmem:[#allocation3 + $0x308] sm:$0xf0]  ;;  %v3735_v23 = vor.u32 %v4028_v7, %v3734_v2  ;;  %v4007_v35 = vld [vmem:[#allocation3 + $0x464] sm:$0xf]  ;;  %v3787_v38 = vor.u32 %v4039_v22, %v3784_v13  ;;  %v4037_v0 = vld [vmem:[#allocation3 + $0x554] sm:$0xf] }
 0x3dc   :  { %2492 = vmatpush.bf16.msra.mxu2 %v3523_v52  ;;  %v3981_v52 = vld [vmem:[#allocation3 + $0x394] sm:$0xf]  ;;  %v3483_v6 = vor.u32 %v3963_v49, %v3480_v54  ;;  %v3656_v37 = vld [vmem:[#allocation3 + $0x468] sm:$0xf0]  ;;  %v3776_v41 = vld [vmem:[#allocation3 + $0x558] sm:$0xf0] }
 0x3dd   :  { %2511 = vmatpush.bf16.msra.mxu3 %v3587_v3  ;;  %v4025_v3 = vld [vmem:[#allocation3 + $0x4f4] sm:$0xf]  ;;  %v3555_v5 = vor.u32 %v3981_v52, %v3552_v53  ;;  %v3848_v40 = vld [vmem:[#allocation3 + $0x5e8] sm:$0xf0]  ;;  %v3648_v46 = vld [vmem:[#allocation3 + $0x458] sm:$0xf0]  ;;  %v3779_v30 = vor.u32 %v4037_v0, %v3776_v41 }
 0x3de   :  { %2455 = vmatpush.bf16.msra.mxu0 %v3767_v17  ;;  %v4057_v17 = vld [vmem:[#allocation3 + $0x5f4] sm:$0xf]  ;;  %v3712_v47 = vld [vmem:[#allocation3 + $0x4d8] sm:$0xf0]  ;;  %v4035_v51 = vld [vmem:[#allocation3 + $0x544] sm:$0xf] }
 0x3df   :  { %2474 = vmatpush.bf16.msra.mxu1 %v3831_v8  ;;  %v3979_v8 = vld [vmem:[#allocation3 + $0x384] sm:$0xf]  ;;  %v4005_v58 = vld [vmem:[#allocation3 + $0x454] sm:$0xf]  ;;  %v3768_v52 = vld [vmem:[#allocation3 + $0x548] sm:$0xf0] }
 0x3e0   :  { %2493 = vmatpush.bf16.msra.mxu2 %v3515_v4  ;;  %v3728_v4 = vld [vmem:[#allocation3 + $0x4f8] sm:$0xf0]  ;;  %v3651_v53 = vor.u32 %v4005_v58, %v3648_v46  ;;  %v4003_v49 = vld [vmem:[#allocation3 + $0x444] sm:$0xf]  ;;  %v3640_v54 = vld [vmem:[#allocation3 + $0x448] sm:$0xf0]  ;;  %v3771_v60 = vor.u32 %v4035_v51, %v3768_v52 }
 0x3e1   :  { %2512 = vmatpush.bf16.msra.mxu3 %v3579_v21  ;;  %2389 = vmatmul.bf16.gmra.mxu0 %v4956_v27  ;;  %v3731_v21 = vor.u32 %v4025_v3, %v3728_v4  ;;  %v4019_v61 = vld [vmem:[#allocation3 + $0x4c4] sm:$0xf]  ;;  %v3704_v32 = vld [vmem:[#allocation3 + $0x4c8] sm:$0xf0]  ;;  %v4033_v3 = vld [vmem:[#allocation3 + $0x534] sm:$0xf] }
 0x3e2   :  { %2408 = vmatmul.bf16.gmra.mxu1 %v4958_v59  ;;  %2456 = vmatpush.bf16.msra.mxu0 %v3759_v29  ;;  %v4023_v29 = vld [vmem:[#allocation3 + $0x4e4] sm:$0xf]  ;;  %v3832_v2 = vld [vmem:[#allocation3 + $0x5c8] sm:$0xf0]  ;;  %v3760_v4 = vld [vmem:[#allocation3 + $0x538] sm:$0xf0] }
 0x3e3   :  { %2475 = vmatpush.bf16.msra.mxu1 %v3823_v14  ;;  %2427 = vmatmul.bf16.gmra.mxu2 %v4987_v26  ;;  %v3547_v14 = vor.u32 %v3979_v8, %v3544_v10  ;;  %v3763_v8 = vor.u32 %v4033_v3, %v3760_v4  ;;  %v4017_v10 = vld [vmem:[#allocation3 + $0x4b4] sm:$0xf]  ;;  %v3824_v15 = vld [vmem:[#allocation3 + $0x5b8] sm:$0xf0]  ;;  %v4031_v16 = vld [vmem:[#allocation3 + $0x524] sm:$0xf] }
 0x3e4   :  { %2494 = vmatpush.bf16.msra.mxu2 %v3507_v20  ;;  %2446 = vmatmul.bf16.gmra.mxu3 %v4990_v31  ;;  %v3856_v20 = vld [vmem:[#allocation3 + $0x5f8] sm:$0xf0]  ;;  %v3999_v22 = vld [vmem:[#allocation3 + $0x424] sm:$0xf]  ;;  %v3624_v13 = vld [vmem:[#allocation3 + $0x428] sm:$0xf0] }
 0x3e5   :  { %2513 = vmatpush.bf16.msra.mxu3 %v3571_v39  ;;  %v3859_v57 = vor.u32 %v4057_v17, %v3856_v20  ;;  %v3720_v39 = vld [vmem:[#allocation3 + $0x4e8] sm:$0xf0]  ;;  %v3616_v0 = vld [vmem:[#allocation3 + $0x418] sm:$0xf0]  ;;  %v4045_v46 = vld [vmem:[#allocation3 + $0x594] sm:$0xf] }
 0x3e6   :  { %2457 = vmatpush.bf16.msra.mxu0 %v3751_v9  ;;  %v3723_v45 = vor.u32 %v4023_v29, %v3720_v39  ;;  %v4021_v9 = vld [vmem:[#allocation3 + $0x4d4] sm:$0xf]  ;;  %v3752_v17 = vld [vmem:[#allocation3 + $0x528] sm:$0xf0]  ;;  %v3744_v29 = vld [vmem:[#allocation3 + $0x518] sm:$0xf0]  ;;  %v3627_v39 = vor.u32 %v3999_v22, %v3624_v13 }
 0x3e7   :  { %2476 = vmatpush.bf16.msra.mxu1 %v3815_v44  ;;  %v3659_v44 = vor.u32 %v4007_v35, %v3656_v37  ;;  %v3688_v35 = vld [vmem:[#allocation3 + $0x4a8] sm:$0xf0]  ;;  %v4047_v37 = vld [vmem:[#allocation3 + $0x5a4] sm:$0xf]  ;;  %v3680_v58 = vld [vmem:[#allocation3 + $0x498] sm:$0xf0] }
 0x3e8   :  { %2495 = vmatpush.bf16.msra.mxu2 %v3499_v56  ;;  %v4055_v56 = vld [vmem:[#allocation3 + $0x5e4] sm:$0xf]  ;;  %vm2678_vm8 = vcmask 1043459   ;;  %vm2685_vm13 = vcmask 1041408   ;;  %v2758_v28 = vld [vmem:[%s5196_s6] sm:$0xff]  ;;  %vm2766_vm3 = vcmask 130048  }
 0x3e9   :  { %2514 = vmatpush.bf16.msra.mxu3 %v3563_v12  ;;  %v3851_v62 = vor.u32 %v4055_v56, %v3848_v40  ;;  %v4053_v12 = vld [vmem:[#allocation3 + $0x5d4] sm:$0xf]  ;;  %vm2795_vm4 = vcmask 15360  }
 0x3ea   :  { %2458 = vmatpush.bf16.msra.mxu0 %v3743_v63  ;;  %v4051_v63 = vld [vmem:[#allocation3 + $0x5c4] sm:$0xf]  ;;  %v3997_v40 = vld [vmem:[#allocation3 + $0x414] sm:$0xf] }
 0x3eb   :  { %2477 = vmatpush.bf16.msra.mxu1 %v3807_v48  ;;  %v3715_v48 = vor.u32 %v4021_v9, %v3712_v47  ;;  %v3835_v7 = vor.u32 %v4051_v63, %v3832_v2  ;;  %v3736_v9 = vld [vmem:[#allocation3 + $0x508] sm:$0xf0]  ;;  %v3619_v47 = vor.u32 %v3997_v40, %v3616_v0 }
 0x3ec   :  { %2496 = vmatpush.bf16.msra.mxu2 %v3491_v50  ;;  %v3840_v50 = vld [vmem:[#allocation3 + $0x5d8] sm:$0xf0] }
 0x3ed   :  { %2515 = vmatpush.bf16.msra.mxu3 %v3555_v5  ;;  %v3843_v55 = vor.u32 %v4053_v12, %v3840_v50  ;;  %v4001_v5 = vld [vmem:[#allocation3 + $0x434] sm:$0xf]  ;;  %v3995_v50 = vld [vmem:[#allocation3 + $0x404] sm:$0xf] }
 0x3ee   :  { %2459 = vmatpush.bf16.msra.mxu0 %v3735_v23 }
 0x3ef   :  { %2478 = vmatpush.bf16.msra.mxu1 %v3799_v11  ;;  %v3696_v11 = vld [vmem:[#allocation3 + $0x4b8] sm:$0xf0] }
 0x3f0   :  { %2497 = vmatpush.bf16.msra.mxu2 %v3483_v6  ;;  %v3632_v6 = vld [vmem:[#allocation3 + $0x438] sm:$0xf0]  ;;  %v3699_v20 = vor.u32 %v4017_v10, %v3696_v11 }
 0x3f1   :  { %2516 = vmatpush.bf16.msra.mxu3 %v3547_v14  ;;  %2460 = vmatmul.bf16.vlgmr.msra.gmra.mxu0 %v4969_v43  ;;  %v3755_v14 = vor.u32 %v4031_v16, %v3752_v17 }
 0x3f2   :  { %2528 = vmatpush.bf16.msrb.mxu0 %v3667_v36  ;;  %2479 = vmatmul.bf16.vlgmr.msra.gmra.mxu1 %v4972_v18  ;;  %v4015_v36 = vld [vmem:[#allocation3 + $0x4a4] sm:$0xf] }
 0x3f3   :  { %2547 = vmatpush.bf16.msrb.mxu1 %v3731_v21  ;;  %2498 = vmatmul.bf16.vlgmr.msra.gmra.mxu2 %v4952_v34  ;;  %v3643_v34 = vor.u32 %v4003_v49, %v3640_v54  ;;  %v3635_v21 = vor.u32 %v4001_v5, %v3632_v6  ;;  %v3691_v56 = vor.u32 %v4015_v36, %v3688_v35  ;;  %v3672_v49 = vld [vmem:[#allocation3 + $0x488] sm:$0xf0]  ;;  %v4043_v54 = vld [vmem:[#allocation3 + $0x584] sm:$0xf] }
 0x3f4   :  { %2566 = vmatpush.bf16.msrb.mxu2 %v3795_v42  ;;  %2517 = vmatmul.bf16.vlgmr.msra.gmra.mxu3 %v4954_v1  ;;  %v3707_v1 = vor.u32 %v4019_v61, %v3704_v32  ;;  %v4049_v42 = vld [vmem:[#allocation3 + $0x5b4] sm:$0xf] }
 0x3f5   :  { %2585 = vmatpush.bf16.msrb.mxu3 %v3859_v57  ;;  %v3827_v23 = vor.u32 %v4049_v42, %v3824_v15  ;;  %v3816_v57 = vld [vmem:[#allocation3 + $0x5a8] sm:$0xf0] }
 0x3f6   :  { %2529 = vmatpush.bf16.msrb.mxu0 %v3659_v44  ;;  %v3819_v41 = vor.u32 %v4047_v37, %v3816_v57 }
 0x3f7   :  { %2548 = vmatpush.bf16.msrb.mxu1 %v3723_v45  ;;  %v4013_v45 = vld [vmem:[#allocation3 + $0x494] sm:$0xf] }
 0x3f8   :  { %2567 = vmatpush.bf16.msrb.mxu2 %v3787_v38  ;;  %v4029_v38 = vld [vmem:[#allocation3 + $0x514] sm:$0xf]  ;;  %v3683_v12 = vor.u32 %v4013_v45, %v3680_v58 }
 0x3f9   :  { %2586 = vmatpush.bf16.msrb.mxu3 %v3851_v62  ;;  %v3747_v44 = vor.u32 %v4029_v38, %v3744_v29  ;;  %v3808_v62 = vld [vmem:[#allocation3 + $0x598] sm:$0xf0] }
 0x3fa   :  { %2530 = vmatpush.bf16.msrb.mxu0 %v3651_v53  ;;  %v3811_v51 = vor.u32 %v4045_v46, %v3808_v62  ;;  %v3608_v53 = vld [vmem:[#allocation3 + $0x408] sm:$0xf0] }
 0x3fb   :  { %2549 = vmatpush.bf16.msrb.mxu1 %v3715_v48  ;;  %v4011_v48 = vld [vmem:[#allocation3 + $0x484] sm:$0xf] }
 0x3fc   :  { %2568 = vmatpush.bf16.msrb.mxu2 %v3779_v30  ;;  %v4027_v30 = vld [vmem:[#allocation3 + $0x504] sm:$0xf] }
 0x3fd   :  { %2587 = vmatpush.bf16.msrb.mxu3 %v3843_v55  ;;  %v3739_v52 = vor.u32 %v4027_v30, %v3736_v9  ;;  %v3800_v55 = vld [vmem:[#allocation3 + $0x588] sm:$0xf0] }
 0x3fe   :  { %2531 = vmatpush.bf16.msrb.mxu0 %v3643_v34 }
 0x3ff   :  { %2550 = vmatpush.bf16.msrb.mxu1 %v3707_v1 }
 0x400   :  { %2569 = vmatpush.bf16.msrb.mxu2 %v3771_v60  ;;  %v3611_v60 = vor.u32 %v3995_v50, %v3608_v53 }
 0x401   :  { %2588 = vmatpush.bf16.msrb.mxu3 %v3835_v7  ;;  %2465 = vmatmul.bf16.gmra.mxu0 %v4981_v25 }
 0x402   :  { %2532 = vmatpush.bf16.msrb.mxu0 %v3635_v21  ;;  %2484 = vmatmul.bf16.gmra.mxu1 %v4984_v33 }
 0x403   :  { %2551 = vmatpush.bf16.msrb.mxu1 %v3699_v20  ;;  %2503 = vmatmul.bf16.gmra.mxu2 %v4956_v27  ;;  %v3675_v27 = vor.u32 %v4011_v48, %v3672_v49 }
 0x404   :  { %2570 = vmatpush.bf16.msrb.mxu2 %v3763_v8  ;;  %2522 = vmatmul.bf16.gmra.mxu3 %v4958_v59  ;;  %v3803_v59 = vor.u32 %v4043_v54, %v3800_v55 }
 0x405   :  { %2589 = vmatpush.bf16.msrb.mxu3 %v3827_v23 }
 0x406   :  { %2533 = vmatpush.bf16.msrb.mxu0 %v3627_v39 }
 0x407   :  { %2552 = vmatpush.bf16.msrb.mxu1 %v3691_v56 }
 0x408   :  { %2571 = vmatpush.bf16.msrb.mxu2 %v3755_v14 }
 0x409   :  { %2590 = vmatpush.bf16.msrb.mxu3 %v3819_v41 }
 0x40a   :  { %2534 = vmatpush.bf16.msrb.mxu0 %v3619_v47 }
 0x40b   :  { %2553 = vmatpush.bf16.msrb.mxu1 %v3683_v12 }
 0x40c   :  { %2572 = vmatpush.bf16.msrb.mxu2 %v3747_v44 }
 0x40d   :  { %2591 = vmatpush.bf16.msrb.mxu3 %v3811_v51 }
 0x40e   :  { %2535 = vmatpush.bf16.msrb.mxu0 %v3611_v60 }
 0x40f   :  { %2554 = vmatpush.bf16.msrb.mxu1 %v3675_v27 }
 0x410   :  { %2573 = vmatpush.bf16.msrb.mxu2 %v3739_v52 }
 0x411   :  { %2592 = vmatpush.bf16.msrb.mxu3 %v3803_v59  ;;  %2536 = vmatmul.bf16.vlgmr.msrb.gmra.mxu0 %v4975_v19 }
 0x412   :  { %2555 = vmatmul.bf16.vlgmr.msrb.gmra.mxu1 %v4978_v24 }
 0x413   :  { %2574 = vmatmul.bf16.vlgmr.msrb.gmra.mxu2 %v4969_v43 }
 0x414   :  { %2593 = vmatmul.bf16.vlgmr.msrb.gmra.mxu3 %v4972_v18 }
 0x421   :  { %2541 = vmatmul.bf16.gmra.mxu0 %v4987_v26 }
 0x422   :  { %2560 = vmatmul.bf16.gmra.mxu1 %v4990_v31 }
 0x423   :  { %2579 = vmatmul.bf16.gmra.mxu2 %v4981_v25 }
 0x424   :  { %2598 = vmatmul.bf16.gmra.mxu3 %v4984_v33 }
 0x44e   :  { %v2385_v61 = vpop.f32.mrf.mxu0 }
 0x44f   :  { %v2404_v32 = vpop.f32.mrf.mxu1 }
 0x450   :  { %v2405_v33 = vadd.f32 %v2404_v32, %v2385_v61 }
 0x456   :  { %v2423_v63 = vpop.f32.mrf.mxu2  ;;  %v2387_v3 = vpop.f32.mrf.mxu0 }
 0x457   :  { %v2442_v2 = vpop.f32.mrf.mxu3  ;;  %v2406_v19 = vpop.f32.mrf.mxu1  ;;  %v2424_v11 = vadd.f32 %v2423_v63, %v2405_v33 }
 0x458   :  { %v2407_v8 = vadd.f32 %v2406_v19, %v2387_v3 }
 0x459   :  { %v2443_v22 = vadd.f32 %v2442_v2, %v2424_v11 }
 0x45e   :  { %v2425_v4 = vpop.f32.mrf.mxu2  ;;  %v2390_v34 = vpop.f32.mrf.mxu0 }
 0x45f   :  { %v2444_v24 = vpop.f32.mrf.mxu3  ;;  %v2409_v43 = vpop.f32.mrf.mxu1  ;;  %v2426_v10 = vadd.f32 %v2425_v4, %v2407_v8 }
 0x460   :  { %v2410_v20 = vadd.f32 %v2409_v43, %v2390_v34 }
 0x461   :  { %v2445_v21 = vadd.f32 %v2444_v24, %v2426_v10 }
 0x466   :  { %v2428_v1 = vpop.f32.mrf.mxu2  ;;  %v2392_v5 = vpop.f32.mrf.mxu0 }
 0x467   :  { %v2447_v18 = vpop.f32.mrf.mxu3  ;;  %v2411_v26 = vpop.f32.mrf.mxu1  ;;  %v2429_v13 = vadd.f32 %v2428_v1, %v2410_v20 }
 0x468   :  { %v2412_v39 = vadd.f32 %v2411_v26, %v2392_v5 }
 0x469   :  { %v2448_v36 = vadd.f32 %v2447_v18, %v2429_v13 }
 0x46e   :  { %v2430_v6 = vpop.f32.mrf.mxu2  ;;  %v2461_v7 = vpop.f32.mrf.mxu0 }
 0x46f   :  { %v2449_v31 = vpop.f32.mrf.mxu3  ;;  %v2480_v25 = vpop.f32.mrf.mxu1  ;;  %v2462_v14 = vadd.f32 %v2461_v7, %v2443_v22  ;;  %v2431_v0 = vadd.f32 %v2430_v6, %v2412_v39 }
 0x471   :  { %v5022_v56 = vadd.f32 %v2480_v25, %v2462_v14  ;;  %v2450_v45 = vadd.f32 %v2449_v31, %v2431_v0 }
 0x473   :  { %v2622_v12 = vmul.f32 %v5022_v56, %v5022_v56 }
 0x476   :  { %v5016_v42 = vpop.f32.mrf.mxu2  ;;  %v2463_v16 = vpop.f32.mrf.mxu0 }
 0x477   :  { %v5018_v15 = vpop.f32.mrf.mxu3  ;;  %v2482_v17 = vpop.f32.mrf.mxu1  ;;  %v2464_v23 = vadd.f32 %v2463_v16, %v2445_v21 }
 0x479   :  { %v5020_v35 = vadd.f32 %v2482_v17, %v2464_v23 }
 0x47b   :  { %v2604_v41 = vadd.f32 %v5020_v35, %v5022_v56  ;;  %v2624_v58 = vmul.f32 %v5020_v35, %v5020_v35 }
 0x47d   :  { %v2648_v46 = vrot.slane %v2604_v41, 4  ;;  %v2630_v52 = vadd.f32 %v2624_v58, %v2622_v12 }
 0x47e   :  { %v2501_v37 = vpop.f32.mrf.mxu2  ;;  %v2466_v38 = vpop.f32.mrf.mxu0 }
 0x47f   :  { %v2520_v57 = vpop.f32.mrf.mxu3  ;;  %v2485_v29 = vpop.f32.mrf.mxu1  ;;  %v2467_v40 = vadd.f32 %v2466_v38, %v2448_v36  ;;  %v2649_v53 = vadd.f32 %v2648_v46, %v2604_v41  ;;  %v2519_v38 = vadd.f32 %v5018_v15, %v5016_v42 }
 0x480   :  { %v2521_v13 = vadd.f32 %v2520_v57, %v2501_v37 }
 0x481   :  { %v5026_v44 = vadd.f32 %v2485_v29, %v2467_v40  ;;  %v2650_v3 = vrot.slane %v2649_v53, 2 }
 0x483   :  { %v2626_v50 = vmul.f32 %v5026_v44, %v5026_v44  ;;  %v2605_v48 = vadd.f32 %v2604_v41, %v5026_v44  ;;  %v2651_v5 = vadd.f32 %v2650_v3, %v2649_v53 }
 0x485   :  { %v2631_v54 = vadd.f32 %v2630_v52, %v2626_v50  ;;  %v2652_v11 = vrot.slane %v2651_v5, 1 }
 0x486   :  { %v2504_v62 = vpop.f32.mrf.mxu2  ;;  %v2468_v9 = vpop.f32.mrf.mxu0 }
 0x487   :  { %v2523_v30 = vpop.f32.mrf.mxu3  ;;  %v2487_v47 = vpop.f32.mrf.mxu1  ;;  %v2469_v51 = vadd.f32 %v2468_v9, %v2450_v45  ;;  %v2653_v36 = vadd.f32 %v2652_v11, %v2651_v5 }
 0x488   :  { %v2524_v37 = vadd.f32 %v2523_v30, %v2504_v62 }
 0x489   :  { %v5035_v49 = vadd.f32 %v2487_v47, %v2469_v51 }
 0x48b   :  { %v2606_v55 = vadd.f32 %v2605_v48, %v5035_v49  ;;  %v2628_v60 = vmul.f32 %v5035_v49, %v5035_v49  ;;  %v2660_v27 = vadd.f32 %v5035_v49, %v5026_v44 }
 0x48d   :  { %v2607_v59 = vrot.slane %v2606_v55, 4  ;;  %v2632_v61 = vadd.f32 %v2631_v54, %v2628_v60  ;;  %v2661_v32 = vrot.slane %v2660_v27, 4 }
 0x48e   :  { %v2506_v63 = vpop.f32.mrf.mxu2  ;;  %v2537_v19 = vpop.f32.mrf.mxu0 }
 0x48f   :  { %v2525_v2 = vpop.f32.mrf.mxu3  ;;  %v2556_v4 = vpop.f32.mrf.mxu1  ;;  %v2662_v24 = vadd.f32 %v2661_v32, %v2660_v27  ;;  %v2608_v34 = vadd.f32 %v2607_v59, %v2606_v55  ;;  %v2633_v43 = vrot.slane %v2632_v61, 4  ;;  %v2538_v0 = vadd.f32 %v2537_v19, %v2519_v38 }
 0x490   :  { %v2526_v48 = vadd.f32 %v2525_v2, %v2506_v63 }
 0x491   :  { %v2609_v1 = vrot.slane %v2608_v34, 2  ;;  %v2634_v18 = vadd.f32 %v2633_v43, %v2632_v61  ;;  %v2663_v26 = vrot.slane %v2662_v24, 2  ;;  %v2557_v9 = vadd.f32 %v2556_v4, %v2538_v0 }
 0x493   :  { %v2610_v6 = vadd.f32 %v2609_v1, %v2608_v34  ;;  %v2635_v31 = vrot.slane %v2634_v18, 2  ;;  %v2664_v7 = vadd.f32 %v2663_v26, %v2662_v24 }
 0x495   :  { %v2611_v33 = vrot.slane %v2610_v6, 1  ;;  %v2636_v10 = vadd.f32 %v2635_v31, %v2634_v18  ;;  %v2665_v16 = vrot.slane %v2664_v7, 1 }
 0x496   :  { %v2575_v25 = vpop.f32.mrf.mxu2  ;;  %v2539_v17 = vpop.f32.mrf.mxu0 }
 0x497   :  { %v2594_v8 = vpop.f32.mrf.mxu3  ;;  %v2558_v21 = vpop.f32.mrf.mxu1  ;;  %v2637_v20 = vrot.slane %v2636_v10, 1  ;;  %v2666_v22 = vadd.f32 %v2665_v16, %v2664_v7  ;;  %v2612_v23 = vadd.f32 %v2611_v33, %v2610_v6  ;;  %v2540_v29 = vadd.f32 %v2539_v17, %v2521_v13 }
 0x498   :  { %v2576_v12 = vadd.f32 %v2575_v25, %v2557_v9 }
 0x499   :  { %v2638_v14 = vadd.f32 %v2637_v20, %v2636_v10  ;;  %v2679_v39 = vsel %vm2678_vm8, %v2666_v22, %v2653_v36  ;;  %v2559_v57 = vadd.f32 %v2558_v21, %v2540_v29 }
 0x49a   :  { %v5053_v54 = vadd.f32 %v2594_v8, %v2576_v12 }
 0x49b   :  { %v2683_v40 = vsel %vm245_vm0, %v2612_v23, %v2638_v14 }
 0x49c   :  { %v5047_v41 = vsel %vm2685_vm13, %v2683_v40, %v2679_v39  ;;  %v2623_v63 = vmul.f32 %v5053_v54, %v5053_v54 }
 0x49d   :  { %2688 = vrot.lane.b32.xlu0 %v5047_v41, %s4076_s1 }
 0x49e   :  { %v2577_v45 = vpop.f32.mrf.mxu2  ;;  %v2542_v46 = vpop.f32.mrf.mxu0 }
 0x49f   :  { %v2596_v58 = vpop.f32.mrf.mxu3  ;;  %v2578_v47 = vadd.f32 %v2577_v45, %v2559_v57  ;;  %v2543_v42 = vadd.f32 %v2542_v46, %v2524_v37  ;;  %v2561_v15 = vpop.f32.mrf.mxu1 }
 0x4a1   :  { %v5051_v50 = vadd.f32 %v2596_v58, %v2578_v47  ;;  %v2562_v51 = vadd.f32 %v2561_v15, %v2543_v42 }
 0x4a3   :  { %v2613_v62 = vadd.f32 %v5051_v50, %v5053_v54  ;;  %v2625_v61 = vmul.f32 %v5051_v50, %v5051_v50 }
 0x4a5   :  { %v2654_v32 = vrot.slane %v2613_v62, 4  ;;  %v2639_v34 = vadd.f32 %v2625_v61, %v2623_v63 }
 0x4a6   :  { %v2580_v52 = vpop.f32.mrf.mxu2  ;;  %v2544_v60 = vpop.f32.mrf.mxu0 }
 0x4a7   :  { %v2599_v53 = vpop.f32.mrf.mxu3  ;;  %v2581_v55 = vadd.f32 %v2580_v52, %v2562_v51  ;;  %v2545_v30 = vadd.f32 %v2544_v60, %v2526_v48  ;;  %v2563_v59 = vpop.f32.mrf.mxu1  ;;  %v2655_v43 = vadd.f32 %v2654_v32, %v2613_v62 }
 0x4a9   :  { %v5057_v27 = vadd.f32 %v2599_v53, %v2581_v55  ;;  %v2564_v3 = vadd.f32 %v2563_v59, %v2545_v30  ;;  %v2656_v33 = vrot.slane %v2655_v43, 2 }
 0x4ab   :  { %v2627_v2 = vmul.f32 %v5057_v27, %v5057_v27  ;;  %v2614_v1 = vadd.f32 %v2613_v62, %v5057_v27  ;;  %v2657_v20 = vadd.f32 %v2656_v33, %v2655_v43 }
 0x4ad   :  { %v2640_v5 = vadd.f32 %v2639_v34, %v2627_v2  ;;  %v2658_v29 = vrot.slane %v2657_v20, 1 }
 0x4ae   :  { %v2582_v19 = vpop.f32.mrf.mxu2 }
 0x4af   :  { %v2583_v4 = vadd.f32 %v2582_v19, %v2564_v3  ;;  %v2601_v24 = vpop.f32.mrf.mxu3  ;;  %v2659_v37 = vadd.f32 %v2658_v29, %v2657_v20 }
 0x4b1   :  { %v5066_v18 = vadd.f32 %v2601_v24, %v2583_v4 }
 0x4b3   :  { %v2615_v26 = vadd.f32 %v2614_v1, %v5066_v18  ;;  %v2629_v6 = vmul.f32 %v5066_v18, %v5066_v18  ;;  %v2667_v31 = vadd.f32 %v5066_v18, %v5057_v27 }
 0x4b5   :  { %v2616_v7 = vrot.slane %v2615_v26, 4  ;;  %v2641_v25 = vadd.f32 %v2640_v5, %v2629_v6  ;;  %v2668_v8 = vrot.slane %v2667_v31, 4 }
 0x4b7   :  { %v2669_v10 = vadd.f32 %v2668_v8, %v2667_v31  ;;  %v2617_v11 = vadd.f32 %v2616_v7, %v2615_v26  ;;  %v2642_v16 = vrot.slane %v2641_v25, 4  ;;  %v2759_v26 = vld [vmem:[%s5196_s6 + $0x8] sm:$0xff]  ;;  %v2790_v7 = vld [vmem:[%s5198_s8] sm:$0x3] }
 0x4b8   :  { %2783 = vmatpush.msra.mxu0 %v2759_v26  ;;  %3861 = vmatpush.msk.msra.mxu1 %vm2685_vm13, %v2790_v7 }
 0x4b9   :  { %v2618_v17 = vrot.slane %v2617_v11, 2  ;;  %v2643_v21 = vadd.f32 %v2642_v16, %v2641_v25  ;;  %v2670_v22 = vrot.slane %v2669_v10, 2 }
 0x4ba   :  { %2784 = vmatpush.msra.mxu0 %v2758_v28 }
 0x4bb   :  { %v2619_v13 = vadd.f32 %v2618_v17, %v2617_v11  ;;  %v2644_v23 = vrot.slane %v2643_v21, 2  ;;  %v2671_v14 = vadd.f32 %v2670_v22, %v2669_v10  ;;  %v2719_v10 = vld [vmem:[%s5194_s4] sm:$0x3] }
 0x4bc   :  { %v2738_v22 = vld [vmem:[%s5195_s5] sm:$0x3] }
 0x4bd   :  { %v2620_v36 = vrot.slane %v2619_v13, 1  ;;  %v2645_v38 = vadd.f32 %v2644_v23, %v2643_v21  ;;  %v2672_v39 = vrot.slane %v2671_v14, 1 }
 0x4bf   :  { %v2646_v40 = vrot.slane %v2645_v38, 1  ;;  %v2673_v0 = vadd.f32 %v2672_v39, %v2671_v14  ;;  %v2621_v45 = vadd.f32 %v2620_v36, %v2619_v13 }
 0x4c1   :  { %v2647_v58 = vadd.f32 %v2646_v40, %v2645_v38  ;;  %v2680_v57 = vsel %vm2678_vm8, %v2673_v0, %v2659_v37 }
 0x4c3   :  { %v2684_v46 = vsel %vm245_vm0, %v2621_v45, %v2647_v58  ;;  %v4064_v45 = vld [vmem:[%s5197_s7] ss:$0 sm:$0xff] }
 0x4c4   :  { %v2687_v9 = vsel %vm2685_vm13, %v2684_v46, %v2680_v57  ;;  %v2844_v46 = vld [vmem:[%s5200_s10 + $0x18] sm:$0xff] }
 0x4c5   :  { %2690 = vrot.lane.b32.xlu0 %v2687_v9, %s4076_s1  ;;  %2882 = vmatpush.msra.mxu3 %v2844_v46 }
 0x50f   :  { %v2689_v47 = vpop.permute.xlu0 %2688 }
 0x537   :  { %v2691_v42 = vpop.permute.xlu0 %2690 }
 0x538   :  { %v2693_v15 = vsel %vm1532_vm6, %v2691_v42, %v2689_v47  ;;  %v2692_v51 = vsel %vm1532_vm6, %v2689_v47, %v2691_v42  ;;  %v2842_v47 = vld [vmem:[%s5200_s10 + $0x8] sm:$0xff]  ;;  %v2841_v42 = vld [vmem:[%s5200_s10] sm:$0xff] }
 0x539   :  { %v2694_v12 = vadd.f32 %v2693_v15, %v5047_v41  ;;  %v2695_v52 = vadd.f32 %v2692_v51, %v2687_v9  ;;  %v2843_v9 = vld [vmem:[%s5200_s10 + $0x10] sm:$0xff]  ;;  %2883 = vmatpush.msra.mxu3 %v2842_v47  ;;  %v4065_v15 = vld [vmem:[%s5199_s9] ss:$0 sm:$0xff] }
 0x53a   :  { %2862 = vmatpush.msra.mxu2 %v2843_v9  ;;  %v2945_v47 = vld [vmem:[%s5190_s0 + $0x30] sm:$0xff] }
 0x53b   :  { %2696 = vrot.lane.b32.xlu1 %v2694_v12, %s4077_s18 }
 0x53c   :  { %2863 = vmatpush.msra.mxu2 %v2841_v42  ;;  %v2946_v42 = vld [vmem:[%s5190_s0 + $0x38] sm:$0xff] }
 0x543   :  { %2698 = vrot.lane.b32.xlu1 %v2695_v52, %s4077_s18 }
 0x5ad   :  { %v2697_v53 = vpop.permute.xlu1 %2696 }
 0x5b5   :  { %v2699_v48 = vpop.permute.xlu1 %2698 }
 0x5b6   :  { %v2701_v55 = vsel %vm1541_vm7, %v2699_v48, %v2697_v53  ;;  %v2700_v62 = vsel %vm1541_vm7, %v2697_v53, %v2699_v48 }
 0x5b7   :  { %v2702_v60 = vadd.f32 %v2701_v55, %v2694_v12  ;;  %v2703_v41 = vadd.f32 %v2700_v62, %v2695_v52 }
 0x5b9   :  { %2704 = vrot.lane.b32.xlu2 %v2702_v60, %s4078_s19 }
 0x5c1   :  { %2706 = vrot.lane.b32.xlu2 %v2703_v41, %s4078_s19 }
 0x613   :  { %v2705_v30 = vpop.permute.xlu2 %2704 }
 0x61b   :  { %v2707_v59 = vpop.permute.xlu2 %2706 }
 0x61c   :  { %v2708_v61 = vsel %vm1550_vm9, %v2705_v30, %v2707_v59  ;;  %v2709_v32 = vsel %vm1550_vm9, %v2707_v59, %v2705_v30  ;;  %vm2898_vm9 = vcmask 1041409  }
 0x61d   :  { %v2710_v3 = vadd.f32 %v2709_v32, %v2702_v60  ;;  %v2711_v19 = vadd.f32 %v2708_v61, %v2703_v41 }
 0x61f   :  { %v2712_v63 = vadd.f32 %v2711_v19, %v2710_v3 }
 0x621   :  { %v2713_v2 = vmul.f32 0.001953125, %v2712_v63  ;;  %v2752_v38 = vmul.f32 0.00390625, %v2712_v63 }
 0x623   :  { %v2714_v4 = vmul.f32 %v2713_v2, %v2713_v2 }
 0x625   :  { %v2716_v24 = vrot.slane %v2714_v4, 7 }
 0x627   :  { %v2718_v34 = vsub.f32 %v2713_v2, %v2716_v24 }
 0x629   :  { %v2720_v43 = vadd.f32 1e-05, %v2718_v34 }
 0x62b   :  { %4066 = vrsqrt.f32 %v2720_v43  ;;  %vm2727_vm15 = vweird.f32 %v2720_v43 }
 0x631   :  { %v4067_v1 = vpop.eup %4066 }
 0x632   :  { %v2722_v5 = vmul.f32 %v4067_v1, %v2720_v43  ;;  %vm2728_vm14 = vweird.f32 %v4067_v1 }
 0x633   :  { %vm2729_vm2 = vmor %vm2727_vm15, %vm2728_vm14 }
 0x634   :  { %v2723_v6 = vmul.f32 %v4067_v1, %v2722_v5 }
 0x636   :  { %v2724_v31 = vmul.f32 0.5, %v2723_v6 }
 0x638   :  { %v2725_v25 = vsub.f32 1.5, %v2724_v31 }
 0x63a   :  { %v2726_v8 = vmul.f32 %v4067_v1, %v2725_v25 }
 0x63c   :  { %v2730_v33 = vsel %vm2729_vm2, %v4067_v1, %v2726_v8 }
 0x63d   :  { %2732 = vst [vmem:[#allocation1] sm:$0xff] %v2730_v33 }
 0x63e   :  { %2733 = vst [vmem:[#allocation1 + $0x9] sm:$0xff] %v2730_v33 }
 0x645   :  { %v2735_v11 = vld [vmem:[#allocation1 + $0x1] ss:$9 sm:$0xff] }
 0x646   :  { %v2737_v16 = vmul.f32 %v2735_v11, %v2719_v10 }
 0x648   :  { %v2740_v17 = vperm.slane %v2737_v16, 0  ;;  %v2741_v21 = vperm.slane %v2737_v16, 1 }
 0x64a   :  { %v2745_v20 = vmul.f32 %v2741_v21, %v2713_v2  ;;  %v2744_v13 = vmul.f32 %v2740_v17, %v2713_v2  ;;  %v2753_v29 = vmul.f32 %v2752_v38, %v2740_v17 }
 0x64c   :  { %v2748_v23 = vrot.slane %v2745_v20, 7 }
 0x64e   :  { %v2749_v14 = vsel %vm245_vm0, %v2744_v13, %v2748_v23 }
 0x64f   :  { %v2751_v36 = vsub.f32 %v2738_v22, %v2749_v14 }
 0x651   :  { %v2755_v39 = vperm.slane %v2751_v36, 0  ;;  %v2890_v2 = vperm.slane %v2751_v36, 1 }
 0x653   :  { %v2757_v40 = vadd.f32 %v2755_v39, %v2753_v29  ;;  %v2939_v29 = vld [vmem:[%s5190_s0] sm:$0xff] }
 0x655   :  { %v2765_v0 = vrot.slane %v2757_v40, 2 }
 0x657   :  { %3860 = vmatmul.msk.f32.vlgmr.msra.gmra.mxu0 %vm2766_vm3, %v2765_v0 }
 0x6d4   :  { %v2786_v58 = vpop.f32.mrf.mxu0 }
 0x6d5   :  { %v2787_v37 = vadd.f32 %v4064_v45, %v2786_v58 }
 0x6d7   :  { %v2789_v57 = vmax.f32 %v2787_v37, 0.0 }
 0x6d9   :  { %3862 = vmatmul.msk.f32.vlgmr.msra.gmra.mxu1 %vm2795_vm4, %v2789_v57 }
 0x756   :  { %v2819_v12 = vpop.f32.mrf.mxu1 }
 0x757   :  { %v2820_v51 = vadd.f32 %v4065_v15, %v2819_v12 }
 0x759   :  { %v2822_v52 = vsub.f32 0.0, %v2820_v51 }
 0x75b   :  { %v2823_v53 = vmul.f32 1.442695, %v2822_v52 }
 0x75d   :  { %4068 = vpow2.f32 %v2823_v53 }
 0x763   :  { %v4069_v48 = vpop.eup %4068 }
 0x764   :  { %v2825_v55 = vadd.f32 1.0, %v4069_v48 }
 0x766   :  { %4070 = vrcp.f32 %v2825_v55  ;;  %v2837_v30 = vand.u32 2147483648, %v2825_v55  ;;  %v2835_v61 = vand.u32 2147483647, %v2825_v55  ;;  %vm2831_vm5 = vweird.f32 %v2825_v55 }
 0x768   :  { %v2838_v3 = vor.u32 1.1754944e-38, %v2837_v30  ;;  %vm2836_vm7 = vcmp.eq.f32.partialorder %v2835_v61, 8.507059e+37 }
 0x76c   :  { %v4071_v60 = vpop.eup %4070 }
 0x76d   :  { %v2827_v62 = vmul.f32 %v4071_v60, %v2825_v55  ;;  %vm2832_vm1 = vweird.f32 %v4071_v60 }
 0x76e   :  { %vm2833_vm6 = vmor %vm2831_vm5, %vm2832_vm1 }
 0x76f   :  { %v2828_v41 = vsub.f32 1.0, %v2827_v62 }
 0x771   :  { %v2829_v59 = vmul.f32 %v4071_v60, %v2828_v41 }
 0x773   :  { %v2830_v32 = vadd.f32 %v4071_v60, %v2829_v59 }
 0x775   :  { %v2834_v19 = vsel %vm2833_vm6, %v4071_v60, %v2830_v32 }
 0x776   :  { %v2839_v63 = vsel %vm2836_vm7, %v2838_v3, %v2834_v19 }
 0x777   :  { %3863 = vmatmul.msk.f32.vlgmr.msra.gmra.mxu2 %vm2766_vm3, %v2839_v63  ;;  %3864 = vmatmul.msk.f32.vlgmr.msra.gmra.mxu3 %vm2766_vm3, %v2839_v63 }
 0x7fa   :  { %v2865_v4 = vpop.f32.mrf.mxu2  ;;  %v2885_v24 = vpop.f32.mrf.mxu3 }
 0x7fb   :  { %v2889_v34 = vmul.f32 %v2885_v24, %v2741_v21  ;;  %v2893_v43 = vmul.f32 %v2890_v2, %v2885_v24  ;;  %v2888_v1 = vmul.f32 %v2865_v4, %v2740_v17  ;;  %v2892_v5 = vmul.f32 %v2865_v4, %v2755_v39 }
 0x7fd   :  { %v2896_v26 = vrot.slane %v2889_v34, 7  ;;  %v2919_v6 = vrot.slane %v2893_v43, 7 }
 0x7ff   :  { %v2897_v28 = vsel %vm245_vm0, %v2888_v1, %v2896_v26  ;;  %v2899_v31 = vsel %vm2898_vm9, %v2888_v1, %v2896_v26  ;;  %v2920_v7 = vsel %vm245_vm0, %v2892_v5, %v2919_v6  ;;  %v2921_v25 = vsel %vm2898_vm9, %v2892_v5, %v2919_v6 }
 0x800   :  { %v2900_v8 = vrot.slane %v2899_v31, 1  ;;  %v2901_v33 = vperm.slane %v2897_v28, 0  ;;  %v2902_v10 = vperm.slane %v2897_v28, 1  ;;  %v2922_v11 = vrot.slane %v2921_v25, 1 }
 0x801   :  { %v2923_v16 = vperm.slane %v2920_v7, 0  ;;  %v2924_v20 = vperm.slane %v2920_v7, 1 }
 0x802   :  { %v2903_v22 = vperm.slane %v2900_v8, 0  ;;  %v2904_v21 = vperm.slane %v2900_v8, 1  ;;  %v2909_v13 = vmul.f32 %v2901_v33, %v5022_v56  ;;  %v2910_v17 = vmul.f32 %v2902_v10, %v5053_v54  ;;  %v2942_v54 = vld [vmem:[%s5190_s0 + $0x18] sm:$0xff] }
 0x803   :  { %v2911_v23 = vmul.f32 %v2901_v33, %v5020_v35  ;;  %v2912_v14 = vmul.f32 %v2902_v10, %v5051_v50  ;;  %v2925_v36 = vperm.slane %v2922_v11, 0  ;;  %v2926_v38 = vperm.slane %v2922_v11, 1  ;;  %v2940_v35 = vld [vmem:[%s5190_s0 + $0x8] sm:$0xff]  ;;  %v2941_v50 = vld [vmem:[%s5190_s0 + $0x10] sm:$0xff] }
 0x804   :  { %v2913_v39 = vmul.f32 %v2903_v22, %v5026_v44  ;;  %v2914_v40 = vmul.f32 %v2904_v21, %v5057_v27  ;;  %v2915_v0 = vmul.f32 %v2903_v22, %v5035_v49  ;;  %v2916_v56 = vmul.f32 %v2904_v21, %v5066_v18  ;;  %v2943_v49 = vld [vmem:[%s5190_s0 + $0x20] sm:$0xff]  ;;  %v2944_v18 = vld [vmem:[%s5190_s0 + $0x28] sm:$0xff] }
 0x805   :  { %v2931_v45 = vadd.f32 %v2923_v16, %v2909_v13  ;;  %v2932_v44 = vadd.f32 %v2924_v20, %v2910_v17  ;;  %v2933_v58 = vadd.f32 %v2923_v16, %v2911_v23  ;;  %v2934_v27 = vadd.f32 %v2924_v20, %v2912_v14 }
 0x806   :  { %v2935_v37 = vadd.f32 %v2925_v36, %v2913_v39  ;;  %v2936_v57 = vadd.f32 %v2926_v38, %v2914_v40  ;;  %v2937_v46 = vadd.f32 %v2925_v36, %v2915_v0  ;;  %v2938_v9 = vadd.f32 %v2926_v38, %v2916_v56 }
 0x807   :  { %v2947_v15 = vadd.f32 %v2939_v29, %v2931_v45  ;;  %v2948_v12 = vadd.f32 %v2940_v35, %v2932_v44  ;;  %v2949_v51 = vadd.f32 %v2941_v50, %v2933_v58  ;;  %v2950_v52 = vadd.f32 %v2942_v54, %v2934_v27 }
 0x808   :  { %v2951_v53 = vadd.f32 %v2943_v49, %v2935_v37  ;;  %v2952_v48 = vadd.f32 %v2944_v18, %v2936_v57  ;;  %v2953_v55 = vadd.f32 %v2945_v47, %v2937_v46  ;;  %v2954_v30 = vadd.f32 %v2946_v42, %v2938_v9 }
 0x809   :  { %v2955_v60 = vmax.f32 %v2947_v15, 0.0  ;;  %v2956_v62 = vmax.f32 %v2948_v12, 0.0  ;;  %v2957_v41 = vmax.f32 %v2949_v51, 0.0  ;;  %v2958_v59 = vmax.f32 %v2950_v52, 0.0 }
 0x80a   :  { %v2959_v61 = vmax.f32 %v2951_v53, 0.0  ;;  %v2960_v32 = vmax.f32 %v2952_v48, 0.0  ;;  %v2961_v3 = vmax.f32 %v2953_v55, 0.0  ;;  %v2962_v19 = vmax.f32 %v2954_v30, 0.0 }
 0x80b   :  { %2963 = vst [vmem:[%s5201_s11] sm:$0xff] %v2955_v60 }
 0x80c   :  { %2964 = vst [vmem:[%s5201_s11 + $0x8] sm:$0xff] %v2956_v62 }
 0x80d   :  { %2965 = vst [vmem:[%s5201_s11 + $0x10] sm:$0xff] %v2957_v41 }
 0x80e   :  { %2966 = vst [vmem:[%s5201_s11 + $0x18] sm:$0xff] %v2958_v59 }
 0x80f   :  { %2967 = vst [vmem:[%s5201_s11 + $0x20] sm:$0xff] %v2959_v61 }
 0x810   :  { %2968 = vst [vmem:[%s5201_s11 + $0x28] sm:$0xff] %v2960_v32 }
 0x811   :  { %2969 = vst [vmem:[%s5201_s11 + $0x30] sm:$0xff] %v2961_v3 }
 0x812   :  { %2970 = vst [vmem:[%s5201_s11 + $0x38] sm:$0xff] %v2962_v19 }
 0x813   :  { %2975 = vsyncmov [#allocation4] }
 0x816   :  { %s2976_s19 = vpop.sfrf %2975 }
 0x817   :  { %p3865_p0 = scmp.ne.s32.totalorder %s2976_s19, 0 }
 0x819   :  { %2980 = shalt.err (%p3865_p0)  }
 0x81a   :  { %2982 = vsyncmov [#allocation4 + $0x1] }
 0x81d   :  { %s2983_s20 = vpop.sfrf %2982 }
 0x81e   :  { %p3866_p1 = scmp.ne.s32.totalorder %s2983_s20, 0 }
 0x820   :  { %2987 = shalt.err (%p3866_p1)  }

</bundles_post_ra>
